<compile_context>
chip_gen: v5e
topology: v5e:2x2
jax: 0.10.0
libtpu: 0.0.40
codegen_flags: <defaults>
</compile_context>

<pallas_src>
import numpy as np
import jax
import jax.numpy as jnp
from jax.experimental import pallas as pl
from jax.experimental.pallas import tpu as pltpu

_BN_EPS = 1e-5
_VMEM_BUDGET_BYTES = 20 * 1024 * 1024   # target resident working set per step
_VMEM_LIMIT_BYTES = 40 * 1024 * 1024    # scoped VMEM limit (safe on v5e/v6e/v7x)


def _round_up(x, m):
    return (x + m - 1) // m * m


def _fold_bn(gamma, beta, mean, var, eps=_BN_EPS):
    scale = gamma.astype(jnp.float32) / jnp.sqrt(var.astype(jnp.float32) + eps)
    bias = beta.astype(jnp.float32) - mean.astype(jnp.float32) * scale
    return scale, bias


def _prepare_folded(params, *, expand):
    """Fold BN scales into the conv weights host-side (perf-review item)."""
    folded = {}
    if expand:
        s, b = _fold_bn(*params["bn_exp"])
        w = params["w_exp"].astype(jnp.float32) * s[None, :]
        # The folded expand bias rides an extra constant "indicator" input
        # channel (1 inside the image, 0 in the zero padding) -> the expanded
        # hidden slab is exactly 0 at halo pixels with no in-kernel masking.
        folded["w_exp_aug"] = jnp.concatenate([w, b[None, :]], axis=0).astype(
            jnp.bfloat16)
    s, b = _fold_bn(*params["bn_dw"])
    folded["w_dw"] = params["w_dw"].astype(jnp.float32) * s[None, None, :]
    folded["b_dw"] = b
    s, b = _fold_bn(*params["bn_proj"])
    folded["w_pr"] = (params["w_proj"].astype(jnp.float32)
                      * s[None, :]).astype(jnp.bfloat16)
    folded["b_pr"] = b
    return folded


# ----------------------------------------------------------------------------
# Tiling / gather plan (all static, computed host-side with numpy)
# ----------------------------------------------------------------------------
def _make_plan(*, n_batch, h_img, w_img, inp, hidden, oup, stride, expand):
    ho = (h_img - 1) // stride + 1
    wo = (w_img - 1) // stride + 1
    wo_p = _round_up(wo, 8)                 # lane/sublane friendly output width
    cin = inp + 1 if expand else inp        # +1 indicator channel when expanding

    if stride == 1:
        wc = wo_p + 8                       # room for kx in {0,1,2}, mult of 8
        col_off = (0, 1, 2)                 # slab column offset per kx
        col_idx = np.arange(wc)
    else:
        # Even/odd column planes so the stride-2 taps are contiguous slices.
        c_even = wo_p + 8                   # holds wo_p+1 even cols (+ 0 filler)
        wc = c_even + wo_p                  # + wo_p odd cols
        col_off = (0, c_even, 1)            # kx=0 -> E[j], kx=1 -> O[j], kx=2 -> E[j+1]
        col_idx = np.concatenate([
            2 * np.arange(wo_p + 1),
            np.full(c_even - (wo_p + 1), 2 * wo_p, dtype=np.int64),
            1 + 2 * np.arange(wo_p)])

    def th_in_of(th):
        return th + 2 if stride == 1 else 2 * th + 1

    def ws_bytes(th):                       # rough per-step VMEM working set
        th_in = th_in_of(th)
        b = 2 * th_in * wc * cin * 4                # input block (double-buffered)
        b += 2 * th * wo_p * oup * 4                # output block (double-buffered)
        if expand:
            b += th_in * wc * hidden * (2 + 4)      # bf16 slab + f32 matmul temp
        b += 4 * th_in * wo_p * hidden * 4          # dw col slab / acc / z temps
        b += 2 * (cin * hidden * 2 + 9 * hidden * 4 + hidden * 4
                  + hidden * oup * 2 + oup * 4)     # weights + biases
        return b

    # Budget-driven row tile; keep >= 2 grid steps so both v7x TCs get work.
    th = ho if n_batch >= 2 else max(1, (ho + 1) // 2)
    while th > 1 and ws_bytes(th) > _VMEM_BUDGET_BYTES:
        th -= 1
    n_tiles = -(-ho // th)                  # non-divisor last tile allowed
    th_in = th_in_of(th)

    rows = []
    for t in range(n_tiles):
        if stride == 1:
            r0 = t * th
            rows.append(np.arange(r0, r0 + th_in))
        else:
            r0 = 2 * t * th                 # [even rows (th+1) ; odd rows (th)]
            rows.append(np.concatenate([r0 + 2 * np.arange(th + 1),
                                        r0 + 1 + 2 * np.arange(th)]))
    row_idx = np.stack(rows)
    row_off = (0, 1, 2) if stride == 1 else (0, th + 1, 1)

    return dict(ho=ho, wo=wo, wo_p=wo_p, wc=wc, cin=cin, th=th, th_in=th_in,
                n_tiles=n_tiles, row_idx=row_idx, col_idx=col_idx,
                row_off=row_off, col_off=col_off)


# ----------------------------------------------------------------------------
# Fused Pallas kernel
# ----------------------------------------------------------------------------
def _make_kernel(*, expand, use_res, th, th_in, wc, wo_p, hidden, oup, inp,
                 cin, row_off, col_off):
    def kernel(*refs):
        if expand:
            (x_ref, w_exp_ref, w_dw_ref, b_dw_ref, w_pr_ref, b_pr_ref,
             out_ref, h_scr) = refs
        else:
            x_ref, w_dw_ref, b_dw_ref, w_pr_ref, b_pr_ref, out_ref = refs
            h_scr = x_ref        # depthwise reads the (f32) input block directly

        # ---- expand 1x1 (+folded BN) + ReLU6: MXU, bf16 x bf16 -> f32 acc ----
        if expand:
            x2d = x_ref[...].reshape(th_in * wc, cin).astype(jnp.bfloat16)
            h = jnp.dot(x2d, w_exp_ref[...], preferred_element_type=jnp.float32)
            h = jnp.clip(h, 0.0, 6.0)
            # bf16 hidden slab: halves VMEM + depthwise load traffic.
            h_scr[...] = h.reshape(th_in, wc, hidden).astype(h_scr.dtype)

        # ---- depthwise 3x3 (+folded BN scale) + bias + ReLU6: VPU, f32 -------
        wdw = w_dw_ref[...]                                    # (9, hidden) f32
        acc = None
        for kx in range(3):
            # one sublane-offset load per kx, reused across the three ky taps
            col = h_scr[:, pl.ds(col_off[kx], wo_p), :].astype(jnp.float32)
            for ky in range(3):
                patch = jax.lax.slice_in_dim(col, row_off[ky],
                                             row_off[ky] + th, axis=0)
                term = patch * wdw[3 * ky + kx].reshape(1, 1, hidden)
                acc = term if acc is None else acc + term
        z = jnp.clip(acc + b_dw_ref[...].reshape(1, 1, hidden), 0.0, 6.0)

        # ---- project 1x1 (+folded BN scale) + bias (+ residual): MXU ---------
        z2d = z.reshape(th * wo_p, hidden).astype(jnp.bfloat16)
        y = jnp.dot(z2d, w_pr_ref[...], preferred_element_type=jnp.float32)
        y = (y + b_pr_ref[...]).reshape(th, wo_p, oup)
        if use_res:
            # residual = the real (non-halo) pixels of the input block, in f32
            y = y + x_ref[pl.ds(1, th), pl.ds(1, wo_p), pl.ds(0, inp)]
        out_ref[...] = y.astype(out_ref.dtype)

    return kernel


def inverted_residual_forward(x_nchw, folded, *, inp, oup, hidden, stride,
                              expand, use_res):
    n_batch, cin_x, h_img, w_img = x_nchw.shape
    assert cin_x == inp
    p = _make_plan(n_batch=n_batch, h_img=h_img, w_img=w_img, inp=inp,
                   hidden=hidden, oup=oup, stride=stride, expand=expand)
    th, th_in, wc, wo_p, cin = p["th"], p["th_in"], p["wc"], p["wo_p"], p["cin"]
    n_tiles, ho, wo = p["n_tiles"], p["ho"], p["wo"]

    # NCHW -> NHWC (+ indicator channel when expanding), zero pad, and gather
    # the per-tile haloed windows host-side so a plain BlockSpec auto-pipelines
    # the input (no manual DMA; the copy for tile t+1 overlaps compute of t).
    # TODO(synk): when chaining blocks, keep activations NHWC between blocks and
    #             drop these per-block NCHW<->NHWC relayouts.
    x = jnp.transpose(x_nchw, (0, 2, 3, 1)).astype(jnp.float32)
    if expand:
        x = jnp.concatenate(
            [x, jnp.ones((n_batch, h_img, w_img, 1), jnp.float32)], axis=-1)
    pad_b = max(0, int(p["row_idx"].max()) - h_img)
    pad_r = max(0, int(p["col_idx"].max()) - w_img)
    xpad = jnp.pad(x, ((0, 0), (1, pad_b), (1, pad_r), (0, 0)))
    ri = jnp.asarray(p["row_idx"], jnp.int32)
    ci = jnp.asarray(p["col_idx"], jnp.int32)
    x_tiles = xpad[:, ri[:, :, None], ci[None, None, :], :]
    # x_tiles: (n_batch, n_tiles, th_in, wc, cin)

    kernel = _make_kernel(expand=expand, use_res=use_res, th=th, th_in=th_in,
                          wc=wc, wo_p=wo_p, hidden=hidden, oup=oup, inp=inp,
                          cin=cin, row_off=p["row_off"], col_off=p["col_off"])

    in_specs = [pl.BlockSpec((None, None, th_in, wc, cin),
                             lambda i, j: (i, j, 0, 0, 0))]
    inputs = [x_tiles]
    if expand:
        in_specs.append(pl.BlockSpec((cin, hidden), lambda i, j: (0, 0)))
        inputs.append(folded["w_exp_aug"])
    in_specs += [
        pl.BlockSpec((9, hidden), lambda i, j: (0, 0)),
        pl.BlockSpec((1, hidden), lambda i, j: (0, 0)),
        pl.BlockSpec((hidden, oup), lambda i, j: (0, 0)),
        pl.BlockSpec((1, oup), lambda i, j: (0, 0)),
    ]
    inputs += [folded["w_dw"].reshape(9, hidden),
               folded["b_dw"].reshape(1, hidden),
               folded["w_pr"],
               folded["b_pr"].reshape(1, oup)]

    scratch = [pltpu.VMEM((th_in, wc, hidden), jnp.bfloat16)] if expand else []

    y = pl.pallas_call(
        kernel,
        grid=(n_batch, n_tiles),
        in_specs=in_specs,
        out_specs=pl.BlockSpec((None, th, wo_p, oup), lambda i, j: (i, j, 0, 0)),
        out_shape=jax.ShapeDtypeStruct((n_batch, n_tiles * th, wo_p, oup),
                                       x_nchw.dtype),
        scratch_shapes=scratch,
        compiler_params=pltpu.CompilerParams(
            dimension_semantics=("parallel", "parallel"),
            vmem_limit_bytes=_VMEM_LIMIT_BYTES),
    )(*inputs)

    y = y[:, :ho, :wo, :]                       # drop row/width padding
    return jnp.transpose(y, (0, 3, 1, 2))       # NHWC -> NCHW


# ----------------------------------------------------------------------------
# Module
# ----------------------------------------------------------------------------
class InvertedResidualPallas:
    """Pallas/TPU forward of the reference PyTorch `InvertedResidual` module.

    The original module's Conv2d/BatchNorm2d/ReLU wrappers carry a 2-element
    list [tensor, aux] through the block; the tensor math is reproduced here
    and the aux element is passed through unchanged.
    """
    # TODO(synk): exact semantics of the auxiliary list element produced by the
    #             custom Conv2d/BatchNorm2d/ReLU wrappers are not available in
    #             the reference source; it is treated as an opaque pass-through.

    def __init__(self, key, inp, oup, stride, expand_ratio, dtype=jnp.float32):
        assert stride in (1, 2)
        self.inp, self.oup, self.stride = inp, oup, stride
        self.expand_ratio = expand_ratio
        self.expand = expand_ratio != 1
        self.hidden = int(round(inp * expand_ratio))
        self.use_res_connect = stride == 1 and inp == oup

        def bn_params(k, c):
            k1, k2, k3, k4 = jax.random.split(k, 4)
            gamma = 1.0 + 0.1 * jax.random.normal(k1, (c,), dtype)
            beta = 0.1 * jax.random.normal(k2, (c,), dtype)
            mean = 0.1 * jax.random.normal(k3, (c,), dtype)
            var = 0.5 + 0.5 * jnp.abs(jax.random.normal(k4, (c,), dtype))
            return gamma, beta, mean, var

        keys = jax.random.split(key, 6)
        prm = {}
        if self.expand:
            prm["w_exp"] = 0.1 * jax.random.normal(keys[0], (inp, self.hidden),
                                                   dtype)
            prm["bn_exp"] = bn_params(keys[1], self.hidden)
        prm["w_dw"] = 0.1 * jax.random.normal(keys[2], (3, 3, self.hidden), dtype)
        prm["bn_dw"] = bn_params(keys[3], self.hidden)
        prm["w_proj"] = 0.1 * jax.random.normal(keys[4], (self.hidden, oup), dtype)
        prm["bn_proj"] = bn_params(keys[5], oup)
        self.params = prm
        self.folded = _prepare_folded(prm, expand=self.expand)

    def __call__(self, x):
        # x is a 2-element list [tensor(NCHW), aux]; aux is passed through.
        x0, aux = x[0], x[1]
        y = inverted_residual_forward(
            x0, self.folded, inp=self.inp, oup=self.oup, hidden=self.hidden,
            stride=self.stride, expand=self.expand,
            use_res=self.use_res_connect)
        return [y, aux]


# ----------------------------------------------------------------------------
# Pure-JAX reference, mirroring the kernel's precision policy
# (bf16 1x1 matmuls with f32 accumulation, bf16 hidden-slab storage)
# ----------------------------------------------------------------------------
def _reference(x_nchw, mod: InvertedResidualPallas):
    f = mod.folded
    x = jnp.transpose(x_nchw, (0, 2, 3, 1)).astype(jnp.float32)
    n, h_img, w_img, _ = x.shape
    if mod.expand:
        xa = jnp.concatenate(
            [x, jnp.ones((n, h_img, w_img, 1), jnp.float32)], axis=-1)
        h = jnp.dot(xa.astype(jnp.bfloat16).reshape(-1, mod.inp + 1),
                    f["w_exp_aug"], preferred_element_type=jnp.float32)
        h = jnp.clip(h, 0.0, 6.0).reshape(n, h_img, w_img, mod.hidden)
        h = h.astype(jnp.bfloat16).astype(jnp.float32)   # mirror bf16 slab
    else:
        h = x
    wdw = f["w_dw"].reshape(3, 3, 1, mod.hidden)
    h = jax.lax.conv_general_dilated(
        h, wdw, (mod.stride, mod.stride), [(1, 1), (1, 1)],
        dimension_numbers=("NHWC", "HWIO", "NHWC"),
        feature_group_count=mod.hidden,
        precision=jax.lax.Precision.HIGHEST)
    h = jnp.clip(h + f["b_dw"], 0.0, 6.0)
    ho, wo = h.shape[1], h.shape[2]
    y = jnp.dot(h.astype(jnp.bfloat16).reshape(-1, mod.hidden), f["w_pr"],
                preferred_element_type=jnp.float32)
    y = (y + f["b_pr"]).reshape(n, ho, wo, mod.oup)
    if mod.use_res_connect:
        y = y + x
    return jnp.transpose(y, (0, 3, 1, 2))


# ----------------------------------------------------------------------------
if __name__ == "__main__":
    key = jax.random.PRNGKey(0)
    k1, k2, k3, kx1, kx2, kx3 = jax.random.split(key, 6)
    aux = jnp.float32(1.0)                       # opaque second list element

    # Test 1: expand_ratio=4, stride=1, inp==oup -> expand + residual path.
    mod1 = InvertedResidualPallas(k1, inp=8, oup=8, stride=1, expand_ratio=4)
    x1 = jax.random.normal(kx1, (2, 8, 16, 16), jnp.float32)
    y1, aux1 = mod1([x1, aux])
    y1 = jax.block_until_ready(y1)
    r1 = _reference(x1, mod1)
    assert y1.shape == r1.shape == (2, 8, 16, 16)
    assert jnp.allclose(y1, r1, atol=1e-2, rtol=1e-2), "mismatch (test 1)"

    # Test 2: expand_ratio=1, stride=1, inp!=oup, width not a multiple of 8.
    mod2 = InvertedResidualPallas(k2, inp=8, oup=16, stride=1, expand_ratio=1)
    x2 = jax.random.normal(kx2, (2, 8, 16, 12), jnp.float32)
    y2, _ = mod2([x2, aux])
    y2 = jax.block_until_ready(y2)
    r2 = _reference(x2, mod2)
    assert y2.shape == r2.shape == (2, 16, 16, 12)
    assert jnp.allclose(y2, r2, atol=1e-2, rtol=1e-2), "mismatch (test 2)"

    # Test 3: expand_ratio=6, stride=2, odd spatial size (previously untested).
    mod3 = InvertedResidualPallas(k3, inp=8, oup=16, stride=2, expand_ratio=6)
    x3 = jax.random.normal(kx3, (2, 8, 15, 15), jnp.float32)
    y3, _ = mod3([x3, aux])
    y3 = jax.block_until_ready(y3)
    r3 = _reference(x3, mod3)
    assert y3.shape == r3.shape == (2, 16, 8, 8)
    assert jnp.allclose(y3, r3, atol=1e-2, rtol=1e-2), "mismatch (test 3)"

    print("KERNEL_OK")
</pallas_src>

<mosaic_0001>
module attributes {stable_mosaic.version = 11 : i64} {
  func.func @kernel(%arg0: i32, %arg1: i32, %arg2: memref<1x1x18x24x9xf32, #tpu.memory_space<vmem>>, %arg3: memref<9x32xbf16, #tpu.memory_space<vmem>>, %arg4: memref<9x32xf32, #tpu.memory_space<vmem>>, %arg5: memref<1x32xf32, #tpu.memory_space<vmem>>, %arg6: memref<32x8xbf16, #tpu.memory_space<vmem>>, %arg7: memref<1x8xf32, #tpu.memory_space<vmem>>, %arg8: memref<1x16x16x8xf32, #tpu.memory_space<vmem>>, %arg9: memref<18x24x32xbf16, #tpu.memory_space<vmem>>) attributes {dimension_semantics = [#tpu.dimension_semantics<parallel>, #tpu.dimension_semantics<parallel>], iteration_bounds = array<i64: 2, 1>, scalar_prefetch = 0 : i64, scratch_operands = 1 : i64, tpu.core_type = #tpu.core_type<tc>, window_params = [{transform_indices = @transform_0, window_bounds = array<i64: 1, 1, 18, 24, 9>}, {pipeline_mode = #tpu.pipeline_mode<synchronous>, transform_indices = @transform_1, window_bounds = array<i64: 9, 32>}, {pipeline_mode = #tpu.pipeline_mode<synchronous>, transform_indices = @transform_2, window_bounds = array<i64: 9, 32>}, {pipeline_mode = #tpu.pipeline_mode<synchronous>, transform_indices = @transform_3, window_bounds = array<i64: 1, 32>}, {pipeline_mode = #tpu.pipeline_mode<synchronous>, transform_indices = @transform_4, window_bounds = array<i64: 32, 8>}, {pipeline_mode = #tpu.pipeline_mode<synchronous>, transform_indices = @transform_5, window_bounds = array<i64: 1, 8>}, {transform_indices = @transform_6, window_bounds = array<i64: 1, 16, 16, 8>}]} {
    %c0 = arith.constant 0 : index
    %c0_0 = arith.constant 0 : index
    %c0_1 = arith.constant 0 : index
    %c0_2 = arith.constant 0 : index
    %c0_3 = arith.constant 0 : index
    %0 = vector.load %arg2[%c0, %c0_0, %c0_1, %c0_2, %c0_3] : memref<1x1x18x24x9xf32, #tpu.memory_space<vmem>>, vector<1x1x18x24x9xf32>
    %1 = vector.shape_cast %0 : vector<1x1x18x24x9xf32> to vector<18x24x9xf32>
    %2 = vector.shape_cast %1 : vector<18x24x9xf32> to vector<432x9xf32>
    %3 = arith.truncf %2 : vector<432x9xf32> to vector<432x9xbf16>
    %c0_4 = arith.constant 0 : index
    %c0_5 = arith.constant 0 : index
    %4 = vector.load %arg3[%c0_4, %c0_5] : memref<9x32xbf16, #tpu.memory_space<vmem>>, vector<9x32xbf16>
    %cst = arith.constant dense<0.000000e+00> : vector<432x32xf32>
    %5 = tpu.matmul %3, %4, %cst {dimension_numbers = #tpu.dot_dimension_numbers<[1], [0], [0], [1], [0, 0, 1, 1], [], []>} : vector<432x9xbf16>, vector<9x32xbf16>, vector<432x32xf32> -> vector<432x32xf32>
    %cst_6 = arith.constant 0.000000e+00 : f32
    %cst_7 = arith.constant 6.000000e+00 : f32
    %6 = vector.broadcast %cst_6 : f32 to vector<432x32xf32>
    %7 = arith.maximumf %6, %5 : vector<432x32xf32>
    %8 = vector.broadcast %cst_7 : f32 to vector<432x32xf32>
    %9 = arith.minimumf %8, %7 : vector<432x32xf32>
    %10 = vector.shape_cast %9 : vector<432x32xf32> to vector<18x24x32xf32>
    %11 = arith.truncf %10 : vector<18x24x32xf32> to vector<18x24x32xbf16>
    %c0_8 = arith.constant 0 : index
    %c0_9 = arith.constant 0 : index
    %c0_10 = arith.constant 0 : index
    %12 = vector.load %arg9[%c0_8, %c0_9, %c0_10] : memref<18x24x32xbf16, #tpu.memory_space<vmem>>, vector<18x24x32xbf16>
    tpu.vector_store %arg9[%c0_8, %c0_9, %c0_10], %11 {strides = array<i32>} : memref<18x24x32xbf16, #tpu.memory_space<vmem>>, vector<18x24x32xbf16>,
    %c0_11 = arith.constant 0 : index
    %c0_12 = arith.constant 0 : index
    %13 = vector.load %arg4[%c0_11, %c0_12] : memref<9x32xf32, #tpu.memory_space<vmem>>, vector<9x32xf32>
    %c0_13 = arith.constant 0 : index
    %c0_14 = arith.constant 0 : index
    %c0_15 = arith.constant 0 : index
    %14 = vector.load %arg9[%c0_13, %c0_14, %c0_15] : memref<18x24x32xbf16, #tpu.memory_space<vmem>>, vector<18x16x32xbf16>
    %15 = arith.extf %14 : vector<18x16x32xbf16> to vector<18x16x32xf32>
    %16 = vector.extract_strided_slice %15 {offsets = [0, 0, 0], sizes = [16, 16, 32], strides = [1, 1, 1]} : vector<18x16x32xf32> to vector<16x16x32xf32>
    %17 = vector.extract_strided_slice %13 {offsets = [0, 0], sizes = [1, 32], strides = [1, 1]} : vector<9x32xf32> to vector<1x32xf32>
    %18 = vector.shape_cast %17 : vector<1x32xf32> to vector<32xf32>
    %19 = vector.shape_cast %18 : vector<32xf32> to vector<1x1x32xf32>
    %20 = vector.broadcast %19 : vector<1x1x32xf32> to vector<16x16x32xf32>
    %21 = arith.mulf %16, %20 : vector<16x16x32xf32>
    %22 = vector.extract_strided_slice %15 {offsets = [1, 0, 0], sizes = [16, 16, 32], strides = [1, 1, 1]} : vector<18x16x32xf32> to vector<16x16x32xf32>
    %23 = vector.extract_strided_slice %13 {offsets = [3, 0], sizes = [1, 32], strides = [1, 1]} : vector<9x32xf32> to vector<1x32xf32>
    %24 = vector.shape_cast %23 : vector<1x32xf32> to vector<32xf32>
    %25 = vector.shape_cast %24 : vector<32xf32> to vector<1x1x32xf32>
    %26 = vector.broadcast %25 : vector<1x1x32xf32> to vector<16x16x32xf32>
    %27 = arith.mulf %22, %26 : vector<16x16x32xf32>
    %28 = arith.addf %21, %27 : vector<16x16x32xf32>
    %29 = vector.extract_strided_slice %15 {offsets = [2, 0, 0], sizes = [16, 16, 32], strides = [1, 1, 1]} : vector<18x16x32xf32> to vector<16x16x32xf32>
    %30 = vector.extract_strided_slice %13 {offsets = [6, 0], sizes = [1, 32], strides = [1, 1]} : vector<9x32xf32> to vector<1x32xf32>
    %31 = vector.shape_cast %30 : vector<1x32xf32> to vector<32xf32>
    %32 = vector.shape_cast %31 : vector<32xf32> to vector<1x1x32xf32>
    %33 = vector.broadcast %32 : vector<1x1x32xf32> to vector<16x16x32xf32>
    %34 = arith.mulf %29, %33 : vector<16x16x32xf32>
    %35 = arith.addf %28, %34 : vector<16x16x32xf32>
    %c0_16 = arith.constant 0 : index
    %c1 = arith.constant 1 : index
    %c0_17 = arith.constant 0 : index
    %36 = vector.load %arg9[%c0_16, %c1, %c0_17] : memref<18x24x32xbf16, #tpu.memory_space<vmem>>, vector<18x16x32xbf16>
    %37 = arith.extf %36 : vector<18x16x32xbf16> to vector<18x16x32xf32>
    %38 = vector.extract_strided_slice %37 {offsets = [0, 0, 0], sizes = [16, 16, 32], strides = [1, 1, 1]} : vector<18x16x32xf32> to vector<16x16x32xf32>
    %39 = vector.extract_strided_slice %13 {offsets = [1, 0], sizes = [1, 32], strides = [1, 1]} : vector<9x32xf32> to vector<1x32xf32>
    %40 = vector.shape_cast %39 : vector<1x32xf32> to vector<32xf32>
    %41 = vector.shape_cast %40 : vector<32xf32> to vector<1x1x32xf32>
    %42 = vector.broadcast %41 : vector<1x1x32xf32> to vector<16x16x32xf32>
    %43 = arith.mulf %38, %42 : vector<16x16x32xf32>
    %44 = arith.addf %35, %43 : vector<16x16x32xf32>
    %45 = vector.extract_strided_slice %37 {offsets = [1, 0, 0], sizes = [16, 16, 32], strides = [1, 1, 1]} : vector<18x16x32xf32> to vector<16x16x32xf32>
    %46 = vector.extract_strided_slice %13 {offsets = [4, 0], sizes = [1, 32], strides = [1, 1]} : vector<9x32xf32> to vector<1x32xf32>
    %47 = vector.shape_cast %46 : vector<1x32xf32> to vector<32xf32>
    %48 = vector.shape_cast %47 : vector<32xf32> to vector<1x1x32xf32>
    %49 = vector.broadcast %48 : vector<1x1x32xf32> to vector<16x16x32xf32>
    %50 = arith.mulf %45, %49 : vector<16x16x32xf32>
    %51 = arith.addf %44, %50 : vector<16x16x32xf32>
    %52 = vector.extract_strided_slice %37 {offsets = [2, 0, 0], sizes = [16, 16, 32], strides = [1, 1, 1]} : vector<18x16x32xf32> to vector<16x16x32xf32>
    %53 = vector.extract_strided_slice %13 {offsets = [7, 0], sizes = [1, 32], strides = [1, 1]} : vector<9x32xf32> to vector<1x32xf32>
    %54 = vector.shape_cast %53 : vector<1x32xf32> to vector<32xf32>
    %55 = vector.shape_cast %54 : vector<32xf32> to vector<1x1x32xf32>
    %56 = vector.broadcast %55 : vector<1x1x32xf32> to vector<16x16x32xf32>
    %57 = arith.mulf %52, %56 : vector<16x16x32xf32>
    %58 = arith.addf %51, %57 : vector<16x16x32xf32>
    %c0_18 = arith.constant 0 : index
    %c2 = arith.constant 2 : index
    %c0_19 = arith.constant 0 : index
    %59 = vector.load %arg9[%c0_18, %c2, %c0_19] : memref<18x24x32xbf16, #tpu.memory_space<vmem>>, vector<18x16x32xbf16>
    %60 = arith.extf %59 : vector<18x16x32xbf16> to vector<18x16x32xf32>
    %61 = vector.extract_strided_slice %60 {offsets = [0, 0, 0], sizes = [16, 16, 32], strides = [1, 1, 1]} : vector<18x16x32xf32> to vector<16x16x32xf32>
    %62 = vector.extract_strided_slice %13 {offsets = [2, 0], sizes = [1, 32], strides = [1, 1]} : vector<9x32xf32> to vector<1x32xf32>
    %63 = vector.shape_cast %62 : vector<1x32xf32> to vector<32xf32>
    %64 = vector.shape_cast %63 : vector<32xf32> to vector<1x1x32xf32>
    %65 = vector.broadcast %64 : vector<1x1x32xf32> to vector<16x16x32xf32>
    %66 = arith.mulf %61, %65 : vector<16x16x32xf32>
    %67 = arith.addf %58, %66 : vector<16x16x32xf32>
    %68 = vector.extract_strided_slice %60 {offsets = [1, 0, 0], sizes = [16, 16, 32], strides = [1, 1, 1]} : vector<18x16x32xf32> to vector<16x16x32xf32>
    %69 = vector.extract_strided_slice %13 {offsets = [5, 0], sizes = [1, 32], strides = [1, 1]} : vector<9x32xf32> to vector<1x32xf32>
    %70 = vector.shape_cast %69 : vector<1x32xf32> to vector<32xf32>
    %71 = vector.shape_cast %70 : vector<32xf32> to vector<1x1x32xf32>
    %72 = vector.broadcast %71 : vector<1x1x32xf32> to vector<16x16x32xf32>
    %73 = arith.mulf %68, %72 : vector<16x16x32xf32>
    %74 = arith.addf %67, %73 : vector<16x16x32xf32>
    %75 = vector.extract_strided_slice %60 {offsets = [2, 0, 0], sizes = [16, 16, 32], strides = [1, 1, 1]} : vector<18x16x32xf32> to vector<16x16x32xf32>
    %76 = vector.extract_strided_slice %13 {offsets = [8, 0], sizes = [1, 32], strides = [1, 1]} : vector<9x32xf32> to vector<1x32xf32>
    %77 = vector.shape_cast %76 : vector<1x32xf32> to vector<32xf32>
    %78 = vector.shape_cast %77 : vector<32xf32> to vector<1x1x32xf32>
    %79 = vector.broadcast %78 : vector<1x1x32xf32> to vector<16x16x32xf32>
    %80 = arith.mulf %75, %79 : vector<16x16x32xf32>
    %81 = arith.addf %74, %80 : vector<16x16x32xf32>
    %c0_20 = arith.constant 0 : index
    %c0_21 = arith.constant 0 : index
    %82 = vector.load %arg5[%c0_20, %c0_21] : memref<1x32xf32, #tpu.memory_space<vmem>>, vector<1x32xf32>
    %83 = vector.shape_cast %82 : vector<1x32xf32> to vector<1x1x32xf32>
    %84 = vector.broadcast %83 : vector<1x1x32xf32> to vector<16x16x32xf32>
    %85 = arith.addf %81, %84 : vector<16x16x32xf32>
    %cst_22 = arith.constant 0.000000e+00 : f32
    %cst_23 = arith.constant 6.000000e+00 : f32
    %86 = vector.broadcast %cst_22 : f32 to vector<16x16x32xf32>
    %87 = arith.maximumf %86, %85 : vector<16x16x32xf32>
    %88 = vector.broadcast %cst_23 : f32 to vector<16x16x32xf32>
    %89 = arith.minimumf %88, %87 : vector<16x16x32xf32>
    %90 = vector.shape_cast %89 : vector<16x16x32xf32> to vector<256x32xf32>
    %91 = arith.truncf %90 : vector<256x32xf32> to vector<256x32xbf16>
    %c0_24 = arith.constant 0 : index
    %c0_25 = arith.constant 0 : index
    %92 = vector.load %arg6[%c0_24, %c0_25] : memref<32x8xbf16, #tpu.memory_space<vmem>>, vector<32x8xbf16>
    %cst_26 = arith.constant dense<0.000000e+00> : vector<256x8xf32>
    %93 = tpu.matmul %91, %92, %cst_26 {dimension_numbers = #tpu.dot_dimension_numbers<[1], [0], [0], [1], [0, 0, 1, 1], [], []>} : vector<256x32xbf16>, vector<32x8xbf16>, vector<256x8xf32> -> vector<256x8xf32>
    %c0_27 = arith.constant 0 : index
    %c0_28 = arith.constant 0 : index
    %94 = vector.load %arg7[%c0_27, %c0_28] : memref<1x8xf32, #tpu.memory_space<vmem>>, vector<1x8xf32>
    %95 = vector.broadcast %94 : vector<1x8xf32> to vector<256x8xf32>
    %96 = arith.addf %93, %95 : vector<256x8xf32>
    %97 = vector.shape_cast %96 : vector<256x8xf32> to vector<16x16x8xf32>
    %c0_29 = arith.constant 0 : index
    %c0_30 = arith.constant 0 : index
    %c1_31 = arith.constant 1 : index
    %c1_32 = arith.constant 1 : index
    %c0_33 = arith.constant 0 : index
    %98 = vector.load %arg2[%c0_29, %c0_30, %c1_31, %c1_32, %c0_33] : memref<1x1x18x24x9xf32, #tpu.memory_space<vmem>>, vector<1x1x16x16x8xf32>
    %99 = vector.shape_cast %98 : vector<1x1x16x16x8xf32> to vector<16x16x8xf32>
    %100 = arith.addf %97, %99 : vector<16x16x8xf32>
    %c0_34 = arith.constant 0 : index
    %c0_35 = arith.constant 0 : index
    %c0_36 = arith.constant 0 : index
    %c0_37 = arith.constant 0 : index
    %101 = vector.load %arg8[%c0_34, %c0_35, %c0_36, %c0_37] : memref<1x16x16x8xf32, #tpu.memory_space<vmem>>, vector<1x16x16x8xf32>
    %102 = vector.shape_cast %101 : vector<1x16x16x8xf32> to vector<16x16x8xf32>
    %103 = vector.shape_cast %100 : vector<16x16x8xf32> to vector<1x16x16x8xf32>
    tpu.vector_store %arg8[%c0_34, %c0_35, %c0_36, %c0_37], %103 {strides = array<i32>} : memref<1x16x16x8xf32, #tpu.memory_space<vmem>>, vector<1x16x16x8xf32>,
    return
  }
  func.func @transform_0(%arg0: i32, %arg1: i32) -> (i32, i32, i32, i32, i32) {
    %c0_i32 = arith.constant 0 : i32
    %c0_i32_0 = arith.constant 0 : i32
    %c0_i32_1 = arith.constant 0 : i32
    %c0_i32_2 = arith.constant 0 : i32
    return %arg0, %arg1, %c0_i32, %c0_i32_0, %c0_i32_1 : i32, i32, i32, i32, i32
  }
  func.func @transform_1(%arg0: i32, %arg1: i32) -> (i32, i32) {
    %c0_i32 = arith.constant 0 : i32
    %c0_i32_0 = arith.constant 0 : i32
    %c0_i32_1 = arith.constant 0 : i32
    return %c0_i32, %c0_i32_0 : i32, i32
  }
  func.func @transform_2(%arg0: i32, %arg1: i32) -> (i32, i32) {
    %c0_i32 = arith.constant 0 : i32
    %c0_i32_0 = arith.constant 0 : i32
    %c0_i32_1 = arith.constant 0 : i32
    return %c0_i32, %c0_i32_0 : i32, i32
  }
  func.func @transform_3(%arg0: i32, %arg1: i32) -> (i32, i32) {
    %c0_i32 = arith.constant 0 : i32
    %c0_i32_0 = arith.constant 0 : i32
    %c0_i32_1 = arith.constant 0 : i32
    return %c0_i32, %c0_i32_0 : i32, i32
  }
  func.func @transform_4(%arg0: i32, %arg1: i32) -> (i32, i32) {
    %c0_i32 = arith.constant 0 : i32
    %c0_i32_0 = arith.constant 0 : i32
    %c0_i32_1 = arith.constant 0 : i32
    return %c0_i32, %c0_i32_0 : i32, i32
  }
  func.func @transform_5(%arg0: i32, %arg1: i32) -> (i32, i32) {
    %c0_i32 = arith.constant 0 : i32
    %c0_i32_0 = arith.constant 0 : i32
    %c0_i32_1 = arith.constant 0 : i32
    return %c0_i32, %c0_i32_0 : i32, i32
  }
  func.func @transform_6(%arg0: i32, %arg1: i32) -> (i32, i32, i32, i32) {
    %c0_i32 = arith.constant 0 : i32
    %c0_i32_0 = arith.constant 0 : i32
    %c0_i32_1 = arith.constant 0 : i32
    return %arg0, %arg1, %c0_i32, %c0_i32_0 : i32, i32, i32, i32
  }
}

</mosaic_0001>

<bundles_post_ra>
// kernel: tpu_custom_call.1
= control target key start
LH: loop header
LB: loop body
LE: loop exit
PB: predicated region body
PF: predicated region fallthrough
CT: control target
= control target key end

     0   :  { %s3298_s21 = smov 0   ;;  %s3300_s22 = smov 0   ;;  %s4951_s0 = inlined_call_operand.vmem [shape: f32[2,1,18,24,9], index: 0, kind: input, shape index: {}]   ;;  %s4952_s1 = inlined_call_operand.vmem [shape: bf16[9,32], index: 1, kind: input, shape index: {}]   ;;  %s4953_s2 = inlined_call_operand.vmem [shape: f32[9,32], index: 2, kind: input, shape index: {}]   ;;  %s4954_s3 = inlined_call_operand.vmem [shape: f32[1,32], index: 3, kind: input, shape index: {}]   ;;  %s4955_s4 = inlined_call_operand.vmem [shape: bf16[32,8], index: 4, kind: input, shape index: {}]   ;;  %s4956_s5 = inlined_call_operand.vmem [shape: f32[1,8], index: 5, kind: input, shape index: {}]   ;;  %s4957_s6 = inlined_call_operand.vmem [shape: f32[2,16,16,8], index: 6, kind: output, shape index: {}]  }
   0x1   :  { %s3302_s23 = smov 0  }
   0x2 LB: > { %s28_s24 = sadd.s32 1, %s3256_s22  ;;  %p3059_p0 = scmp.ge.s32.totalorder %s3260_s23, 1  ;;  %s3260_s23 = sphi %s3302_s23, %s16_s23   ;;  %s3256_s22 = sphi %s3300_s22, %s4993_s22   ;;  %s3252_s21 = sphi %s3298_s21, %s4992_s21  }
   0x3   : > { %p30_p1 = scmp.ge.s32.totalorder %s28_s24, 2  ;;  %p232_p2 = scmp.lt.s32.totalorder %s3260_s23, 3 }
   0x5   : > { %s4995_s24 = smov (%p30_p1, %s28_s24), 0  ;;  %p233_p3 = pnand %p3059_p0, %p232_p2 }
   0x7   : > { %236 = sbr.rel (%p233_p3) target bundleno = 707 (0x2c3), region = 44 }
   0xc   : > { %v3065_v0 = vld [vmem:[%s4952_s1] sm:$0xf]  ;;  %v3153_v1 = vld [vmem:[%s4952_s1] sm:$0x10]  ;;  %vm462_vm0 = vcmask 1043456   ;;  %vm463_vm1 = vcmask 1044480  }
   0xd   : > { %v3066_v2 = vor.u32 %v3153_v1, %v3065_v0  ;;  %p271_p4 = scmp.lt.s32.totalorder %s3252_s21, 1  ;;  %v3262_v3 = vmov 65535   ;;  %vm380_vm2 = vcmask 72704   ;;  %vm775_vm3 = vcmask 257024  }
   0xe   : > { %v464_v4 = vsel %vm462_vm0, 4294967295, %v3262_v3  ;;  %vm1200_vm4 = vcmask 1046528   ;;  %vm1960_vm5 = vcmask 1045504   ;;  %vm2723_vm6 = vcmask 261120  }
   0xf   : > { %v465_v5 = vsel %vm463_vm1, %v464_v4, 0  ;;  %s4997_s21 = smov (!%p271_p4, %s3252_s21), 1  ;;  %vm2926_vm7 = vcmask 64512  }
  0x10   : > { %v467_v6 = vand.u32 %v3066_v2, %v465_v5  ;;  %s3204_s29 = smul.u32 432, %s4997_s21 }
  0x12   : > { %476 = vmatpush.bf16.msra.mxu0 %v467_v6  ;;  %3200 = vmatpush.bf16.msra.mxu2 %v467_v6  ;;  %s3328_s8 = scalar_lea.vmem %s4951_s0, %s3204_s29  ;;  %s3152_s29 = sshll.u32 %s4997_s21, 8 }
  0x13   : > { %3201 = vmatpush.bf16.msra.mxu3 %v467_v6  ;;  %v292_v7 = vld [vmem:[%s3328_s8] sm:$0xff]  ;;  %v293_v8 = vld [vmem:[%s3328_s8 + $0x8] sm:$0xff]  ;;  %v314_v9 = vld [vmem:[%s3328_s8 + $0xb0] sm:$0xff]  ;;  %s4257_s9 = scalar_lea.vmem %s4957_s6, %s3152_s29 }
  0x14   : > { %v346_v10 = vpack.c.bf16 %v293_v8, %v292_v7  ;;  %v315_v11 = vld [vmem:[%s3328_s8 + $0xb8] sm:$0xff]  ;;  %v294_v13 = vld [vmem:[%s3328_s8 + $0x10] sm:$0xff]  ;;  %v316_v15 = vld [vmem:[%s3328_s8 + $0xc0] sm:$0xff] }
  0x15   : > { %v357_v12 = vpack.c.bf16 %v315_v11, %v314_v9  ;;  %v295_v14 = vld [vmem:[%s3328_s8 + $0x18] sm:$0xff]  ;;  %v317_v16 = vld [vmem:[%s3328_s8 + $0xc8] sm:$0xff]  ;;  %v296_v19 = vld [vmem:[%s3328_s8 + $0x20] sm:$0xff] }
  0x16   : > { %3067 = vmatmul.msk.bf16.vlgmr.msra.gmra.mxu0 %vm380_vm2, %v346_v10  ;;  %v347_v17 = vpack.c.bf16 %v295_v14, %v294_v13  ;;  %v358_v18 = vpack.c.bf16 %v317_v16, %v316_v15  ;;  %v297_v20 = vld [vmem:[%s3328_s8 + $0x28] sm:$0xff]  ;;  %v318_v21 = vld [vmem:[%s3328_s8 + $0xd0] sm:$0xff]  ;;  %v319_v22 = vld [vmem:[%s3328_s8 + $0xd8] sm:$0xff] }
  0x17   : > { %3078 = vmatmul.msk.bf16.vlgmr.msra.gmra.mxu2 %vm380_vm2, %v357_v12  ;;  %v348_v23 = vpack.c.bf16 %v297_v20, %v296_v19  ;;  %v359_v24 = vpack.c.bf16 %v319_v22, %v318_v21  ;;  %v298_v25 = vld [vmem:[%s3328_s8 + $0x30] sm:$0xff]  ;;  %v299_v26 = vld [vmem:[%s3328_s8 + $0x38] sm:$0xff]  ;;  %v320_v27 = vld [vmem:[%s3328_s8 + $0xe0] sm:$0xff] }
  0x18   : > { %v321_v28 = vld [vmem:[%s3328_s8 + $0xe8] sm:$0xff]  ;;  %v349_v29 = vpack.c.bf16 %v299_v26, %v298_v25  ;;  %v300_v31 = vld [vmem:[%s3328_s8 + $0x40] sm:$0xff]  ;;  %v322_v33 = vld [vmem:[%s3328_s8 + $0xf0] sm:$0xff] }
  0x19   : > { %v360_v30 = vpack.c.bf16 %v321_v28, %v320_v27  ;;  %v301_v32 = vld [vmem:[%s3328_s8 + $0x48] sm:$0xff]  ;;  %v323_v34 = vld [vmem:[%s3328_s8 + $0xf8] sm:$0xff]  ;;  %v336_v37 = vld [vmem:[%s3328_s8 + $0x160] sm:$0xff] }
  0x1a   : > { %v350_v35 = vpack.c.bf16 %v301_v32, %v300_v31  ;;  %v361_v36 = vpack.c.bf16 %v323_v34, %v322_v33  ;;  %v337_v38 = vld [vmem:[%s3328_s8 + $0x168] sm:$0xff]  ;;  %v302_v40 = vld [vmem:[%s3328_s8 + $0x50] sm:$0xff]  ;;  %v303_v41 = vld [vmem:[%s3328_s8 + $0x58] sm:$0xff] }
  0x1b   : > { %v368_v39 = vpack.c.bf16 %v337_v38, %v336_v37  ;;  %v324_v42 = vld [vmem:[%s3328_s8 + $0x100] sm:$0xff]  ;;  %v325_v43 = vld [vmem:[%s3328_s8 + $0x108] sm:$0xff]  ;;  %v351_v44 = vpack.c.bf16 %v303_v41, %v302_v40  ;;  %v338_v46 = vld [vmem:[%s3328_s8 + $0x170] sm:$0xff] }
  0x1c   : > { %v362_v45 = vpack.c.bf16 %v325_v43, %v324_v42  ;;  %v339_v47 = vld [vmem:[%s3328_s8 + $0x178] sm:$0xff]  ;;  %v304_v49 = vld [vmem:[%s3328_s8 + $0x60] sm:$0xff]  ;;  %v305_v50 = vld [vmem:[%s3328_s8 + $0x68] sm:$0xff] }
  0x1d   : > { %3089 = vmatmul.msk.bf16.vlgmr.msra.gmra.mxu3 %vm380_vm2, %v368_v39  ;;  %v369_v48 = vpack.c.bf16 %v339_v47, %v338_v46  ;;  %v326_v51 = vld [vmem:[%s3328_s8 + $0x110] sm:$0xff]  ;;  %v327_v52 = vld [vmem:[%s3328_s8 + $0x118] sm:$0xff]  ;;  %v352_v53 = vpack.c.bf16 %v305_v50, %v304_v49  ;;  %v340_v55 = vld [vmem:[%s3328_s8 + $0x180] sm:$0xff] }
  0x1e   : > { %v363_v54 = vpack.c.bf16 %v327_v52, %v326_v51  ;;  %v341_v56 = vld [vmem:[%s3328_s8 + $0x188] sm:$0xff]  ;;  %v306_v58 = vld [vmem:[%s3328_s8 + $0x70] sm:$0xff]  ;;  %v307_v59 = vld [vmem:[%s3328_s8 + $0x78] sm:$0xff] }
  0x1f   : > { %v370_v57 = vpack.c.bf16 %v341_v56, %v340_v55  ;;  %v328_v60 = vld [vmem:[%s3328_s8 + $0x120] sm:$0xff]  ;;  %v329_v61 = vld [vmem:[%s3328_s8 + $0x128] sm:$0xff]  ;;  %v353_v62 = vpack.c.bf16 %v307_v59, %v306_v58  ;;  %v342_v0 = vld [vmem:[%s3328_s8 + $0x190] sm:$0xff] }
  0x20   : > { %v364_v63 = vpack.c.bf16 %v329_v61, %v328_v60  ;;  %v343_v1 = vld [vmem:[%s3328_s8 + $0x198] sm:$0xff]  ;;  %v308_v3 = vld [vmem:[%s3328_s8 + $0x80] sm:$0xff]  ;;  %v309_v4 = vld [vmem:[%s3328_s8 + $0x88] sm:$0xff] }
  0x21   : > { %v371_v2 = vpack.c.bf16 %v343_v1, %v342_v0  ;;  %v330_v5 = vld [vmem:[%s3328_s8 + $0x130] sm:$0xff]  ;;  %v331_v6 = vld [vmem:[%s3328_s8 + $0x138] sm:$0xff]  ;;  %v354_v7 = vpack.c.bf16 %v309_v4, %v308_v3  ;;  %v344_v12 = vld [vmem:[%s3328_s8 + $0x1a0] sm:$0xff] }
  0x22   : > { %v365_v9 = vpack.c.bf16 %v331_v6, %v330_v5  ;;  %v345_v13 = vld [vmem:[%s3328_s8 + $0x1a8] sm:$0xff]  ;;  %v332_v26 = vld [vmem:[%s3328_s8 + $0x140] sm:$0xff]  ;;  %v335_v49 = vld [vmem:[%s3328_s8 + $0x158] sm:$0xff] }
  0x23   : > { %v372_v14 = vpack.c.bf16 %v345_v13, %v344_v12  ;;  %v333_v27 = vld [vmem:[%s3328_s8 + $0x148] sm:$0xff]  ;;  %v830_v4 = vld [vmem:[%s4953_s2] sm:$0xff] }
  0x24   : > { %v366_v32 = vpack.c.bf16 %v333_v27, %v332_v26  ;;  %v313_v46 = vld [vmem:[%s3328_s8 + $0xa8] sm:$0xff]  ;;  %v3436_v27 = vperm.slane %v830_v4, 5 }
  0x26   : > { %3068 = vmatmul.msk.bf16.gmra.mxu0 %vm380_vm2, %v347_v17 }
  0x27   : > { %3079 = vmatmul.msk.bf16.gmra.mxu2 %vm380_vm2, %v358_v18 }
  0x2d   : > { %3090 = vmatmul.msk.bf16.gmra.mxu3 %vm380_vm2, %v369_v48  ;;  %v334_v48 = vld [vmem:[%s3328_s8 + $0x150] sm:$0xff] }
  0x36   : > { %3069 = vmatmul.msk.bf16.gmra.mxu0 %vm380_vm2, %v348_v23  ;;  %v310_v23 = vld [vmem:[%s3328_s8 + $0x90] sm:$0xff] }
  0x37   : > { %3080 = vmatmul.msk.bf16.gmra.mxu2 %vm380_vm2, %v359_v24  ;;  %v311_v24 = vld [vmem:[%s3328_s8 + $0x98] sm:$0xff] }
  0x3d   : > { %3091 = vmatmul.msk.bf16.gmra.mxu3 %vm380_vm2, %v370_v57 }
  0x46   : > { %3070 = vmatmul.msk.bf16.gmra.mxu0 %vm380_vm2, %v349_v29  ;;  %v355_v29 = vpack.c.bf16 %v311_v24, %v310_v23 }
  0x47   : > { %3081 = vmatmul.msk.bf16.gmra.mxu2 %vm380_vm2, %v360_v30 }
  0x4d   : > { %3092 = vmatmul.msk.bf16.gmra.mxu3 %vm380_vm2, %v371_v2 }
  0x56   : > { %3071 = vmatmul.msk.bf16.gmra.mxu0 %vm380_vm2, %v350_v35 }
  0x57   : > { %3082 = vmatmul.msk.bf16.gmra.mxu2 %vm380_vm2, %v361_v36 }
  0x5d   : > { %3093 = vmatmul.msk.bf16.gmra.mxu3 %vm380_vm2, %v372_v14 }
  0x66   : > { %3072 = vmatmul.msk.bf16.gmra.mxu0 %vm380_vm2, %v351_v44 }
  0x67   : > { %3083 = vmatmul.msk.bf16.gmra.mxu2 %vm380_vm2, %v362_v45  ;;  %v312_v45 = vld [vmem:[%s3328_s8 + $0xa0] sm:$0xff] }
  0x68   : > { %v356_v51 = vpack.c.bf16 %v313_v46, %v312_v45 }
  0x76   : > { %3073 = vmatmul.msk.bf16.gmra.mxu0 %vm380_vm2, %v352_v53 }
  0x77   : > { %3084 = vmatmul.msk.bf16.gmra.mxu2 %vm380_vm2, %v363_v54  ;;  %v367_v54 = vpack.c.bf16 %v335_v49, %v334_v48 }
  0x86   : > { %3074 = vmatmul.msk.bf16.gmra.mxu0 %vm380_vm2, %v353_v62 }
  0x87   : > { %3085 = vmatmul.msk.bf16.gmra.mxu2 %vm380_vm2, %v364_v63 }
  0x93   : > { %v478_v8 = vpop.f32.mrf.mxu0 }
  0x94   : > { %v613_v10 = vmax.f32 %v478_v8, 0.0  ;;  %v3423_v8 = vperm.slane %v830_v4, 1 }
  0x96   : > { %v667_v11 = vmin.f32 %v613_v10, 6.0  ;;  %3075 = vmatmul.msk.bf16.gmra.mxu0 %vm380_vm2, %v354_v7 }
  0x97   : > { %3086 = vmatmul.msk.bf16.gmra.mxu2 %vm380_vm2, %v365_v9 }
  0x98   : > { %v721_v15 = vpack.c.bf16 %v667_v11, %v667_v11 }
  0x9a   : > { %776 = vst.msk [vmem:[#allocation2] sm:$0xf] %vm775_vm3, %v721_v15  ;;  %v533_v16 = vpop.f32.mrf.mxu2  ;;  %v3427_v15 = vperm.slane %v830_v4, 2 }
  0x9b   : > { %v635_v17 = vmax.f32 %v533_v16, 0.0  ;;  %v480_v18 = vpop.f32.mrf.mxu0 }
  0x9c   : > { %v614_v19 = vmax.f32 %v480_v18, 0.0  ;;  %v3429_v18 = vperm.slane %v830_v4, 0 }
  0x9d   : > { %v689_v20 = vmin.f32 %v635_v17, 6.0 }
  0x9e   : > { %v668_v21 = vmin.f32 %v614_v19, 6.0 }
  0x9f   : > { %v743_v22 = vpack.c.bf16 %v689_v20, %v689_v20 }
  0xa0   : > { %v722_v25 = vpack.c.bf16 %v668_v21, %v668_v21 }
  0xa1   : > { %798 = vst.msk [vmem:[#allocation2 + $0x58] sm:$0xf] %vm775_vm3, %v743_v22  ;;  %v1827_v9 = vld [vmem:[#allocation2] sm:$0xe] }
  0xa2   : > { %777 = vst.msk [vmem:[#allocation2 + $0x4] sm:$0xf] %vm775_vm3, %v722_v25  ;;  %v535_v28 = vpop.f32.mrf.mxu2  ;;  %v1845_v14 = vunpack.c.l.bf16 %v1827_v9 }
  0xa3   : > { %v636_v30 = vmax.f32 %v535_v28, 0.0  ;;  %v483_v31 = vpop.f32.mrf.mxu0 }
  0xa4   : > { %v615_v33 = vmax.f32 %v483_v31, 0.0 }
  0xa5   : > { %v690_v34 = vmin.f32 %v636_v30, 6.0  ;;  %v1864_v30 = vmul.f32 %v3427_v15, %v1845_v14  ;;  %v3155_v14 = vld [vmem:[%s4955_s4 + $0x8] sm:$0xff] }
  0xa6   : > { %v669_v35 = vmin.f32 %v615_v33, 6.0  ;;  %3076 = vmatmul.msk.bf16.gmra.mxu0 %vm380_vm2, %v355_v29  ;;  %v3438_v29 = vperm.slane %v830_v4, 3  ;;  %2778 = vmatpush.bf16.msra.mxu1 %v3155_v14 }
  0xa7   : > { %v744_v36 = vpack.c.bf16 %v690_v34, %v690_v34  ;;  %3087 = vmatmul.msk.bf16.gmra.mxu2 %vm380_vm2, %v366_v32  ;;  %v3441_v34 = vperm.slane %v830_v4, 6  ;;  %3202 = vmatpush.bf16.msrb.mxu3 %v3155_v14 }
  0xa8   : > { %v723_v37 = vpack.c.bf16 %v669_v35, %v669_v35  ;;  %v847_v31 = vld [vmem:[#allocation2 + $0x58] sm:$0xf] }
  0xa9   : > { %799 = vst.msk [vmem:[#allocation2 + $0x5c] sm:$0xf] %vm775_vm3, %v744_v36  ;;  %v3157_v0 = vld [vmem:[#allocation2] sm:$0xff]   ;;  %v3454_v45 = vunpack.c.l.bf16 %v847_v31 }
  0xaa   : > { %778 = vst.msk [vmem:[#allocation2 + $0x8] sm:$0xf] %vm775_vm3, %v723_v37  ;;  %v538_v38 = vpop.f32.mrf.mxu2  ;;  %v3158_v6 = vunpack.c.l.bf16 %v3157_v0  ;;  %v3159_v7 = vunpack.c.h.bf16 %v3157_v0 }
  0xab   : > { %v637_v39 = vmax.f32 %v538_v38, 0.0  ;;  %v485_v40 = vpop.f32.mrf.mxu0 }
  0xac   : > { %v616_v41 = vmax.f32 %v485_v40, 0.0  ;;  %v1104_v19 = vmul.f32 %v3158_v6, %v3423_v8  ;;  %v1105_v20 = vmul.f32 %v3159_v7, %v3423_v8  ;;  %v1865_v23 = vmul.f32 %v3159_v7, %v3427_v15 }
  0xad   : > { %v691_v42 = vmin.f32 %v637_v39, 6.0 }
  0xae   : > { %v670_v43 = vmin.f32 %v616_v41, 6.0  ;;  %v1201_v35 = vrot.slane %v1104_v19, 1  ;;  %v1202_v36 = vrot.slane %v1105_v20, 1  ;;  %v1962_v39 = vrot.slane %v1865_v23, 2 }
  0xaf   : > { %v745_v44 = vpack.c.bf16 %v691_v42, %v691_v42  ;;  %v3444_v41 = vperm.slane %v830_v4, 4  ;;  %v3446_v42 = vperm.slane %v830_v4, 7 }
  0xb0   : > { %v724_v47 = vpack.c.bf16 %v670_v43, %v670_v43 }
  0xb1   : > { %800 = vst.msk [vmem:[#allocation2 + $0x60] sm:$0xf] %vm775_vm3, %v745_v44  ;;  %v1067_v2 = vld [vmem:[#allocation2 + $0x8] sm:$0x1] }
  0xb2   : > { %779 = vst.msk [vmem:[#allocation2 + $0xc] sm:$0xf] %vm775_vm3, %v724_v47  ;;  %v540_v50 = vpop.f32.mrf.mxu2  ;;  %v1085_v11 = vunpack.c.l.bf16 %v1067_v2 }
  0xb3   : > { %v638_v52 = vmax.f32 %v540_v50, 0.0  ;;  %v488_v53 = vpop.f32.mrf.mxu0  ;;  %v1961_v50 = vrot.slane %v1864_v30, 2 }
  0xb4   : > { %v617_v55 = vmax.f32 %v488_v53, 0.0  ;;  %v1106_v22 = vmul.f32 %v3423_v8, %v1085_v11  ;;  %v1866_v24 = vmul.f32 %v3427_v15, %v1085_v11  ;;  %v905_v53 = vmul.f32 %v3158_v6, %v3429_v18 }
  0xb5   : > { %v692_v56 = vmin.f32 %v638_v52, 6.0 }
  0xb6   : > { %v671_v57 = vmin.f32 %v617_v55, 6.0  ;;  %3077 = vmatmul.msk.bf16.gmra.mxu0 %vm380_vm2, %v356_v51  ;;  %v1204_v38 = vrot.slane %v1106_v22, 1  ;;  %v1964_v40 = vrot.slane %v1866_v24, 2  ;;  %v3462_v55 = vsel %vm1200_vm4, %v1201_v35, %v1202_v36 }
  0xb7   : > { %v746_v58 = vpack.c.bf16 %v692_v56, %v692_v56  ;;  %3088 = vmatmul.msk.bf16.gmra.mxu2 %vm380_vm2, %v367_v54  ;;  %v906_v54 = vmul.f32 %v3159_v7, %v3429_v18 }
  0xb8   : > { %v725_v59 = vpack.c.bf16 %v671_v57, %v671_v57  ;;  %v3465_v57 = vsel %vm1200_vm4, %v1202_v36, %v1204_v38  ;;  %v3507_v36 = vld [vmem:[%s4953_s2 + $0x8] ss:$0 sm:$0xff] }
  0xb9   : > { %801 = vst.msk [vmem:[#allocation2 + $0x64] sm:$0xf] %vm775_vm3, %v746_v58  ;;  %v1828_v13 = vld [vmem:[#allocation2 + $0xc] sm:$0xe]  ;;  %v3468_v58 = vsel %vm1960_vm5, %v1961_v50, %v1962_v39 }
  0xba   : > { %780 = vst.msk [vmem:[#allocation2 + $0x10] sm:$0xf] %vm775_vm3, %v725_v59  ;;  %v543_v60 = vpop.f32.mrf.mxu2  ;;  %v1846_v26 = vunpack.c.l.bf16 %v1828_v13  ;;  %v3471_v59 = vsel %vm1960_vm5, %v1962_v39, %v1964_v40 }
  0xbb   : > { %v639_v61 = vmax.f32 %v543_v60, 0.0  ;;  %v490_v62 = vpop.f32.mrf.mxu0 }
  0xbc   : > { %v618_v63 = vmax.f32 %v490_v62, 0.0  ;;  %v3449_v43 = vmul.f32 %v3436_v27, %v1846_v26  ;;  %v3452_v44 = vmul.f32 %v3427_v15, %v1846_v26 }
  0xbd   : > { %v693_v1 = vmin.f32 %v639_v61, 6.0 }
  0xbe   : > { %v672_v3 = vmin.f32 %v618_v63, 6.0  ;;  %v2202_v62 = vrot.slane %v3449_v43, 2  ;;  %v1966_v63 = vrot.slane %v3452_v44, 2  ;;  %v3154_v43 = vld [vmem:[%s4955_s4] sm:$0xff] }
  0xbf   : > { %v747_v5 = vpack.c.bf16 %v693_v1, %v693_v1  ;;  %2779 = vmatpush.bf16.msra.mxu1 %v3154_v43  ;;  %3203 = vmatpush.bf16.msrb.mxu3 %v3154_v43 }
  0xc0   : > { %v726_v10 = vpack.c.bf16 %v672_v3, %v672_v3  ;;  %v3195_v0 = vld [vmem:[#allocation2 + $0x60] sm:$0xff]  }
  0xc1   : > { %802 = vst.msk [vmem:[#allocation2 + $0x68] sm:$0xf] %vm775_vm3, %v747_v5  ;;  %v834_v33 = vld [vmem:[#allocation2 + $0xc] sm:$0xff]   ;;  %v3479_v5 = vunpack.c.l.bf16 %v3195_v0 }
  0xc2   : > { %781 = vst.msk [vmem:[#allocation2 + $0x14] sm:$0xf] %vm775_vm3, %v726_v10  ;;  %v545_v12 = vpop.f32.mrf.mxu2  ;;  %v870_v47 = vunpack.c.l.bf16 %v834_v33  ;;  %v3457_v48 = vunpack.c.h.bf16 %v834_v33 }
  0xc3   : > { %v640_v16 = vmax.f32 %v545_v12, 0.0  ;;  %v493_v17 = vpop.f32.mrf.mxu0  ;;  %4971 = vst [vmem:[#allocation3_spill] sm:$0xff] %v3479_v5 }
  0xc4   : > { %v619_v21 = vmax.f32 %v493_v17, 0.0  ;;  %v938_v2 = vmul.f32 %v3438_v29, %v870_v47  ;;  %v1346_v3 = vmul.f32 %v3444_v41, %v870_v47  ;;  %v1347_v4 = vmul.f32 %v3444_v41, %v3457_v48 }
  0xc5   : > { %v694_v25 = vmin.f32 %v640_v16, 6.0  ;;  %v939_v7 = vmul.f32 %v3438_v29, %v3457_v48  ;;  %v2107_v9 = vmul.f32 %v3436_v27, %v3457_v48  ;;  %v1107_v11 = vmul.f32 %v3423_v8, %v870_v47 }
  0xc6   : > { %v673_v28 = vmin.f32 %v619_v21, 6.0  ;;  %v1108_v12 = vmul.f32 %v3423_v8, %v3457_v48  ;;  %v1868_v13 = vmul.f32 %v3427_v15, %v3457_v48  ;;  %v3497_v20 = vmul.f32 %v3429_v18, %v870_v47 }
  0xc7   : > { %v748_v32 = vpack.c.bf16 %v694_v25, %v694_v25  ;;  %v3501_v23 = vadd.f32 %v938_v2, %v905_v53  ;;  %v1442_v24 = vrot.slane %v1346_v3, 1  ;;  %v1443_v25 = vrot.slane %v1347_v4, 1 }
  0xc8   : > { %v727_v37 = vpack.c.bf16 %v673_v28, %v673_v28  ;;  %v971_v31 = vadd.f32 %v939_v7, %v906_v54  ;;  %v2203_v33 = vrot.slane %v2107_v9, 2  ;;  %v1207_v38 = vrot.slane %v1108_v12, 1 }
  0xc9   : > { %803 = vst.msk [vmem:[#allocation2 + $0x6c] sm:$0xf] %vm775_vm3, %v748_v32  ;;  %v1068_v49 = vld [vmem:[#allocation2 + $0x14] sm:$0x1]  ;;  %v1967_v39 = vrot.slane %v1868_v13, 2  ;;  %v3515_v54 = vunpack.c.h.bf16 %v3195_v0 }
  0xca   : > { %782 = vst.msk [vmem:[#allocation2 + $0x18] sm:$0xf] %vm775_vm3, %v727_v37  ;;  %v548_v46 = vpop.f32.mrf.mxu2  ;;  %v1086_v61 = vunpack.c.l.bf16 %v1068_v49  ;;  %v1206_v37 = vrot.slane %v1107_v11, 1  ;;  %v3522_v3 = vsel %vm1960_vm5, %v2202_v62, %v2203_v33 }
  0xcb   : > { %v641_v51 = vmax.f32 %v548_v46, 0.0  ;;  %v495_v52 = vpop.f32.mrf.mxu0  ;;  %4972 = vst [vmem:[#allocation4_spill] sm:$0xff] %v3515_v54 }
  0xcc   : > { %v620_v56 = vmax.f32 %v495_v52, 0.0  ;;  %v1348_v16 = vmul.f32 %v3444_v41, %v1086_v61  ;;  %v2108_v19 = vmul.f32 %v3436_v27, %v1086_v61  ;;  %v1109_v21 = vmul.f32 %v3423_v8, %v1086_v61 }
  0xcd   : > { %v695_v60 = vmin.f32 %v641_v51, 6.0  ;;  %v1869_v26 = vmul.f32 %v3427_v15, %v1086_v61  ;;  %v1444_v51 = vsel %vm1200_vm4, %v1442_v24, %v1443_v25  ;;  %v908_v52 = vmul.f32 %v3429_v18, %v3457_v48 }
  0xce   : > { %v674_v1 = vmin.f32 %v620_v56, 6.0  ;;  %v1445_v44 = vrot.slane %v1348_v16, 1  ;;  %v2205_v46 = vrot.slane %v2108_v19, 2  ;;  %v1209_v47 = vrot.slane %v1109_v21, 1 }
  0xcf   : > { %v749_v6 = vpack.c.bf16 %v695_v60, %v695_v60  ;;  %v1969_v53 = vrot.slane %v1869_v26, 2  ;;  %v3525_v4 = vsel %vm1200_vm4, %v1206_v37, %v1207_v38  ;;  %v3528_v48 = vsel %vm1960_vm5, %v1966_v63, %v1967_v39 }
  0xd0   : > { %v728_v10 = vpack.c.bf16 %v674_v1, %v674_v1  ;;  %v850_v49 = vld [vmem:[#allocation2 + $0x6c] sm:$0xf]  ;;  %v1446_v7 = vsel %vm1200_vm4, %v1443_v25, %v1445_v44  ;;  %v3535_v9 = vsel %vm1960_vm5, %v2203_v33, %v2205_v46 }
  0xd1   : > { %804 = vst.msk [vmem:[#allocation2 + $0x70] sm:$0xf] %vm775_vm3, %v749_v6  ;;  %v1829_v17 = vld [vmem:[#allocation2 + $0x18] sm:$0xe]  ;;  %v3530_v0 = vunpack.c.l.bf16 %v850_v49  ;;  %v3546_v12 = vsel %vm1960_vm5, %v1967_v39, %v1969_v53 }
  0xd2   : > { %783 = vst.msk [vmem:[#allocation2 + $0x1c] sm:$0xf] %vm775_vm3, %v728_v10  ;;  %v550_v22 = vpop.f32.mrf.mxu2  ;;  %v1847_v32 = vunpack.c.l.bf16 %v1829_v17  ;;  %v3538_v10 = vsel %vm1200_vm4, %v1207_v38, %v1209_v47 }
  0xd3   : > { %v642_v28 = vmax.f32 %v550_v22, 0.0  ;;  %v498_v30 = vpop.f32.mrf.mxu0  ;;  %4973 = vst [vmem:[#allocation5_spill] sm:$0xff] %v3530_v0 }
  0xd4   : > { %v621_v35 = vmax.f32 %v498_v30, 0.0  ;;  %v2347_v60 = vmul.f32 %v3507_v36, %v1847_v32  ;;  %v3519_v61 = vmul.f32 %v3436_v27, %v1847_v32  ;;  %v3549_v13 = vmul.f32 %v3427_v15, %v1847_v32 }
  0xd5   : > { %v696_v40 = vmin.f32 %v642_v28, 6.0 }
  0xd6   : > { %v675_v50 = vmin.f32 %v621_v35, 6.0  ;;  %v2443_v19 = vrot.slane %v2347_v60, 2  ;;  %v2207_v21 = vrot.slane %v3519_v61, 2 }
  0xd7   : > { %v750_v56 = vpack.c.bf16 %v696_v40, %v696_v40  ;;  %v3567_v40 = vpop.f32.mrf.mxu3 }
  0xd8   : > { %v851_v1 = vld [vmem:[#allocation2 + $0x70] sm:$0xf]  ;;  %v729_v2 = vpack.c.bf16 %v675_v50, %v675_v50 }
  0xd9   : > { %v3192_v6 = vld [vmem:[#allocation2 + $0x18] sm:$0xff]   ;;  %805 = vst.msk [vmem:[#allocation2 + $0x74] sm:$0xf] %vm775_vm3, %v750_v56  ;;  %v3551_v14 = vunpack.c.l.bf16 %v851_v1 }
  0xda   : > { %v3540_v62 = vunpack.c.l.bf16 %v3192_v6  ;;  %v3542_v11 = vunpack.c.h.bf16 %v3192_v6  ;;  %784 = vst.msk [vmem:[#allocation2 + $0x20] sm:$0xf] %vm775_vm3, %v729_v2  ;;  %v553_v63 = vpop.f32.mrf.mxu2 }
  0xdb   : > { %4974 = vst [vmem:[#allocation6_spill] sm:$0xff] %v3551_v14  ;;  %v643_v16 = vmax.f32 %v553_v63, 0.0  ;;  %v500_v17 = vpop.f32.mrf.mxu0 }
  0xdc   : > { %v622_v22 = vmax.f32 %v500_v17, 0.0  ;;  %v1003_v24 = vmul.f32 %v3540_v62, %v3441_v34  ;;  %v1004_v25 = vmul.f32 %v3542_v11, %v3441_v34  ;;  %v1587_v26 = vmul.f32 %v3540_v62, %v3446_v42 }
  0xdd   : > { %v697_v28 = vmin.f32 %v643_v16, 6.0  ;;  %v1588_v30 = vmul.f32 %v3542_v11, %v3446_v42  ;;  %v2348_v32 = vmul.f32 %v3507_v36, %v3542_v11  ;;  %v940_v33 = vmul.f32 %v3540_v62, %v3438_v29 }
  0xde   : > { %v676_v35 = vmin.f32 %v622_v22, 6.0  ;;  %v1035_v37 = vadd.f32 %v1003_v24, %v3501_v23  ;;  %v1036_v38 = vadd.f32 %v1004_v25, %v971_v31  ;;  %v1683_v39 = vrot.slane %v1587_v26, 1 }
  0xdf   : > { %v751_v43 = vpack.c.bf16 %v697_v28, %v697_v28  ;;  %v1684_v44 = vrot.slane %v1588_v30, 1  ;;  %v2444_v46 = vrot.slane %v2348_v32, 2  ;;  %v941_v47 = vmul.f32 %v3542_v11, %v3438_v29 }
  0xe0   : > { %v730_v49 = vpack.c.bf16 %v676_v35, %v676_v35  ;;  %v1313_v50 = vadd.f32 %v3462_v55, %v1035_v37  ;;  %v1314_v53 = vadd.f32 %v3465_v57, %v1036_v38  ;;  %v3574_v56 = vadd.f32 %v940_v33, %v3497_v20 }
  0xe1   : > { %806 = vst.msk [vmem:[#allocation2 + $0x78] sm:$0xf] %vm775_vm3, %v751_v43  ;;  %v1069_v23 = vld [vmem:[#allocation2 + $0x20] sm:$0x1]  ;;  %v1685_v31 = vsel %vm1200_vm4, %v1683_v39, %v1684_v44  ;;  %v2445_v60 = vsel %vm1960_vm5, %v2443_v19, %v2444_v46  ;;  %v3579_v1 = vadd.f32 %v941_v47, %v908_v52  ;;  %v1349_v2 = vmul.f32 %v3540_v62, %v3444_v41 }
  0xe2   : > { %785 = vst.msk [vmem:[#allocation2 + $0x24] sm:$0xf] %vm775_vm3, %v730_v49  ;;  %v555_v55 = vpop.f32.mrf.mxu2  ;;  %v3584_v6 = vunpack.c.l.bf16 %v1069_v23  ;;  %v1554_v57 = vadd.f32 %v1444_v51, %v1313_v50  ;;  %v1555_v20 = vadd.f32 %v1446_v7, %v1314_v53  ;;  %v1350_v63 = vmul.f32 %v3542_v11, %v3444_v41 }
  0xe3   : > { %v644_v16 = vmax.f32 %v555_v55, 0.0  ;;  %v503_v17 = vpop.f32.mrf.mxu0  ;;  %v1447_v22 = vrot.slane %v1349_v2, 1  ;;  %v2110_v52 = vmul.f32 %v3542_v11, %v3436_v27  ;;  %v3592_v19 = vmul.f32 %v3540_v62, %v3429_v18  ;;  %v3610_v2 = vld [vmem:[%s4954_s3] ss:$0 sm:$0xff]  ;;  %v590_v55 = vpop.f32.mrf.mxu3 }
  0xe4   : > { %v623_v24 = vmax.f32 %v503_v17, 0.0  ;;  %v1589_v25 = vmul.f32 %v3446_v42, %v3584_v6  ;;  %v1795_v26 = vadd.f32 %v1685_v31, %v1554_v57  ;;  %v2349_v51 = vmul.f32 %v3507_v36, %v3584_v6 }
  0xe5   : > { %v698_v7 = vmin.f32 %v644_v16, 6.0  ;;  %v1351_v28 = vmul.f32 %v3444_v41, %v3584_v6  ;;  %v1448_v30 = vrot.slane %v1350_v63, 1  ;;  %v2111_v32 = vmul.f32 %v3436_v27, %v3584_v6 }
  0xe6   : > { %v677_v33 = vmin.f32 %v623_v24, 6.0  ;;  %v1686_v35 = vrot.slane %v1589_v25, 1  ;;  %v2073_v37 = vadd.f32 %v3468_v58, %v1795_v26  ;;  %v2446_v38 = vrot.slane %v2349_v51, 2 }
  0xe7   : > { %v752_v39 = vpack.c.bf16 %v698_v7, %v698_v7  ;;  %v1449_v43 = vsel %vm1200_vm4, %v1447_v22, %v1448_v30  ;;  %v1450_v47 = vrot.slane %v1351_v28, 1  ;;  %v2208_v49 = vrot.slane %v2110_v52, 2 }
  0xe8   : > { %v731_v50 = vpack.c.bf16 %v677_v33, %v677_v33  ;;  %v1687_v53 = vsel %vm1200_vm4, %v1684_v44, %v1686_v35  ;;  %v2314_v23 = vadd.f32 %v3522_v3, %v2073_v37  ;;  %v2447_v31 = vsel %vm1960_vm5, %v2444_v46, %v2446_v38 }
  0xe9   : > { %v838_v58 = vld [vmem:[#allocation2 + $0x24] sm:$0xf]  ;;  %807 = vst.msk [vmem:[#allocation2 + $0x7c] sm:$0xf] %vm775_vm3, %v752_v39  ;;  %v1796_v57 = vadd.f32 %v1687_v53, %v1555_v20  ;;  %v3614_v63 = vsel %vm1200_vm4, %v1448_v30, %v1450_v47  ;;  %v3619_v3 = vsel %vm1960_vm5, %v2207_v21, %v2208_v49  ;;  %v3623_v44 = vmul.f32 %v3542_v11, %v3429_v18 }
  0xea   : > { %v1830_v16 = vld [vmem:[#allocation2 + $0x24] sm:$0xe]  ;;  %v3625_v46 = vunpack.c.l.bf16 %v838_v58  ;;  %786 = vst.msk [vmem:[#allocation2 + $0x28] sm:$0xf] %vm775_vm3, %v731_v50  ;;  %v558_v17 = vpop.f32.mrf.mxu2  ;;  %v2555_v22 = vadd.f32 %v2445_v60, %v2314_v23  ;;  %v657_v20 = vmax.f32 %v3567_v40, 0.0  ;;  %v2210_v21 = vrot.slane %v2111_v32, 2 }
  0xeb   : > { %v3629_v52 = vunpack.c.l.bf16 %v1830_v16  ;;  %v645_v24 = vmax.f32 %v558_v17, 0.0  ;;  %v505_v25 = vpop.f32.mrf.mxu0  ;;  %v2074_v61 = vadd.f32 %v3471_v59, %v1796_v57  ;;  %v3634_v26 = vmul.f32 %v3540_v62, %v3423_v8 }
  0xec   : > { %v624_v51 = vmax.f32 %v505_v25, 0.0  ;;  %v2591_v7 = vadd.f32 %v3610_v2, %v2555_v22  ;;  %v711_v28 = vmin.f32 %v657_v20, 6.0  ;;  %v1005_v60 = vmul.f32 %v3441_v34, %v3625_v46 }
  0xed   : > { %v699_v30 = vmin.f32 %v645_v24, 6.0  ;;  %v2315_v40 = vadd.f32 %v3535_v9, %v2074_v61  ;;  %v1590_v33 = vmul.f32 %v3446_v42, %v3625_v46  ;;  %v3643_v59 = vsel %vm1960_vm5, %v2208_v49, %v2210_v21  ;;  %v593_v24 = vpop.f32.mrf.mxu3 }
  0xee   : > { %v678_v32 = vmin.f32 %v624_v51, 6.0  ;;  %v2623_v35 = vmax.f32 %v2591_v7, 0.0  ;;  %v765_v62 = vpack.c.bf16 %v711_v28, %v711_v28  ;;  %v1037_v37 = vadd.f32 %v1005_v60, %v3574_v56 }
  0xef   : > { %v753_v38 = vpack.c.bf16 %v699_v30, %v699_v30  ;;  %v2556_v39 = vadd.f32 %v2447_v31, %v2315_v40  ;;  %v1688_v47 = vrot.slane %v1590_v33, 1  ;;  %v2350_v50 = vmul.f32 %v3507_v36, %v3629_v52 }
  0xf0   : > { %v3196_v53 = vld [vmem:[#allocation2 + $0x78] sm:$0xff]   ;;  %v732_v9 = vpack.c.bf16 %v678_v32, %v678_v32  ;;  %v2655_v23 = vmin.f32 %v2623_v35, 6.0  ;;  %820 = vst.msk [vmem:[#allocation2 + $0xb0] sm:$0xf] %vm775_vm3, %v765_v62  ;;  %v1315_v49 = vadd.f32 %v3525_v4, %v1037_v37  ;;  %v942_v58 = vmul.f32 %v3438_v29, %v3625_v46 }
  0xf1   : > { %v3652_v57 = vunpack.c.l.bf16 %v3196_v53  ;;  %v3654_v16 = vunpack.c.h.bf16 %v3196_v53  ;;  %v839_v56 = vld [vmem:[#allocation2 + $0x28] sm:$0xf]  ;;  %808 = vst.msk [vmem:[#allocation2 + $0x80] sm:$0xf] %vm775_vm3, %v753_v38  ;;  %v2592_v31 = vadd.f32 %v3610_v2, %v2556_v39  ;;  %v658_v17 = vmax.f32 %v590_v55, 0.0 }
  0xf2   : > { %v3658_v22 = vunpack.c.l.bf16 %v839_v56  ;;  %787 = vst.msk [vmem:[#allocation2 + $0x2c] sm:$0xf] %vm775_vm3, %v732_v9  ;;  %v560_v20 = vpop.f32.mrf.mxu2  ;;  %v1556_v4 = vadd.f32 %v1449_v43, %v1315_v49  ;;  %v2448_v25 = vrot.slane %v2350_v50, 2  ;;  %v3662_v61 = vadd.f32 %v942_v58, %v3592_v19 }
  0xf3   : > { %4975 = vst [vmem:[#allocation7_spill] sm:$0xff] %v3652_v57  ;;  %v646_v21 = vmax.f32 %v560_v20, 0.0  ;;  %v508_v51 = vpop.f32.mrf.mxu0  ;;  %v2624_v7 = vmax.f32 %v2592_v31, 0.0  ;;  %v712_v28 = vmin.f32 %v658_v17, 6.0  ;;  %v1111_v60 = vmul.f32 %v3542_v11, %v3423_v8 }
  0xf4   : > { %4976 = vst [vmem:[#allocation8_spill] sm:$0xff] %v3654_v16  ;;  %v625_v30 = vmax.f32 %v508_v51, 0.0  ;;  %v1006_v55 = vmul.f32 %v3441_v34, %v3658_v22  ;;  %v1591_v40 = vmul.f32 %v3446_v42, %v3658_v22  ;;  %v2351_v43 = vmul.f32 %v3507_v36, %v3658_v22 }
  0xf5   : > { %v700_v33 = vmin.f32 %v646_v21, 6.0  ;;  %v2656_v19 = vmin.f32 %v2624_v7, 6.0  ;;  %v766_v32 = vpack.c.bf16 %v712_v28, %v712_v28  ;;  %v943_v35 = vmul.f32 %v3438_v29, %v3658_v22 }
  0xf6   : > { %v679_v62 = vmin.f32 %v625_v30, 6.0  ;;  %v1038_v37 = vadd.f32 %v1006_v55, %v3579_v1  ;;  %v1689_v38 = vrot.slane %v1591_v40, 1  ;;  %v2449_v39 = vrot.slane %v2351_v43, 2 }
  0xf7   : > { %v754_v50 = vpack.c.bf16 %v700_v33, %v700_v33  ;;  %v2687_v53 = vpack.c.bf16 %v2656_v19, %v2655_v23  ;;  %821 = vst.msk [vmem:[#allocation2 + $0xb4] sm:$0xf] %vm775_vm3, %v766_v32  ;;  %v3677_v9 = vadd.f32 %v943_v35, %v3623_v44  ;;  %v1112_v49 = vmul.f32 %v3423_v8, %v3584_v6 }
  0xf8   : > { %v733_v58 = vpack.c.bf16 %v679_v62, %v679_v62  ;;  %v1316_v56 = vadd.f32 %v3538_v10, %v1038_v37  ;;  %v1690_v31 = vsel %vm1200_vm4, %v1688_v47, %v1689_v38  ;;  %v2450_v17 = vsel %vm1960_vm5, %v2448_v25, %v2449_v39 }
  0xf9   : > { %809 = vst.msk [vmem:[#allocation2 + $0x84] sm:$0xf] %vm775_vm3, %v754_v50  ;;  %3102 = vmatmul.msk.bf16.vlgmr.msra.gmra.mxu1 %vm2723_vm6, %v2687_v53  ;;  %v1070_v1 = vld [vmem:[#allocation2 + $0x2c] sm:$0x1]  ;;  %v1797_v23 = vadd.f32 %v1690_v31, %v1556_v4  ;;  %v1211_v20 = vrot.slane %v3634_v26, 1  ;;  %v1212_v44 = vrot.slane %v1111_v60, 1  ;;  %v1352_v21 = vmul.f32 %v3444_v41, %v3625_v46 }
  0xfa   : > { %788 = vst.msk [vmem:[#allocation2 + $0x30] sm:$0xf] %vm775_vm3, %v733_v58  ;;  %v563_v51 = vpop.f32.mrf.mxu2  ;;  %v659_v10 = vmax.f32 %v593_v24, 0.0  ;;  %v3690_v7 = vunpack.c.l.bf16 %v1070_v1  ;;  %v1557_v47 = vadd.f32 %v3614_v63, %v1316_v56  ;;  %v1214_v25 = vrot.slane %v1112_v49, 1  ;;  %v595_v63 = vpop.f32.mrf.mxu3 }
  0xfb   : > { %v647_v28 = vmax.f32 %v563_v51, 0.0  ;;  %v510_v30 = vpop.f32.mrf.mxu0  ;;  %v2075_v55 = vadd.f32 %v3528_v48, %v1797_v23  ;;  %v3695_v4 = vsel %vm1200_vm4, %v1211_v20, %v1212_v44  ;;  %v1353_v26 = vmul.f32 %v3444_v41, %v3658_v22 }
  0xfc   : > { %v626_v60 = vmax.f32 %v510_v30, 0.0  ;;  %v713_v40 = vmin.f32 %v659_v10, 6.0  ;;  %v1592_v24 = vmul.f32 %v3446_v42, %v3690_v7  ;;  %v2352_v43 = vmul.f32 %v3507_v36, %v3690_v7 }
  0xfd   : > { %v701_v33 = vmin.f32 %v647_v28, 6.0  ;;  %v2316_v19 = vadd.f32 %v3619_v3, %v2075_v55  ;;  %v3705_v48 = vsel %vm1200_vm4, %v1212_v44, %v1214_v25  ;;  %v1354_v32 = vmul.f32 %v3444_v41, %v3690_v7 }
  0xfe   : > { %v680_v35 = vmin.f32 %v626_v60, 6.0  ;;  %v862_v62 = vld [vmem:[#allocation2 + $0xb4] sm:$0xf]  ;;  %v767_v37 = vpack.c.bf16 %v713_v40, %v713_v40  ;;  %v1691_v50 = vrot.slane %v1592_v24, 1  ;;  %v2451_v53 = vrot.slane %v2352_v43, 2 }
  0xff   : > { %v755_v49 = vpack.c.bf16 %v701_v33, %v701_v33  ;;  %v3709_v58 = vunpack.c.l.bf16 %v862_v62  ;;  %v2557_v56 = vadd.f32 %v2450_v17, %v2316_v19  ;;  %v1452_v31 = vrot.slane %v1352_v21, 1 }
 0x100   : > { %v854_v1 = vld [vmem:[#allocation2 + $0x84] sm:$0xf]  ;;  %v734_v23 = vpack.c.bf16 %v680_v35, %v680_v35  ;;  %822 = vst.msk [vmem:[#allocation2 + $0xb8] sm:$0xf] %vm775_vm3, %v767_v37  ;;  %v1692_v3 = vsel %vm1200_vm4, %v1689_v38, %v1691_v50  ;;  %v2452_v20 = vsel %vm1960_vm5, %v2449_v39, %v2451_v53  ;;  %v1453_v44 = vrot.slane %v1353_v26, 1 }
 0x101   : > { %4977 = vst [vmem:[#allocation9_spill] sm:$0xff] %v3709_v58  ;;  %v3714_v51 = vunpack.c.l.bf16 %v854_v1  ;;  %v1798_v10 = vadd.f32 %v1692_v3, %v1557_v47  ;;  %v2593_v25 = vadd.f32 %v3610_v2, %v2557_v56  ;;  %v1455_v28 = vrot.slane %v1354_v32, 1  ;;  %v1831_v30 = vld [vmem:[#allocation2 + $0x30] sm:$0xe] }
 0x102   : > { %810 = vst.msk [vmem:[#allocation2 + $0x88] sm:$0xf] %vm775_vm3, %v755_v49  ;;  %v565_v17 = vpop.f32.mrf.mxu2  ;;  %v660_v21 = vmax.f32 %v595_v63, 0.0  ;;  %v3720_v55 = vsel %vm1200_vm4, %v1452_v31, %v1453_v44  ;;  %v3722_v38 = vunpack.c.l.bf16 %v1831_v30  ;;  %v1871_v39 = vmul.f32 %v3542_v11, %v3427_v15  ;;  %v598_v53 = vpop.f32.mrf.mxu3 }
 0x103   : > { %4978 = vst [vmem:[#allocation10_spill] sm:$0xff] %v3714_v51  ;;  %v648_v26 = vmax.f32 %v565_v17, 0.0  ;;  %v513_v60 = vpop.f32.mrf.mxu0  ;;  %v2076_v47 = vadd.f32 %v3546_v12, %v1798_v10  ;;  %v2625_v40 = vmax.f32 %v2593_v25, 0.0  ;;  %v3728_v24 = vsel %vm1200_vm4, %v1453_v44, %v1455_v28 }
 0x104   : > { %789 = vst.msk [vmem:[#allocation2 + $0x34] sm:$0xf] %vm775_vm3, %v734_v23  ;;  %v627_v43 = vmax.f32 %v513_v60, 0.0  ;;  %v714_v33 = vmin.f32 %v660_v21, 6.0  ;;  %v1872_v63 = vmul.f32 %v3427_v15, %v3584_v6  ;;  %v1971_v19 = vrot.slane %v3549_v13, 2 }
 0x105   : > { %v702_v32 = vmin.f32 %v648_v26, 6.0  ;;  %v2317_v35 = vadd.f32 %v3643_v59, %v2076_v47  ;;  %v2657_v62 = vmin.f32 %v2625_v40, 6.0  ;;  %v1972_v11 = vrot.slane %v1871_v39, 2 }
 0x106   : > { %v681_v37 = vmin.f32 %v627_v43, 6.0  ;;  %v768_v50 = vpack.c.bf16 %v714_v33, %v714_v33  ;;  %v1974_v12 = vrot.slane %v1872_v63, 2  ;;  %v2112_v49 = vmul.f32 %v3436_v27, %v3629_v52 }
 0x107   : > { %v756_v56 = vpack.c.bf16 %v702_v32, %v702_v32  ;;  %v863_v31 = vld [vmem:[#allocation2 + $0xb8] sm:$0xf]  ;;  %v2558_v1 = vadd.f32 %v2452_v20, %v2317_v35  ;;  %v3737_v23 = vsel %vm1960_vm5, %v1971_v19, %v1972_v11  ;;  %v2113_v13 = vmul.f32 %v3436_v27, %v3658_v22 }
 0x108   : > { %v735_v59 = vpack.c.bf16 %v681_v37, %v681_v37  ;;  %v3741_v3 = vunpack.c.l.bf16 %v863_v31  ;;  %823 = vst.msk [vmem:[#allocation2 + $0xbc] sm:$0xf] %vm775_vm3, %v768_v50  ;;  %v3745_v44 = vsel %vm1960_vm5, %v1972_v11, %v1974_v12  ;;  %v2212_v10 = vrot.slane %v2112_v49, 2 }
 0x109   : > { %v855_v6 = vld [vmem:[#allocation2 + $0x88] sm:$0xf]  ;;  %811 = vst.msk [vmem:[#allocation2 + $0x8c] sm:$0xf] %vm775_vm3, %v756_v56  ;;  %v2594_v20 = vadd.f32 %v3610_v2, %v2558_v1  ;;  %v661_v30 = vmax.f32 %v598_v53, 0.0  ;;  %v2213_v17 = vrot.slane %v2113_v13, 2  ;;  %v2114_v60 = vmul.f32 %v3436_v27, %v3690_v7 }
 0x10a   : > { %4979 = vst [vmem:[#allocation11_spill] sm:$0xff] %v3741_v3  ;;  %v3747_v25 = vunpack.c.l.bf16 %v855_v6  ;;  %v568_v26 = vpop.f32.mrf.mxu2  ;;  %v3760_v47 = vmul.f32 %v3429_v18, %v3625_v46 }
 0x10b   : > { %v3193_v28 = vld [vmem:[#allocation2 + $0x30] sm:$0xff]   ;;  %790 = vst.msk [vmem:[#allocation2 + $0x38] sm:$0xf] %vm775_vm3, %v735_v59  ;;  %v649_v40 = vmax.f32 %v568_v26, 0.0  ;;  %v515_v43 = vpop.f32.mrf.mxu0  ;;  %v2626_v33 = vmax.f32 %v2594_v20, 0.0  ;;  %v715_v63 = vmin.f32 %v661_v30, 6.0  ;;  %v3763_v19 = vsel %vm1960_vm5, %v2212_v10, %v2213_v17  ;;  %v600_v26 = vpop.f32.mrf.mxu3 }
 0x10c   : > { %4980 = vst [vmem:[#allocation12_spill] sm:$0xff] %v3747_v25  ;;  %v3751_v21 = vunpack.c.l.bf16 %v3193_v28  ;;  %v3753_v39 = vunpack.c.h.bf16 %v3193_v28  ;;  %v628_v32 = vmax.f32 %v515_v43, 0.0  ;;  %v2215_v28 = vrot.slane %v2114_v60, 2 }
 0x10d   : > { %v703_v50 = vmin.f32 %v649_v40, 6.0  ;;  %v2658_v53 = vmin.f32 %v2626_v33, 6.0  ;;  %v769_v12 = vpack.c.bf16 %v715_v63, %v715_v63  ;;  %v3780_v33 = vmul.f32 %v3429_v18, %v3658_v22 }
 0x10e   : > { %v1007_v35 = vmul.f32 %v3751_v21, %v3441_v34  ;;  %v1008_v11 = vmul.f32 %v3753_v39, %v3441_v34  ;;  %v1593_v37 = vmul.f32 %v3751_v21, %v3446_v42  ;;  %v1594_v49 = vmul.f32 %v3753_v39, %v3446_v42 }
 0x10f   : > { %v682_v56 = vmin.f32 %v628_v32, 6.0  ;;  %v757_v6 = vpack.c.bf16 %v703_v50, %v703_v50  ;;  %v2688_v59 = vpack.c.bf16 %v2658_v53, %v2657_v62  ;;  %824 = vst.msk [vmem:[#allocation2 + $0xc0] sm:$0xf] %vm775_vm3, %v769_v12  ;;  %v2216_v63 = vsel %vm1960_vm5, %v2213_v17, %v2215_v28 }
 0x110   : > { %v1039_v31 = vadd.f32 %v1007_v35, %v3662_v61  ;;  %v1040_v1 = vadd.f32 %v1008_v11, %v3677_v9  ;;  %v1693_v13 = vrot.slane %v1593_v37, 1  ;;  %v1694_v10 = vrot.slane %v1594_v49, 1  ;;  %v1078_v20 = vld [vmem:[#allocation2 + $0x8c] sm:$0x1] }
 0x111   : > { %v736_v30 = vpack.c.bf16 %v682_v56, %v682_v56  ;;  %v3782_v61 = vunpack.c.l.bf16 %v1078_v20  ;;  %812 = vst.msk [vmem:[#allocation2 + $0x90] sm:$0xf] %vm775_vm3, %v757_v6  ;;  %3103 = vmatmul.msk.bf16.gmra.mxu1 %vm2723_vm6, %v2688_v59  ;;  %v662_v9 = vmax.f32 %v600_v26, 0.0  ;;  %v2353_v11 = vmul.f32 %v3507_v36, %v3722_v38 }
 0x112   : > { %v1317_v40 = vadd.f32 %v3695_v4, %v1039_v31  ;;  %v1318_v43 = vadd.f32 %v3705_v48, %v1040_v1  ;;  %v1071_v62 = vld [vmem:[#allocation2 + $0x38] sm:$0x1]  ;;  %v1695_v60 = vsel %vm1200_vm4, %v1693_v13, %v1694_v10  ;;  %v570_v4 = vpop.f32.mrf.mxu2  ;;  %v1113_v12 = vmul.f32 %v3423_v8, %v3625_v46 }
 0x113   : > { %791 = vst.msk [vmem:[#allocation2 + $0x3c] sm:$0xf] %vm775_vm3, %v736_v30  ;;  %v3789_v48 = vunpack.c.l.bf16 %v1071_v62  ;;  %v650_v37 = vmax.f32 %v570_v4, 0.0  ;;  %v518_v50 = vpop.f32.mrf.mxu0  ;;  %v716_v53 = vmin.f32 %v662_v9, 6.0  ;;  %v1114_v17 = vmul.f32 %v3423_v8, %v3658_v22 }
 0x114   : > { %v1558_v32 = vadd.f32 %v3720_v55, %v1317_v40  ;;  %v1559_v35 = vadd.f32 %v3728_v24, %v1318_v43  ;;  %v629_v49 = vmax.f32 %v518_v50, 0.0  ;;  %v2453_v55 = vrot.slane %v2353_v11, 2  ;;  %v603_v50 = vpop.f32.mrf.mxu3 }
 0x115   : > { %v1595_v56 = vmul.f32 %v3446_v42, %v3789_v48  ;;  %v704_v1 = vmin.f32 %v650_v37, 6.0  ;;  %v770_v24 = vpack.c.bf16 %v716_v53, %v716_v53  ;;  %v1115_v13 = vmul.f32 %v3423_v8, %v3690_v7 }
 0x116   : > { %v1799_v31 = vadd.f32 %v1695_v60, %v1558_v32  ;;  %v1216_v6 = vrot.slane %v1113_v12, 1  ;;  %v683_v59 = vmin.f32 %v629_v49, 6.0  ;;  %v1217_v20 = vrot.slane %v1114_v17, 1 }
 0x117   : > { %v1696_v28 = vrot.slane %v1595_v56, 1  ;;  %v3805_v46 = vmul.f32 %v3427_v15, %v3629_v52  ;;  %v758_v30 = vpack.c.bf16 %v704_v1, %v704_v1  ;;  %825 = vst.msk [vmem:[#allocation2 + $0xc4] sm:$0xf] %vm775_vm3, %v770_v24  ;;  %v1219_v26 = vrot.slane %v1115_v13, 1 }
 0x118   : > { %v3810_v40 = vmul.f32 %v3427_v15, %v3658_v22  ;;  %v3814_v43 = vmul.f32 %v3427_v15, %v3690_v7  ;;  %v737_v9 = vpack.c.bf16 %v683_v59, %v683_v59  ;;  %v3818_v60 = vsel %vm1200_vm4, %v1216_v6, %v1217_v20 }
 0x119   : > { %v1697_v62 = vsel %vm1200_vm4, %v1694_v10, %v1696_v28  ;;  %v1976_v52 = vrot.slane %v3805_v46, 2  ;;  %813 = vst.msk [vmem:[#allocation2 + $0x94] sm:$0xf] %vm775_vm3, %v758_v30  ;;  %v2077_v11 = vadd.f32 %v3737_v23, %v1799_v31  ;;  %v2354_v22 = vmul.f32 %v3507_v36, %v3753_v39 }
 0x11a   : > { %v842_v4 = vld [vmem:[#allocation2 + $0x3c] sm:$0xf]  ;;  %v1800_v32 = vadd.f32 %v1697_v62, %v1559_v35  ;;  %v2355_v7 = vmul.f32 %v3507_v36, %v3789_v48  ;;  %792 = vst.msk [vmem:[#allocation2 + $0x40] sm:$0xf] %vm775_vm3, %v737_v9  ;;  %v573_v10 = vpop.f32.mrf.mxu2  ;;  %v944_v53 = vmul.f32 %v3751_v21, %v3438_v29  ;;  %v945_v35 = vmul.f32 %v3753_v39, %v3438_v29 }
 0x11b   : > { %v3827_v37 = vunpack.c.l.bf16 %v842_v4  ;;  %v3835_v23 = vsel %vm1200_vm4, %v1217_v20, %v1219_v26  ;;  %v651_v12 = vmax.f32 %v573_v10, 0.0  ;;  %v520_v17 = vpop.f32.mrf.mxu0  ;;  %v2318_v56 = vadd.f32 %v3763_v19, %v2077_v11 }
 0x11c   : > { %v2078_v49 = vadd.f32 %v3745_v44, %v1800_v32  ;;  %v2454_v31 = vrot.slane %v2354_v22, 2  ;;  %v630_v1 = vmax.f32 %v520_v17, 0.0  ;;  %v2456_v24 = vrot.slane %v2355_v7, 2 }
 0x11d   : > { %v663_v13 = vmax.f32 %v603_v50, 0.0  ;;  %v3840_v6 = vadd.f32 %v944_v53, %v3760_v47  ;;  %v705_v59 = vmin.f32 %v651_v12, 6.0  ;;  %v3844_v20 = vadd.f32 %v945_v35, %v3780_v33 }
 0x11e   : > { %v2319_v28 = vadd.f32 %v2216_v63, %v2078_v49  ;;  %v2455_v46 = vsel %vm1960_vm5, %v2453_v55, %v2454_v31  ;;  %v684_v30 = vmin.f32 %v630_v1, 6.0  ;;  %v2457_v26 = vsel %vm1960_vm5, %v2454_v31, %v2456_v24  ;;  %v605_v49 = vpop.f32.mrf.mxu3 }
 0x11f   : > { %v2559_v44 = vadd.f32 %v2455_v46, %v2318_v56  ;;  %v717_v9 = vmin.f32 %v663_v13, 6.0  ;;  %v759_v19 = vpack.c.bf16 %v705_v59, %v705_v59  ;;  %v1355_v4 = vmul.f32 %v3751_v21, %v3444_v41 }
 0x120   : > { %v2560_v62 = vadd.f32 %v2457_v26, %v2319_v28  ;;  %v1356_v47 = vmul.f32 %v3753_v39, %v3444_v41  ;;  %v3197_v32 = vld [vmem:[#allocation2 + $0x90] sm:$0xff]   ;;  %v738_v63 = vpack.c.bf16 %v684_v30, %v684_v30  ;;  %v1977_v33 = vrot.slane %v3810_v40, 2 }
 0x121   : > { %v2595_v55 = vadd.f32 %v3610_v2, %v2559_v44  ;;  %v771_v11 = vpack.c.bf16 %v717_v9, %v717_v9  ;;  %v3853_v22 = vunpack.c.l.bf16 %v3197_v32  ;;  %v3855_v7 = vunpack.c.h.bf16 %v3197_v32  ;;  %v843_v10 = vld [vmem:[#allocation2 + $0x40] sm:$0xf]  ;;  %814 = vst.msk [vmem:[#allocation2 + $0x98] sm:$0xf] %vm775_vm3, %v759_v19 }
 0x122   : > { %v2596_v50 = vadd.f32 %v3610_v2, %v2560_v62  ;;  %v1457_v53 = vrot.slane %v1355_v4, 1  ;;  %v3859_v35 = vunpack.c.l.bf16 %v843_v10  ;;  %793 = vst.msk [vmem:[#allocation2 + $0x44] sm:$0xf] %vm775_vm3, %v738_v63  ;;  %v575_v12 = vpop.f32.mrf.mxu2  ;;  %v1357_v40 = vmul.f32 %v3444_v41, %v3789_v48  ;;  %v1832_v10 = vld [vmem:[#allocation2 + $0x3c] sm:$0xe] }
 0x123   : > { %v2627_v17 = vmax.f32 %v2595_v55, 0.0  ;;  %v1458_v56 = vrot.slane %v1356_v47, 1  ;;  %v652_v31 = vmax.f32 %v575_v12, 0.0  ;;  %v523_v1 = vpop.f32.mrf.mxu0  ;;  %826 = vst.msk [vmem:[#allocation2 + $0xc8] sm:$0xf] %vm775_vm3, %v771_v11  ;;  %v664_v13 = vmax.f32 %v605_v49, 0.0 }
 0x124   : > { %v2628_v24 = vmax.f32 %v2596_v50, 0.0  ;;  %v3866_v59 = vsel %vm1960_vm5, %v1976_v52, %v1977_v33  ;;  %v631_v28 = vmax.f32 %v523_v1, 0.0  ;;  %v1460_v26 = vrot.slane %v1357_v40, 1 }
 0x125   : > { %v2659_v46 = vmin.f32 %v2627_v17, 6.0  ;;  %v1459_v30 = vsel %vm1200_vm4, %v1457_v53, %v1458_v56  ;;  %v706_v44 = vmin.f32 %v652_v31, 6.0  ;;  %v718_v19 = vmin.f32 %v664_v13, 6.0 }
 0x126   : > { %v2660_v9 = vmin.f32 %v2628_v24, 6.0  ;;  %v1979_v62 = vrot.slane %v3814_v43, 2  ;;  %v685_v4 = vmin.f32 %v631_v28, 6.0  ;;  %v3871_v47 = vsel %vm1200_vm4, %v1458_v56, %v1460_v26  ;;  %v608_v24 = vpop.f32.mrf.mxu3 }
 0x127   : > { %v2115_v32 = vmul.f32 %v3436_v27, %v3722_v38  ;;  %v2116_v52 = vmul.f32 %v3753_v39, %v3436_v27  ;;  %v760_v63 = vpack.c.bf16 %v706_v44, %v706_v44  ;;  %v772_v11 = vpack.c.bf16 %v718_v19, %v718_v19 }
 0x128   : > { %v2689_v55 = vpack.c.bf16 %v2660_v9, %v2659_v46  ;;  %v3878_v50 = vsel %vm1960_vm5, %v1977_v33, %v1979_v62  ;;  %v1079_v53 = vld [vmem:[#allocation2 + $0x98] sm:$0x1]  ;;  %v739_v12 = vpack.c.bf16 %v685_v4, %v685_v4  ;;  %v3880_v43 = vunpack.c.l.bf16 %v1832_v10 }
 0x129   : > { %v2117_v17 = vmul.f32 %v3436_v27, %v3789_v48  ;;  %v2217_v49 = vrot.slane %v2115_v32, 2  ;;  %v3884_v40 = vunpack.c.l.bf16 %v1079_v53  ;;  %815 = vst.msk [vmem:[#allocation2 + $0x9c] sm:$0xf] %vm775_vm3, %v760_v63  ;;  %v2218_v56 = vrot.slane %v2116_v52, 2  ;;  %v1838_v32 = vld [vmem:[#allocation2 + $0x84] sm:$0xe] }
 0x12a   : > { %3104 = vmatmul.msk.bf16.gmra.mxu1 %vm2723_vm6, %v2689_v55  ;;  %v927_v31 = vmul.f32 %v3429_v18, %v3714_v51  ;;  %v1137_v33 = vmul.f32 %v3423_v8, %v3714_v51  ;;  %794 = vst.msk [vmem:[#allocation2 + $0x48] sm:$0xf] %vm775_vm3, %v739_v12  ;;  %v578_v1 = vpop.f32.mrf.mxu2  ;;  %v1009_v13 = vmul.f32 %v3441_v34, %v3827_v37  ;;  %v665_v19 = vmax.f32 %v608_v24, 0.0 }
 0x12b   : > { %v1596_v28 = vmul.f32 %v3446_v42, %v3827_v37  ;;  %v2220_v46 = vrot.slane %v2117_v17, 2  ;;  %v2356_v26 = vmul.f32 %v3507_v36, %v3880_v43  ;;  %v653_v44 = vmax.f32 %v578_v1, 0.0  ;;  %v525_v9 = vpop.f32.mrf.mxu0  ;;  %827 = vst.msk [vmem:[#allocation2 + $0xcc] sm:$0xf] %vm775_vm3, %v772_v11 }
 0x12c   : > { %v3901_v62 = vsel %vm1960_vm5, %v2217_v49, %v2218_v56  ;;  %v3905_v4 = vmul.f32 %v3423_v8, %v3747_v25  ;;  %v632_v52 = vmax.f32 %v525_v9, 0.0  ;;  %v1041_v63 = vadd.f32 %v1009_v13, %v3840_v6  ;;  %v1072_v9 = vld [vmem:[#allocation2 + $0x44] sm:$0x1] }
 0x12d   : > { %v1698_v55 = vrot.slane %v1596_v28, 1  ;;  %v3909_v10 = vsel %vm1960_vm5, %v2218_v56, %v2220_v46  ;;  %v707_v53 = vmin.f32 %v653_v44, 6.0  ;;  %v719_v12 = vmin.f32 %v665_v19, 6.0 }
 0x12e   : > { %v2458_v17 = vrot.slane %v2356_v26, 2  ;;  %v1256_v11 = vrot.slane %v1137_v33, 1  ;;  %v686_v1 = vmin.f32 %v632_v52, 6.0  ;;  %v1319_v49 = vadd.f32 %v3818_v60, %v1041_v63  ;;  %v610_v63 = vpop.f32.mrf.mxu3 }
 0x12f   : > { %v4962_v24 = vrot.slane %v3905_v4, 1  ;;  %v3913_v51 = vunpack.c.l.bf16 %v1838_v32  ;;  %v761_v16 = vpack.c.bf16 %v707_v53, %v707_v53  ;;  %v773_v57 = vpack.c.bf16 %v719_v12, %v719_v12 }
 0x130   : > { %v3917_v6 = vmul.f32 %v3427_v15, %v3747_v25  ;;  %v3921_v56 = vmul.f32 %v3751_v21, %v3429_v18  ;;  %v858_v13 = vld [vmem:[#allocation2 + $0x9c] sm:$0xf]  ;;  %v740_v28 = vpack.c.bf16 %v686_v1, %v686_v1  ;;  %v1560_v33 = vadd.f32 %v1459_v30, %v1319_v49 }
 0x131   : > { %v960_v60 = vmul.f32 %v3853_v22, %v3438_v29  ;;  %v3928_v46 = vsel %vm1200_vm4, %v1256_v11, %v4962_v24  ;;  %v3930_v26 = vunpack.c.l.bf16 %v858_v13  ;;  %816 = vst.msk [vmem:[#allocation2 + $0xa0] sm:$0xf] %vm775_vm3, %v761_v16  ;;  %v1010_v44 = vmul.f32 %v3441_v34, %v3859_v35 }
 0x132   : > { %v1597_v19 = vmul.f32 %v3446_v42, %v3859_v35  ;;  %v2357_v30 = vmul.f32 %v3507_v36, %v3859_v35  ;;  %795 = vst.msk [vmem:[#allocation2 + $0x4c] sm:$0xf] %vm775_vm3, %v740_v28  ;;  %v580_v32 = vpop.f32.mrf.mxu2  ;;  %v3940_v52 = vunpack.c.l.bf16 %v1072_v9  ;;  %v928_v53 = vmul.f32 %v3429_v18, %v3747_v25 }
 0x133   : > { %v961_v16 = vmul.f32 %v3855_v7, %v3438_v29  ;;  %v992_v12 = vadd.f32 %v960_v60, %v927_v31  ;;  %v654_v11 = vmax.f32 %v580_v32, 0.0  ;;  %v528_v1 = vpop.f32.mrf.mxu0  ;;  %828 = vst.msk [vmem:[#allocation2 + $0xd0] sm:$0xf] %vm775_vm3, %v773_v57  ;;  %v1042_v49 = vadd.f32 %v1010_v44, %v3844_v20 }
 0x134   : > { %v1699_v13 = vrot.slane %v1597_v19, 1  ;;  %v2459_v24 = vrot.slane %v2357_v30, 2  ;;  %v633_v28 = vmax.f32 %v528_v1, 0.0  ;;  %v1598_v9 = vmul.f32 %v3446_v42, %v3940_v52 }
 0x135   : > { %v2358_v14 = vmul.f32 %v3507_v36, %v3940_v52  ;;  %v666_v25 = vmax.f32 %v610_v63, 0.0  ;;  %v708_v0 = vmin.f32 %v654_v11, 6.0  ;;  %v1320_v3 = vadd.f32 %v3835_v23, %v1042_v49 }
 0x136   : > { %v1700_v31 = vsel %vm1200_vm4, %v1698_v55, %v1699_v13  ;;  %v2460_v60 = vsel %vm1960_vm5, %v2458_v17, %v2459_v24  ;;  %v687_v57 = vmin.f32 %v633_v28, 6.0  ;;  %v1701_v32 = vrot.slane %v1598_v9, 1 }
 0x137   : > { %v1801_v20 = vadd.f32 %v1700_v31, %v1560_v33  ;;  %v2461_v44 = vrot.slane %v2358_v14, 2  ;;  %v762_v19 = vpack.c.bf16 %v708_v0, %v708_v0  ;;  %v1561_v30 = vadd.f32 %v3871_v47, %v1320_v3 }
 0x138   : > { %v720_v1 = vmin.f32 %v666_v25, 6.0  ;;  %v993_v58 = vadd.f32 %v961_v16, %v928_v53  ;;  %v859_v54 = vld [vmem:[#allocation2 + $0xa0] sm:$0xf]  ;;  %v741_v5 = vpack.c.bf16 %v687_v57, %v687_v57  ;;  %v1702_v36 = vsel %vm1200_vm4, %v1699_v13, %v1701_v32 }
 0x139   : > { %v2079_v63 = vadd.f32 %v3866_v59, %v1801_v20  ;;  %v2462_v23 = vsel %vm1960_vm5, %v2459_v24, %v2461_v44  ;;  %v3959_v55 = vunpack.c.l.bf16 %v859_v54  ;;  %v3194_v17 = vld [vmem:[#allocation2 + $0x48] sm:$0xff]   ;;  %817 = vst.msk [vmem:[#allocation2 + $0xa4] sm:$0xf] %vm775_vm3, %v762_v19  ;;  %v1802_v33 = vadd.f32 %v1702_v36, %v1561_v30 }
 0x13a   : > { %v774_v14 = vpack.c.bf16 %v720_v1, %v720_v1  ;;  %v1025_v0 = vmul.f32 %v3441_v34, %v3930_v26  ;;  %v3964_v3 = vunpack.c.l.bf16 %v3194_v17  ;;  %v3966_v25 = vunpack.c.h.bf16 %v3194_v17  ;;  %796 = vst.msk [vmem:[#allocation2 + $0x50] sm:$0xf] %vm775_vm3, %v741_v5  ;;  %v583_v47 = vpop.f32.mrf.mxu2 }
 0x13b   : > { %v2320_v59 = vadd.f32 %v3901_v62, %v2079_v63  ;;  %v1139_v54 = vmul.f32 %v3423_v8, %v3782_v61  ;;  %v655_v24 = vmax.f32 %v583_v47, 0.0  ;;  %v530_v53 = vpop.f32.mrf.mxu0  ;;  %v2080_v16 = vadd.f32 %v3878_v50, %v1802_v33 }
 0x13c   : > { %829 = vst.msk [vmem:[#allocation2 + $0xd4] sm:$0xf] %vm775_vm3, %v774_v14  ;;  %v1026_v11 = vmul.f32 %v3441_v34, %v3959_v55  ;;  %v1057_v49 = vadd.f32 %v1025_v0, %v992_v12  ;;  %v634_v13 = vmax.f32 %v530_v53, 0.0  ;;  %v1379_v5 = vmul.f32 %v3853_v22, %v3444_v41  ;;  %v1840_v53 = vld [vmem:[#allocation2 + $0x9c] sm:$0xe] }
 0x13d   : > { %v2561_v28 = vadd.f32 %v2460_v60, %v2320_v59  ;;  %v1259_v9 = vrot.slane %v1139_v54, 1  ;;  %v709_v62 = vmin.f32 %v655_v24, 6.0  ;;  %v2321_v31 = vadd.f32 %v3909_v10, %v2080_v16  ;;  %v1839_v10 = vld [vmem:[#allocation2 + $0x90] sm:$0xe] }
 0x13e   : > { %v1058_v57 = vadd.f32 %v1026_v11, %v993_v58  ;;  %v1335_v32 = vadd.f32 %v3928_v46, %v1057_v49  ;;  %v688_v20 = vmin.f32 %v634_v13, 6.0  ;;  %v4981_v44 = vrot.slane %v3905_v4, 1 }
 0x13f   : > { %v2597_v50 = vadd.f32 %v3610_v2, %v2561_v28  ;;  %v1380_v12 = vmul.f32 %v3855_v7, %v3444_v41  ;;  %v763_v60 = vpack.c.bf16 %v709_v62, %v709_v62  ;;  %v2562_v30 = vadd.f32 %v2462_v23, %v2321_v31 }
 0x140   : > { %v1260_v19 = vsel %vm1200_vm4, %v4981_v44, %v1259_v9  ;;  %v1381_v36 = vmul.f32 %v3444_v41, %v3884_v40  ;;  %v1080_v58 = vld [vmem:[#allocation2 + $0xa4] sm:$0x1]  ;;  %v742_v63 = vpack.c.bf16 %v688_v20, %v688_v20  ;;  %v1497_v17 = vrot.slane %v1379_v5, 1 }
 0x141   : > { %v1336_v1 = vadd.f32 %v1260_v19, %v1058_v57  ;;  %v2629_v46 = vmax.f32 %v2597_v50, 0.0  ;;  %v1498_v33 = vrot.slane %v1380_v12, 1  ;;  %v3988_v14 = vunpack.c.l.bf16 %v1080_v58  ;;  %818 = vst.msk [vmem:[#allocation2 + $0xa8] sm:$0xf] %vm775_vm3, %v763_v60  ;;  %v1073_v60 = vld [vmem:[#allocation2 + $0x50] sm:$0x1] }
 0x142   : > { %v2598_v4 = vadd.f32 %v3610_v2, %v2562_v30  ;;  %v1500_v0 = vrot.slane %v1381_v36, 1  ;;  %v1620_v23 = vmul.f32 %v3446_v42, %v3930_v26  ;;  %797 = vst.msk [vmem:[#allocation2 + $0x54] sm:$0xf] %vm775_vm3, %v742_v63  ;;  %v585_v47 = vpop.f32.mrf.mxu2  ;;  %v1621_v24 = vmul.f32 %v3446_v42, %v3959_v55 }
 0x143   : > { %v2661_v59 = vmin.f32 %v2629_v46, 6.0  ;;  %v1499_v54 = vsel %vm1200_vm4, %v1497_v17, %v1498_v33  ;;  %v3998_v16 = vunpack.c.l.bf16 %v1839_v10  ;;  %v656_v11 = vmax.f32 %v585_v47, 0.0 }
 0x144   : > { %v2630_v49 = vmax.f32 %v2598_v4, 0.0  ;;  %v1501_v2 = vsel %vm1200_vm4, %v1498_v33, %v1500_v0  ;;  %v1576_v13 = vadd.f32 %v1499_v54, %v1335_v32  ;;  %v1622_v9 = vmul.f32 %v3446_v42, %v3988_v14 }
 0x145   : > { %v1577_v28 = vadd.f32 %v1501_v2, %v1336_v1  ;;  %v1738_v5 = vrot.slane %v1620_v23, 1  ;;  %v1739_v62 = vrot.slane %v1621_v24, 1  ;;  %v710_v31 = vmin.f32 %v656_v11, 6.0  ;;  %v4029_v2 = vld [vmem:[%s4953_s2 + $0x8] ss:$0 sm:$0xff] }
 0x146   : > { %v2662_v57 = vmin.f32 %v2630_v49, 6.0  ;;  %v4003_v20 = vunpack.c.l.bf16 %v1840_v53  ;;  %v1897_v50 = vmul.f32 %v3427_v15, %v3913_v51  ;;  %v1741_v19 = vrot.slane %v1622_v9, 1 }
 0x147   : > { %v1740_v44 = vsel %vm1200_vm4, %v1738_v5, %v1739_v62  ;;  %v1899_v12 = vmul.f32 %v3427_v15, %v3782_v61  ;;  %v2017_v32 = vrot.slane %v3917_v6, 2  ;;  %v764_v30 = vpack.c.bf16 %v710_v31, %v710_v31 }
 0x148   : > { %v2690_v1 = vpack.c.bf16 %v2662_v57, %v2661_v59  ;;  %v1817_v36 = vadd.f32 %v1740_v44, %v1576_v13  ;;  %v2016_v10 = vrot.slane %v1897_v50, 2  ;;  %v1742_v58 = vsel %vm1200_vm4, %v1739_v62, %v1741_v19 }
 0x149   : > { %v2019_v63 = vrot.slane %v1899_v12, 2  ;;  %v2139_v46 = vmul.f32 %v3436_v27, %v3998_v16  ;;  %v2140_v17 = vmul.f32 %v3855_v7, %v3436_v27  ;;  %v846_v33 = vld [vmem:[#allocation2 + $0x54] sm:$0xf]  ;;  %819 = vst.msk [vmem:[#allocation2 + $0xac] sm:$0xf] %vm775_vm3, %v764_v30  ;;  %v1818_v6 = vadd.f32 %v1742_v58, %v1577_v28 }
 0x14a   : > { %3105 = vmatmul.msk.bf16.gmra.mxu1 %vm2723_vm6, %v2690_v1  ;;  %v2018_v4 = vsel %vm1960_vm5, %v2016_v10, %v2017_v32  ;;  %v2141_v0 = vmul.f32 %v3436_v27, %v3884_v40  ;;  %v4021_v23 = vunpack.c.l.bf16 %v1073_v60  ;;  %v4023_v47 = vunpack.c.l.bf16 %v846_v33 }
 0x14b   : > { %v2020_v59 = vsel %vm1960_vm5, %v2017_v32, %v2019_v63  ;;  %v2095_v54 = vadd.f32 %v2018_v4, %v1817_v36  ;;  %v2257_v24 = vrot.slane %v2139_v46, 2  ;;  %v2258_v11 = vrot.slane %v2140_v17, 2 }
 0x14c   : > { %v2096_v53 = vadd.f32 %v2020_v59, %v1818_v6  ;;  %v2260_v49 = vrot.slane %v2141_v0, 2  ;;  %v2380_v13 = vmul.f32 %v4029_v2, %v4003_v20  ;;  %v2381_v28 = vmul.f32 %v4029_v2, %v3959_v55 }
 0x14d   : > { %v2382_v9 = vmul.f32 %v4029_v2, %v3988_v14  ;;  %v914_v5 = vmul.f32 %v3753_v39, %v3429_v18  ;;  %v946_v62 = vmul.f32 %v3438_v29, %v3827_v37  ;;  %v2259_v31 = vsel %vm1960_vm5, %v2257_v24, %v2258_v11 }
 0x14e   : > { %v2261_v57 = vsel %vm1960_vm5, %v2258_v11, %v2260_v49  ;;  %v2498_v50 = vrot.slane %v2380_v13, 2  ;;  %v947_v44 = vmul.f32 %v3438_v29, %v3859_v35  ;;  %v2336_v19 = vadd.f32 %v2259_v31, %v2095_v54  ;;  %v4065_v11 = vld [vmem:[%s4954_s3] ss:$0 sm:$0xff] }
 0x14f   : > { %v2337_v12 = vadd.f32 %v2261_v57, %v2096_v53  ;;  %v2499_v32 = vrot.slane %v2381_v28, 2  ;;  %v2501_v60 = vrot.slane %v2382_v9, 2  ;;  %v978_v30 = vadd.f32 %v946_v62, %v3921_v56 }
 0x150   : > { %v979_v1 = vadd.f32 %v947_v44, %v914_v5  ;;  %v1011_v36 = vmul.f32 %v3964_v3, %v3441_v34  ;;  %v1012_v10 = vmul.f32 %v3966_v25, %v3441_v34  ;;  %v3198_v58 = vld [vmem:[#allocation2 + $0xa8] sm:$0xff]   ;;  %v1116_v17 = vmul.f32 %v3751_v21, %v3423_v8 }
 0x151   : > { %v2500_v63 = vsel %vm1960_vm5, %v2498_v50, %v2499_v32  ;;  %v2502_v46 = vsel %vm1960_vm5, %v2499_v32, %v2501_v60  ;;  %v1117_v33 = vmul.f32 %v3753_v39, %v3423_v8  ;;  %v4056_v6 = vunpack.c.l.bf16 %v3198_v58 }
 0x152   : > { %v4058_v56 = vunpack.c.h.bf16 %v3198_v58  ;;  %v2577_v4 = vadd.f32 %v2500_v63, %v2336_v19  ;;  %v2578_v0 = vadd.f32 %v2502_v46, %v2337_v12  ;;  %v1043_v59 = vadd.f32 %v1011_v36, %v978_v30  ;;  %v1833_v63 = vld [vmem:[#allocation2 + $0x48] sm:$0xe] }
 0x153   : > { %v1044_v54 = vadd.f32 %v1012_v10, %v979_v1  ;;  %v1118_v24 = vmul.f32 %v3423_v8, %v3789_v48  ;;  %v1221_v53 = vrot.slane %v1116_v17, 1  ;;  %v1222_v13 = vrot.slane %v1117_v33, 1 }
 0x154   : > { %v2613_v21 = vadd.f32 %v4065_v11, %v2577_v4  ;;  %v2614_v49 = vadd.f32 %v4065_v11, %v2578_v0  ;;  %v1358_v28 = vmul.f32 %v3444_v41, %v3827_v37  ;;  %v1359_v5 = vmul.f32 %v3444_v41, %v3859_v35 }
 0x155   : > { %v1224_v9 = vrot.slane %v1118_v24, 1  ;;  %v1360_v62 = vmul.f32 %v3444_v41, %v3940_v52  ;;  %v1599_v31 = vmul.f32 %v3964_v3, %v3446_v42  ;;  %v1223_v44 = vsel %vm1200_vm4, %v1221_v53, %v1222_v13 }
 0x156   : > { %v2645_v57 = vmax.f32 %v2613_v21, 0.0  ;;  %v2646_v50 = vmax.f32 %v2614_v49, 0.0  ;;  %v1462_v19 = vrot.slane %v1358_v28, 1  ;;  %v1321_v32 = vadd.f32 %v1223_v44, %v1043_v59 }
 0x157   : > { %v1225_v12 = vsel %vm1200_vm4, %v1222_v13, %v1224_v9  ;;  %v1463_v60 = vrot.slane %v1359_v5, 1  ;;  %v1465_v30 = vrot.slane %v1360_v62, 1  ;;  %v1600_v58 = vmul.f32 %v3966_v25, %v3446_v42 }
 0x158   : > { %v2677_v1 = vmin.f32 %v2645_v57, 6.0  ;;  %v2678_v36 = vmin.f32 %v2646_v50, 6.0  ;;  %v1322_v10 = vadd.f32 %v1225_v12, %v1044_v54  ;;  %v1601_v33 = vmul.f32 %v3446_v42, %v4021_v23 }
 0x159   : > { %v1464_v46 = vsel %vm1200_vm4, %v1462_v19, %v1463_v60  ;;  %v1466_v17 = vsel %vm1200_vm4, %v1463_v60, %v1465_v30  ;;  %v1703_v4 = vrot.slane %v1599_v31, 1  ;;  %v1704_v53 = vrot.slane %v1600_v58, 1 }
 0x15a   : > { %v2698_v0 = vpack.c.bf16 %v2678_v36, %v2677_v1  ;;  %v1562_v24 = vadd.f32 %v1464_v46, %v1321_v32  ;;  %v1563_v59 = vadd.f32 %v1466_v17, %v1322_v10  ;;  %v1706_v21 = vrot.slane %v1601_v33, 1 }
 0x15b   : > { %v4085_v49 = vunpack.c.l.bf16 %v1833_v63  ;;  %v1876_v54 = vmul.f32 %v3427_v15, %v3722_v38  ;;  %v1877_v13 = vmul.f32 %v3753_v39, %v3427_v15  ;;  %v1705_v28 = vsel %vm1200_vm4, %v1703_v4, %v1704_v53 }
 0x15c   : > { %3113 = vmatmul.msk.bf16.vlgmr.msrb.gmra.mxu3 %vm2723_vm6, %v2698_v0  ;;  %v1878_v9 = vmul.f32 %v3427_v15, %v3789_v48  ;;  %v2118_v5 = vmul.f32 %v3436_v27, %v3880_v43  ;;  %v2119_v62 = vmul.f32 %v3436_v27, %v3859_v35  ;;  %v1707_v31 = vsel %vm1200_vm4, %v1704_v53, %v1706_v21  ;;  %v1074_v53 = vld [vmem:[#allocation2 + $0x5c] sm:$0x1] }
 0x15d   : > { %v1803_v57 = vadd.f32 %v1705_v28, %v1562_v24  ;;  %v1981_v38 = vrot.slane %v1876_v54, 2  ;;  %v1982_v50 = vrot.slane %v1877_v13, 2  ;;  %v1804_v44 = vadd.f32 %v1707_v31, %v1563_v59 }
 0x15e   : > { %v1984_v39 = vrot.slane %v1878_v9, 2  ;;  %v2120_v19 = vmul.f32 %v3436_v27, %v3940_v52  ;;  %v2222_v12 = vrot.slane %v2118_v5, 2  ;;  %v2223_v48 = vrot.slane %v2119_v62, 2 }
 0x15f   : > { %v1983_v32 = vsel %vm1960_vm5, %v1981_v38, %v1982_v50  ;;  %v2359_v60 = vmul.f32 %v4029_v2, %v4085_v49  ;;  %v2360_v30 = vmul.f32 %v4029_v2, %v3966_v25  ;;  %v2361_v58 = vmul.f32 %v4029_v2, %v4021_v23 }
 0x160   : > { %v1985_v1 = vsel %vm1960_vm5, %v1982_v50, %v1984_v39  ;;  %v2081_v36 = vadd.f32 %v1983_v32, %v1803_v57  ;;  %v2225_v10 = vrot.slane %v2120_v19, 2  ;;  %v2224_v46 = vsel %vm1960_vm5, %v2222_v12, %v2223_v48 }
 0x161   : > { %v2082_v63 = vadd.f32 %v1985_v1, %v1804_v44  ;;  %v2463_v17 = vrot.slane %v2359_v60, 2  ;;  %v2464_v33 = vrot.slane %v2360_v30, 2  ;;  %v2466_v24 = vrot.slane %v2361_v58, 2 }
 0x162   : > { %v2226_v4 = vsel %vm1960_vm5, %v2223_v48, %v2225_v10  ;;  %v2322_v0 = vadd.f32 %v2224_v46, %v2081_v36  ;;  %v915_v59 = vmul.f32 %v3429_v18, %v3827_v37  ;;  %v916_v13 = vmul.f32 %v3429_v18, %v3859_v35 }
 0x163   : > { %v2323_v21 = vadd.f32 %v2226_v4, %v2082_v63  ;;  %v2465_v54 = vsel %vm1960_vm5, %v2463_v17, %v2464_v33  ;;  %v948_v28 = vmul.f32 %v3964_v3, %v3438_v29  ;;  %v2467_v9 = vsel %vm1960_vm5, %v2464_v33, %v2466_v24 }
 0x164   : > { %v2563_v5 = vadd.f32 %v2465_v54, %v2322_v0  ;;  %v949_v62 = vmul.f32 %v3966_v25, %v3438_v29  ;;  %v1013_v31 = vmul.f32 %v3441_v34, %v4023_v47  ;;  %v1014_v50 = vmul.f32 %v3441_v34, %v3454_v45 }
 0x165   : > { %v2564_v57 = vadd.f32 %v2467_v9, %v2323_v21  ;;  %v980_v38 = vadd.f32 %v948_v28, %v915_v59  ;;  %v4126_v44 = vunpack.c.l.bf16 %v1074_v53  ;;  %v1119_v12 = vmul.f32 %v3423_v8, %v3827_v37  ;;  %v1834_v53 = vld [vmem:[#allocation2 + $0x54] sm:$0xe] }
 0x166   : > { %v2599_v39 = vadd.f32 %v4065_v11, %v2563_v5  ;;  %v981_v19 = vadd.f32 %v949_v62, %v916_v13  ;;  %v1120_v32 = vmul.f32 %v3423_v8, %v3859_v35  ;;  %v1121_v30 = vmul.f32 %v3423_v8, %v3940_v52 }
 0x167   : > { %v2600_v48 = vadd.f32 %v4065_v11, %v2564_v57  ;;  %v1045_v60 = vadd.f32 %v1013_v31, %v980_v38  ;;  %v1361_v1 = vmul.f32 %v3964_v3, %v3444_v41  ;;  %v1226_v58 = vrot.slane %v1119_v12, 1 }
 0x168   : > { %v2631_v36 = vmax.f32 %v2599_v39, 0.0  ;;  %v1046_v10 = vadd.f32 %v1014_v50, %v981_v19  ;;  %v1227_v63 = vrot.slane %v1120_v32, 1  ;;  %v1229_v17 = vrot.slane %v1121_v30, 1 }
 0x169   : > { %v2632_v46 = vmax.f32 %v2600_v48, 0.0  ;;  %v1362_v37 = vmul.f32 %v3966_v25, %v3444_v41  ;;  %v1363_v33 = vmul.f32 %v3444_v41, %v4021_v23  ;;  %v1467_v24 = vrot.slane %v1361_v1, 1 }
 0x16a   : > { %v2663_v4 = vmin.f32 %v2631_v36, 6.0  ;;  %v1228_v0 = vsel %vm1200_vm4, %v1226_v58, %v1227_v63  ;;  %v1602_v59 = vmul.f32 %v3446_v42, %v4023_v47  ;;  %v1230_v54 = vsel %vm1200_vm4, %v1227_v63, %v1229_v17 }
 0x16b   : > { %v2664_v21 = vmin.f32 %v2632_v46, 6.0  ;;  %v1323_v13 = vadd.f32 %v1228_v0, %v1045_v60  ;;  %v1468_v28 = vrot.slane %v1362_v37, 1  ;;  %v1324_v9 = vadd.f32 %v1230_v54, %v1046_v10 }
 0x16c   : > { %v1470_v5 = vrot.slane %v1363_v33, 1  ;;  %v1603_v62 = vmul.f32 %v3446_v42, %v3454_v45  ;;  %v1604_v31 = vmul.f32 %v3446_v42, %v4126_v44  ;;  %v1708_v50 = vrot.slane %v1602_v59, 1 }
 0x16d   : > { %v2691_v57 = vpack.c.bf16 %v2664_v21, %v2663_v4  ;;  %v1469_v38 = vsel %vm1200_vm4, %v1467_v24, %v1468_v28  ;;  %v4151_v39 = vunpack.c.l.bf16 %v1834_v53  ;;  %v1879_v30 = vmul.f32 %v3427_v15, %v3880_v43 }
 0x16e   : > { %v1471_v19 = vsel %vm1200_vm4, %v1468_v28, %v1470_v5  ;;  %v1564_v12 = vadd.f32 %v1469_v38, %v1323_v13  ;;  %v1709_v32 = vrot.slane %v1603_v62, 1  ;;  %v1711_v48 = vrot.slane %v1604_v31, 1 }
 0x16f   : > { %3106 = vmatmul.msk.bf16.gmra.mxu1 %vm2723_vm6, %v2691_v57  ;;  %v1565_v60 = vadd.f32 %v1471_v19, %v1324_v9  ;;  %v1880_v1 = vmul.f32 %v3427_v15, %v3859_v35  ;;  %v1881_v36 = vmul.f32 %v3427_v15, %v3940_v52  ;;  %v2121_v63 = vmul.f32 %v3436_v27, %v4085_v49 }
 0x170   : > { %v1710_v10 = vsel %vm1200_vm4, %v1708_v50, %v1709_v32  ;;  %v1712_v58 = vsel %vm1200_vm4, %v1709_v32, %v1711_v48  ;;  %v2122_v46 = vmul.f32 %v3966_v25, %v3436_v27  ;;  %v1986_v33 = vrot.slane %v1879_v30, 2  ;;  %v1081_v32 = vld [vmem:[#allocation2 + $0xb0] sm:$0x1] }
 0x171   : > { %v1805_v17 = vadd.f32 %v1710_v10, %v1564_v12  ;;  %v1806_v37 = vadd.f32 %v1712_v58, %v1565_v60  ;;  %v1987_v43 = vrot.slane %v1880_v1, 2  ;;  %v1989_v4 = vrot.slane %v1881_v36, 2 }
 0x172   : > { %v2123_v35 = vmul.f32 %v3436_v27, %v4021_v23  ;;  %v2227_v0 = vrot.slane %v2121_v63, 2  ;;  %v2228_v52 = vrot.slane %v2122_v46, 2  ;;  %v2362_v59 = vmul.f32 %v4029_v2, %v4151_v39 }
 0x173   : > { %v1988_v24 = vsel %vm1960_vm5, %v1986_v33, %v1987_v43  ;;  %v2363_v53 = vmul.f32 %v4029_v2, %v3454_v45  ;;  %v2364_v21 = vmul.f32 %v4029_v2, %v4126_v44  ;;  %v1990_v54 = vsel %vm1960_vm5, %v1987_v43, %v1989_v4 }
 0x174   : > { %v2083_v13 = vadd.f32 %v1988_v24, %v1805_v17  ;;  %v2229_v28 = vsel %vm1960_vm5, %v2227_v0, %v2228_v52  ;;  %v2230_v9 = vrot.slane %v2123_v35, 2  ;;  %v2084_v5 = vadd.f32 %v1990_v54, %v1806_v37 }
 0x175   : > { %v2468_v62 = vrot.slane %v2362_v59, 2  ;;  %v2469_v31 = vrot.slane %v2363_v53, 2  ;;  %v2471_v57 = vrot.slane %v2364_v21, 2  ;;  %v929_v19 = vmul.f32 %v3853_v22, %v3429_v18 }
 0x176   : > { %v2231_v38 = vsel %vm1960_vm5, %v2228_v52, %v2230_v9  ;;  %v2324_v50 = vadd.f32 %v2229_v28, %v2083_v13  ;;  %v930_v12 = vmul.f32 %v3855_v7, %v3429_v18  ;;  %v962_v1 = vmul.f32 %v3438_v29, %v3930_v26 }
 0x177   : > { %v2325_v48 = vadd.f32 %v2231_v38, %v2084_v5  ;;  %v2470_v60 = vsel %vm1960_vm5, %v2468_v62, %v2469_v31  ;;  %v2472_v30 = vsel %vm1960_vm5, %v2469_v31, %v2471_v57  ;;  %v963_v10 = vmul.f32 %v3438_v29, %v3959_v55 }
 0x178   : > { %v2565_v36 = vadd.f32 %v2470_v60, %v2324_v50  ;;  %v1027_v58 = vmul.f32 %v4056_v6, %v3441_v34  ;;  %v1028_v63 = vmul.f32 %v4058_v56, %v3441_v34  ;;  %v994_v17 = vadd.f32 %v962_v1, %v929_v19 }
 0x179   : > { %v2566_v46 = vadd.f32 %v2472_v30, %v2325_v48  ;;  %v4193_v37 = vunpack.c.l.bf16 %v1081_v32  ;;  %v1140_v33 = vmul.f32 %v3853_v22, %v3423_v8  ;;  %v995_v4 = vadd.f32 %v963_v10, %v930_v12  ;;  %v1841_v12 = vld [vmem:[#allocation2 + $0xa8] sm:$0xe] }
 0x17a   : > { %v2601_v43 = vadd.f32 %v4065_v11, %v2565_v36  ;;  %v1141_v35 = vmul.f32 %v3855_v7, %v3423_v8  ;;  %v1142_v0 = vmul.f32 %v3423_v8, %v3884_v40  ;;  %v1059_v24 = vadd.f32 %v1027_v58, %v994_v17 }
 0x17b   : > { %v2602_v52 = vadd.f32 %v4065_v11, %v2566_v46  ;;  %v1261_v59 = vrot.slane %v1140_v33, 1  ;;  %v1382_v53 = vmul.f32 %v3444_v41, %v3930_v26  ;;  %v1060_v54 = vadd.f32 %v1028_v63, %v995_v4 }
 0x17c   : > { %v2633_v21 = vmax.f32 %v2601_v43, 0.0  ;;  %v1262_v13 = vrot.slane %v1141_v35, 1  ;;  %v1264_v28 = vrot.slane %v1142_v0, 1  ;;  %v1383_v5 = vmul.f32 %v3444_v41, %v3959_v55 }
 0x17d   : > { %v2634_v9 = vmax.f32 %v2602_v52, 0.0  ;;  %v1384_v62 = vmul.f32 %v3444_v41, %v3988_v14  ;;  %v1502_v31 = vrot.slane %v1382_v53, 1  ;;  %v1623_v19 = vmul.f32 %v4056_v6, %v3446_v42 }
 0x17e   : > { %v2665_v57 = vmin.f32 %v2633_v21, 6.0  ;;  %v1263_v38 = vsel %vm1200_vm4, %v1261_v59, %v1262_v13  ;;  %v1265_v50 = vsel %vm1200_vm4, %v1262_v13, %v1264_v28  ;;  %v1503_v30 = vrot.slane %v1383_v5, 1 }
 0x17f   : > { %v2666_v32 = vmin.f32 %v2634_v9, 6.0  ;;  %v1337_v48 = vadd.f32 %v1263_v38, %v1059_v24  ;;  %v1338_v60 = vadd.f32 %v1265_v50, %v1060_v54  ;;  %v1505_v1 = vrot.slane %v1384_v62, 1 }
 0x180   : > { %v1624_v36 = vmul.f32 %v4058_v56, %v3446_v42  ;;  %v1625_v10 = vmul.f32 %v3446_v42, %v4193_v37  ;;  %v1743_v58 = vrot.slane %v1623_v19, 1  ;;  %v1504_v46 = vsel %vm1200_vm4, %v1502_v31, %v1503_v30 }
 0x181   : > { %v2692_v63 = vpack.c.bf16 %v2666_v32, %v2665_v57  ;;  %v4218_v17 = vunpack.c.l.bf16 %v1841_v12  ;;  %v1900_v33 = vmul.f32 %v3427_v15, %v3998_v16  ;;  %v1506_v43 = vsel %vm1200_vm4, %v1503_v30, %v1505_v1  ;;  %v4237_v57 = vld [vmem:[%s4956_s5] ss:$0 sm:$0xff]  ;;  %v2781_v32 = vpop.f32.mrf.mxu1 }
 0x182   : > { %v1578_v4 = vadd.f32 %v1504_v46, %v1337_v48  ;;  %v1744_v35 = vrot.slane %v1624_v36, 1  ;;  %v1746_v0 = vrot.slane %v1625_v10, 1  ;;  %v1579_v52 = vadd.f32 %v1506_v43, %v1338_v60  ;;  %v3118_v46 = vld [vmem:[%s3328_s8 + $0x19] sm:$0xff] }
 0x183   : > { %3107 = vmatmul.msk.bf16.gmra.mxu1 %vm2723_vm6, %v2692_v63  ;;  %v1901_v24 = vmul.f32 %v3855_v7, %v3427_v15  ;;  %v1902_v59 = vmul.f32 %v3427_v15, %v3884_v40  ;;  %v2021_v53 = vrot.slane %v1900_v33, 2  ;;  %v2142_v13 = vmul.f32 %v3436_v27, %v4003_v20 }
 0x184   : > { %v1745_v21 = vsel %vm1200_vm4, %v1743_v58, %v1744_v35  ;;  %v1747_v54 = vsel %vm1200_vm4, %v1744_v35, %v1746_v0  ;;  %v2143_v28 = vmul.f32 %v3436_v27, %v3959_v55  ;;  %v2144_v38 = vmul.f32 %v3436_v27, %v3988_v14 }
 0x185   : > { %v1819_v9 = vadd.f32 %v1745_v21, %v1578_v4  ;;  %v1820_v5 = vadd.f32 %v1747_v54, %v1579_v52  ;;  %v2022_v62 = vrot.slane %v1901_v24, 2  ;;  %v2024_v31 = vrot.slane %v1902_v59, 2  ;;  %v1075_v59 = vld [vmem:[#allocation2 + $0x68] sm:$0x1] }
 0x186   : > { %v2262_v50 = vrot.slane %v2142_v13, 2  ;;  %v2263_v19 = vrot.slane %v2143_v28, 2  ;;  %v2383_v12 = vmul.f32 %v4029_v2, %v4218_v17  ;;  %v2384_v30 = vmul.f32 %v4029_v2, %v4058_v56 }
 0x187   : > { %v2023_v48 = vsel %vm1960_vm5, %v2021_v53, %v2022_v62  ;;  %v2025_v60 = vsel %vm1960_vm5, %v2022_v62, %v2024_v31  ;;  %v2385_v1 = vmul.f32 %v4029_v2, %v4193_v37  ;;  %v2265_v63 = vrot.slane %v2144_v38, 2  ;;  %v4982_v38 = vld [vmem:[#allocation3_spill] sm:$0xff] }
 0x188   : > { %v2097_v36 = vadd.f32 %v2023_v48, %v1819_v9  ;;  %v2098_v10 = vadd.f32 %v2025_v60, %v1820_v5  ;;  %v2264_v58 = vsel %vm1960_vm5, %v2262_v50, %v2263_v19  ;;  %v2503_v33 = vrot.slane %v2383_v12, 2 }
 0x189   : > { %v2504_v43 = vrot.slane %v2384_v30, 2  ;;  %v2506_v4 = vrot.slane %v2385_v1, 2  ;;  %v2782_v35 = vadd.f32 %v4237_v57, %v2781_v32  ;;  %v2266_v0 = vsel %vm1960_vm5, %v2263_v19, %v2265_v63  ;;  %v4983_v19 = vld [vmem:[#allocation4_spill] sm:$0xff] }
 0x18a   : > { %v2338_v52 = vadd.f32 %v2264_v58, %v2097_v36  ;;  %v917_v24 = vmul.f32 %v3964_v3, %v3429_v18  ;;  %v2339_v53 = vadd.f32 %v2266_v0, %v2098_v10  ;;  %v918_v9 = vmul.f32 %v3966_v25, %v3429_v18 }
 0x18b   : > { %v2505_v21 = vsel %vm1960_vm5, %v2503_v33, %v2504_v43  ;;  %v2507_v54 = vsel %vm1960_vm5, %v2504_v43, %v2506_v4  ;;  %v2894_v13 = vadd.f32 %v3118_v46, %v2782_v35  ;;  %v950_v5 = vmul.f32 %v3438_v29, %v4023_v47 }
 0x18c   : > { %v2579_v28 = vadd.f32 %v2505_v21, %v2338_v52  ;;  %v951_v62 = vmul.f32 %v3438_v29, %v3454_v45  ;;  %v2580_v31 = vadd.f32 %v2507_v54, %v2339_v53  ;;  %v1015_v50 = vmul.f32 %v4982_v38, %v3441_v34 }
 0x18d   : > { %2927 = vst.msk [vmem:[%s4257_s9] sm:$0xff] %vm2926_vm7, %v2894_v13  ;;  %v1016_v12 = vmul.f32 %v4983_v19, %v3441_v34  ;;  %v4275_v32 = vunpack.c.l.bf16 %v1075_v59  ;;  %v982_v60 = vadd.f32 %v950_v5, %v917_v24  ;;  %v1122_v1 = vmul.f32 %v3964_v3, %v3423_v8  ;;  %v1835_v5 = vld [vmem:[#allocation2 + $0x60] sm:$0xe] }
 0x18e   : > { %v2615_v48 = vadd.f32 %v4065_v11, %v2579_v28  ;;  %v983_v30 = vadd.f32 %v951_v62, %v918_v9  ;;  %v2616_v36 = vadd.f32 %v4065_v11, %v2580_v31  ;;  %v1123_v10 = vmul.f32 %v3966_v25, %v3423_v8 }
 0x18f   : > { %v1124_v58 = vmul.f32 %v3423_v8, %v4021_v23  ;;  %v1364_v63 = vmul.f32 %v3444_v41, %v4023_v47  ;;  %v1047_v33 = vadd.f32 %v1015_v50, %v982_v60  ;;  %v1231_v4 = vrot.slane %v1122_v1, 1 }
 0x190   : > { %v2647_v46 = vmax.f32 %v2615_v48, 0.0  ;;  %v1048_v43 = vadd.f32 %v1016_v12, %v983_v30  ;;  %v2648_v35 = vmax.f32 %v2616_v36, 0.0  ;;  %v1232_v0 = vrot.slane %v1123_v10, 1 }
 0x191   : > { %v1234_v52 = vrot.slane %v1124_v58, 1  ;;  %v1365_v3 = vmul.f32 %v3444_v41, %v3454_v45  ;;  %v1366_v59 = vmul.f32 %v3444_v41, %v4126_v44  ;;  %v1472_v53 = vrot.slane %v1364_v63, 1 }
 0x192   : > { %v2679_v24 = vmin.f32 %v2647_v46, 6.0  ;;  %v1605_v21 = vmul.f32 %v4982_v38, %v3446_v42  ;;  %v2680_v54 = vmin.f32 %v2648_v35, 6.0  ;;  %v1233_v13 = vsel %vm1200_vm4, %v1231_v4, %v1232_v0 }
 0x193   : > { %v1235_v28 = vsel %vm1200_vm4, %v1232_v0, %v1234_v52  ;;  %v1473_v9 = vrot.slane %v1365_v3, 1  ;;  %v1325_v62 = vadd.f32 %v1233_v13, %v1047_v33  ;;  %v1475_v50 = vrot.slane %v1366_v59, 1 }
 0x194   : > { %v1326_v31 = vadd.f32 %v1235_v28, %v1048_v43  ;;  %v1606_v12 = vmul.f32 %v4983_v19, %v3446_v42  ;;  %v2699_v48 = vpack.c.bf16 %v2680_v54, %v2679_v24  ;;  %v1607_v30 = vmul.f32 %v3446_v42, %v4275_v32 }
 0x195   : > { %v1474_v60 = vsel %vm1200_vm4, %v1472_v53, %v1473_v9  ;;  %v1713_v1 = vrot.slane %v1605_v21, 1  ;;  %v1476_v36 = vsel %vm1200_vm4, %v1473_v9, %v1475_v50  ;;  %v4301_v63 = vunpack.c.l.bf16 %v1835_v5 }
 0x196   : > { %v1566_v10 = vadd.f32 %v1474_v60, %v1325_v62  ;;  %v1714_v58 = vrot.slane %v1606_v12, 1  ;;  %3114 = vmatmul.msk.bf16.gmra.mxu3 %vm2723_vm6, %v2699_v48  ;;  %v1567_v46 = vadd.f32 %v1476_v36, %v1326_v31  ;;  %v1716_v33 = vrot.slane %v1607_v30, 1 }
 0x197   : > { %v1882_v43 = vmul.f32 %v3427_v15, %v4085_v49  ;;  %v1883_v4 = vmul.f32 %v3966_v25, %v3427_v15  ;;  %v1884_v0 = vmul.f32 %v3427_v15, %v4021_v23  ;;  %v2124_v52 = vmul.f32 %v3436_v27, %v4151_v39 }
 0x198   : > { %v1715_v35 = vsel %vm1200_vm4, %v1713_v1, %v1714_v58  ;;  %v2125_v3 = vmul.f32 %v3436_v27, %v3454_v45  ;;  %v1717_v24 = vsel %vm1200_vm4, %v1714_v58, %v1716_v33  ;;  %v2126_v25 = vmul.f32 %v3436_v27, %v4126_v44  ;;  %v1082_v33 = vld [vmem:[#allocation2 + $0xbc] sm:$0x1] }
 0x199   : > { %v1807_v59 = vadd.f32 %v1715_v35, %v1566_v10  ;;  %v1991_v53 = vrot.slane %v1882_v43, 2  ;;  %v1992_v21 = vrot.slane %v1883_v4, 2  ;;  %v1808_v49 = vadd.f32 %v1717_v24, %v1567_v46 }
 0x19a   : > { %v1994_v54 = vrot.slane %v1884_v0, 2  ;;  %v2232_v13 = vrot.slane %v2124_v52, 2  ;;  %v2233_v23 = vrot.slane %v2125_v3, 2  ;;  %v2365_v9 = vmul.f32 %v4029_v2, %v4301_v63 }
 0x19b   : > { %v1993_v28 = vsel %vm1960_vm5, %v1991_v53, %v1992_v21  ;;  %v2366_v5 = vmul.f32 %v4029_v2, %v4983_v19  ;;  %v2235_v50 = vrot.slane %v2126_v25, 2  ;;  %v2367_v12 = vmul.f32 %v4029_v2, %v4275_v32 }
 0x19c   : > { %v1995_v62 = vsel %vm1960_vm5, %v1992_v21, %v1994_v54  ;;  %v2085_v31 = vadd.f32 %v1993_v28, %v1807_v59  ;;  %v2234_v60 = vsel %vm1960_vm5, %v2232_v13, %v2233_v23  ;;  %v2473_v30 = vrot.slane %v2365_v9, 2  ;;  %v4984_v59 = vld [vmem:[#allocation9_spill] sm:$0xff]  ;;  %v4985_v54 = vld [vmem:[#allocation11_spill] sm:$0xff] }
 0x19d   : > { %v2086_v48 = vadd.f32 %v1995_v62, %v1808_v49  ;;  %v2474_v1 = vrot.slane %v2366_v5, 2  ;;  %v2236_v36 = vsel %vm1960_vm5, %v2233_v23, %v2235_v50  ;;  %v2476_v58 = vrot.slane %v2367_v12, 2 }
 0x19e   : > { %v2326_v10 = vadd.f32 %v2234_v60, %v2085_v31  ;;  %v931_v46 = vmul.f32 %v3429_v18, %v3930_v26  ;;  %v932_v35 = vmul.f32 %v3429_v18, %v3959_v55  ;;  %v964_v0 = vmul.f32 %v4056_v6, %v3438_v29 }
 0x19f   : > { %v2327_v43 = vadd.f32 %v2236_v36, %v2086_v48  ;;  %v2475_v4 = vsel %vm1960_vm5, %v2473_v30, %v2474_v1  ;;  %v2477_v52 = vsel %vm1960_vm5, %v2474_v1, %v2476_v58  ;;  %v965_v24 = vmul.f32 %v4058_v56, %v3438_v29 }
 0x1a0   : > { %v2567_v3 = vadd.f32 %v2475_v4, %v2326_v10  ;;  %v1029_v53 = vmul.f32 %v3441_v34, %v4984_v59  ;;  %v996_v49 = vadd.f32 %v964_v0, %v931_v46  ;;  %v1030_v25 = vmul.f32 %v3441_v34, %v4985_v54 }
 0x1a1   : > { %v2568_v21 = vadd.f32 %v2477_v52, %v2327_v43  ;;  %v4342_v13 = vunpack.c.l.bf16 %v1082_v33  ;;  %v997_v23 = vadd.f32 %v965_v24, %v932_v35  ;;  %v1143_v9 = vmul.f32 %v3423_v8, %v3930_v26  ;;  %v1842_v35 = vld [vmem:[#allocation2 + $0xb4] sm:$0xe] }
 0x1a2   : > { %v2603_v28 = vadd.f32 %v4065_v11, %v2567_v3  ;;  %v1144_v5 = vmul.f32 %v3423_v8, %v3959_v55  ;;  %v1061_v31 = vadd.f32 %v1029_v53, %v996_v49  ;;  %v1145_v50 = vmul.f32 %v3423_v8, %v3988_v14 }
 0x1a3   : > { %v2604_v62 = vadd.f32 %v4065_v11, %v2568_v21  ;;  %v1385_v12 = vmul.f32 %v4056_v6, %v3444_v41  ;;  %v1062_v60 = vadd.f32 %v1030_v25, %v997_v23  ;;  %v1266_v30 = vrot.slane %v1143_v9, 1 }
 0x1a4   : > { %v2635_v48 = vmax.f32 %v2603_v28, 0.0  ;;  %v1267_v1 = vrot.slane %v1144_v5, 1  ;;  %v1269_v10 = vrot.slane %v1145_v50, 1  ;;  %v1386_v26 = vmul.f32 %v4058_v56, %v3444_v41 }
 0x1a5   : > { %v2636_v36 = vmax.f32 %v2604_v62, 0.0  ;;  %v1387_v58 = vmul.f32 %v3444_v41, %v4193_v37  ;;  %v1507_v43 = vrot.slane %v1385_v12, 1  ;;  %v1626_v4 = vmul.f32 %v3446_v42, %v4984_v59 }
 0x1a6   : > { %v2667_v46 = vmin.f32 %v2635_v48, 6.0  ;;  %v1268_v33 = vsel %vm1200_vm4, %v1266_v30, %v1267_v1  ;;  %v1270_v52 = vsel %vm1200_vm4, %v1267_v1, %v1269_v10  ;;  %v1508_v24 = vrot.slane %v1386_v26, 1 }
 0x1a7   : > { %v2668_v0 = vmin.f32 %v2636_v36, 6.0  ;;  %v1339_v3 = vadd.f32 %v1268_v33, %v1061_v31  ;;  %v1340_v53 = vadd.f32 %v1270_v52, %v1062_v60  ;;  %v1510_v21 = vrot.slane %v1387_v58, 1 }
 0x1a8   : > { %v1627_v49 = vmul.f32 %v3446_v42, %v4985_v54  ;;  %v1628_v25 = vmul.f32 %v3446_v42, %v4342_v13  ;;  %v1509_v23 = vsel %vm1200_vm4, %v1507_v43, %v1508_v24  ;;  %v1748_v9 = vrot.slane %v1626_v4, 1 }
 0x1a9   : > { %v2693_v28 = vpack.c.bf16 %v2668_v0, %v2667_v46  ;;  %v4367_v5 = vunpack.c.l.bf16 %v1842_v35  ;;  %v1511_v62 = vsel %vm1200_vm4, %v1508_v24, %v1510_v21  ;;  %v1580_v50 = vadd.f32 %v1509_v23, %v1339_v3 }
 0x1aa   : > { %v1749_v12 = vrot.slane %v1627_v49, 1  ;;  %v1751_v31 = vrot.slane %v1628_v25, 1  ;;  %v1581_v48 = vadd.f32 %v1511_v62, %v1340_v53  ;;  %v1903_v60 = vmul.f32 %v3427_v15, %v4003_v20  ;;  %v2783_v53 = vpop.f32.mrf.mxu1 }
 0x1ab   : > { %3108 = vmatmul.msk.bf16.gmra.mxu1 %vm2723_vm6, %v2693_v28  ;;  %v1904_v30 = vmul.f32 %v3427_v15, %v3959_v55  ;;  %v1905_v1 = vmul.f32 %v3427_v15, %v3988_v14  ;;  %v2145_v26 = vmul.f32 %v3436_v27, %v4218_v17  ;;  %v2146_v58 = vmul.f32 %v4058_v56, %v3436_v27 }
 0x1ac   : > { %v1750_v36 = vsel %vm1200_vm4, %v1748_v9, %v1749_v12  ;;  %v1752_v10 = vsel %vm1200_vm4, %v1749_v12, %v1751_v31  ;;  %v2026_v43 = vrot.slane %v1903_v60, 2  ;;  %v2147_v55 = vmul.f32 %v3436_v27, %v4193_v37  ;;  %v3119_v12 = vld [vmem:[%s3328_s8 + $0x21] sm:$0xff] }
 0x1ad   : > { %v1821_v46 = vadd.f32 %v1750_v36, %v1580_v50  ;;  %v1822_v33 = vadd.f32 %v1752_v10, %v1581_v48  ;;  %v2027_v20 = vrot.slane %v1904_v30, 2  ;;  %v2029_v4 = vrot.slane %v1905_v1, 2  ;;  %v1076_v1 = vld [vmem:[#allocation2 + $0x74] sm:$0x1] }
 0x1ae   : > { %v2267_v14 = vrot.slane %v2145_v26, 2  ;;  %v2268_v35 = vrot.slane %v2146_v58, 2  ;;  %v2386_v52 = vmul.f32 %v4029_v2, %v4367_v5  ;;  %v2387_v3 = vmul.f32 %v4029_v2, %v4985_v54 }
 0x1af   : > { %v2028_v0 = vsel %vm1960_vm5, %v2026_v43, %v2027_v20  ;;  %v2388_v24 = vmul.f32 %v4029_v2, %v4342_v13  ;;  %v2030_v21 = vsel %vm1960_vm5, %v2027_v20, %v2029_v4  ;;  %v2270_v28 = vrot.slane %v2147_v55, 2  ;;  %v4986_v55 = vld [vmem:[#allocation5_spill] sm:$0xff] }
 0x1b0   : > { %v2099_v49 = vadd.f32 %v2028_v0, %v1821_v46  ;;  %v2269_v25 = vsel %vm1960_vm5, %v2267_v14, %v2268_v35  ;;  %v2100_v23 = vadd.f32 %v2030_v21, %v1822_v33  ;;  %v2508_v9 = vrot.slane %v2386_v52, 2 }
 0x1b1   : > { %v2509_v62 = vrot.slane %v2387_v3, 2  ;;  %v2511_v50 = vrot.slane %v2388_v24, 2  ;;  %v2271_v31 = vsel %vm1960_vm5, %v2268_v35, %v2270_v28  ;;  %v2784_v60 = vadd.f32 %v4237_v57, %v2783_v53  ;;  %v4987_v35 = vld [vmem:[#allocation6_spill] sm:$0xff] }
 0x1b2   : > { %v2340_v48 = vadd.f32 %v2269_v25, %v2099_v49  ;;  %v919_v30 = vmul.f32 %v3429_v18, %v4023_v47  ;;  %v2341_v36 = vadd.f32 %v2271_v31, %v2100_v23  ;;  %v920_v58 = vmul.f32 %v3429_v18, %v3454_v45 }
 0x1b3   : > { %v2510_v10 = vsel %vm1960_vm5, %v2508_v9, %v2509_v62  ;;  %v2512_v26 = vsel %vm1960_vm5, %v2509_v62, %v2511_v50  ;;  %v2895_v33 = vadd.f32 %v3119_v12, %v2784_v60  ;;  %v952_v43 = vmul.f32 %v4982_v38, %v3438_v29 }
 0x1b4   : > { %v2581_v46 = vadd.f32 %v2510_v10, %v2340_v48  ;;  %v953_v20 = vmul.f32 %v4983_v19, %v3438_v29  ;;  %v2582_v4 = vadd.f32 %v2512_v26, %v2341_v36  ;;  %v1017_v14 = vmul.f32 %v3441_v34, %v4986_v55 }
 0x1b5   : > { %v1018_v0 = vmul.f32 %v3441_v34, %v4987_v35  ;;  %v4411_v52 = vunpack.c.l.bf16 %v1076_v1  ;;  %2928 = vst.msk [vmem:[%s4257_s9 + $0x8] sm:$0xff] %vm2926_vm7, %v2895_v33  ;;  %v984_v24 = vadd.f32 %v952_v43, %v919_v30  ;;  %v1125_v21 = vmul.f32 %v3423_v8, %v4023_v47  ;;  %v1836_v43 = vld [vmem:[#allocation2 + $0x6c] sm:$0xe] }
 0x1b6   : > { %v2617_v3 = vadd.f32 %v4065_v11, %v2581_v46  ;;  %v985_v53 = vadd.f32 %v953_v20, %v920_v58  ;;  %v2618_v49 = vadd.f32 %v4065_v11, %v2582_v4  ;;  %v1126_v25 = vmul.f32 %v3423_v8, %v3454_v45 }
 0x1b7   : > { %v1127_v28 = vmul.f32 %v3423_v8, %v4126_v44  ;;  %v1367_v23 = vmul.f32 %v4982_v38, %v3444_v41  ;;  %v1049_v62 = vadd.f32 %v1017_v14, %v984_v24  ;;  %v1236_v12 = vrot.slane %v1125_v21, 1 }
 0x1b8   : > { %v2649_v9 = vmax.f32 %v2617_v3, 0.0  ;;  %v1050_v50 = vadd.f32 %v1018_v0, %v985_v53  ;;  %v2650_v31 = vmax.f32 %v2618_v49, 0.0  ;;  %v1237_v48 = vrot.slane %v1126_v25, 1 }
 0x1b9   : > { %v1239_v60 = vrot.slane %v1127_v28, 1  ;;  %v1368_v47 = vmul.f32 %v4983_v19, %v3444_v41  ;;  %v1369_v1 = vmul.f32 %v3444_v41, %v4275_v32  ;;  %v1477_v36 = vrot.slane %v1367_v23, 1 }
 0x1ba   : > { %v2681_v30 = vmin.f32 %v2649_v9, 6.0  ;;  %v1608_v10 = vmul.f32 %v3446_v42, %v4986_v55  ;;  %v2682_v26 = vmin.f32 %v2650_v31, 6.0  ;;  %v1238_v58 = vsel %vm1200_vm4, %v1236_v12, %v1237_v48 }
 0x1bb   : > { %v1240_v46 = vsel %vm1200_vm4, %v1237_v48, %v1239_v60  ;;  %v1478_v33 = vrot.slane %v1368_v47, 1  ;;  %v1327_v20 = vadd.f32 %v1238_v58, %v1049_v62  ;;  %v1480_v14 = vrot.slane %v1369_v1, 1 }
 0x1bc   : > { %v1328_v4 = vadd.f32 %v1240_v46, %v1050_v50  ;;  %v1609_v0 = vmul.f32 %v3446_v42, %v4987_v35  ;;  %v2700_v3 = vpack.c.bf16 %v2682_v26, %v2681_v30  ;;  %v1610_v53 = vmul.f32 %v3446_v42, %v4411_v52 }
 0x1bd   : > { %v1479_v24 = vsel %vm1200_vm4, %v1477_v36, %v1478_v33  ;;  %v1718_v21 = vrot.slane %v1608_v10, 1  ;;  %v1481_v49 = vsel %vm1200_vm4, %v1478_v33, %v1480_v14  ;;  %v4439_v23 = vunpack.c.l.bf16 %v1836_v43 }
 0x1be   : > { %v1568_v25 = vadd.f32 %v1479_v24, %v1327_v20  ;;  %v1719_v28 = vrot.slane %v1609_v0, 1  ;;  %3115 = vmatmul.msk.bf16.gmra.mxu3 %vm2723_vm6, %v2700_v3  ;;  %v1569_v9 = vadd.f32 %v1481_v49, %v1328_v4  ;;  %v1721_v62 = vrot.slane %v1610_v53, 1  ;;  %v3199_v20 = vld [vmem:[#allocation2 + $0xc0] sm:$0xff]  }
 0x1bf   : > { %v1885_v50 = vmul.f32 %v3427_v15, %v4151_v39  ;;  %v1886_v12 = vmul.f32 %v3427_v15, %v3454_v45  ;;  %v1887_v48 = vmul.f32 %v3427_v15, %v4126_v44  ;;  %v2127_v60 = vmul.f32 %v3436_v27, %v4301_v63 }
 0x1c0   : > { %v1720_v31 = vsel %vm1200_vm4, %v1718_v21, %v1719_v28  ;;  %v2128_v47 = vmul.f32 %v4983_v19, %v3436_v27  ;;  %v1722_v30 = vsel %vm1200_vm4, %v1719_v28, %v1721_v62  ;;  %v2129_v45 = vmul.f32 %v3436_v27, %v4275_v32 }
 0x1c1   : > { %v1809_v1 = vadd.f32 %v1720_v31, %v1568_v25  ;;  %v1996_v36 = vrot.slane %v1885_v50, 2  ;;  %v1997_v10 = vrot.slane %v1886_v12, 2  ;;  %v1810_v39 = vadd.f32 %v1722_v30, %v1569_v9 }
 0x1c2   : > { %v1999_v26 = vrot.slane %v1887_v48, 2  ;;  %v2237_v58 = vrot.slane %v2127_v60, 2  ;;  %v2238_v44 = vrot.slane %v2128_v47, 2  ;;  %v2368_v33 = vmul.f32 %v4029_v2, %v4439_v23 }
 0x1c3   : > { %v1998_v46 = vsel %vm1960_vm5, %v1996_v36, %v1997_v10  ;;  %v2369_v43 = vmul.f32 %v4029_v2, %v4987_v35  ;;  %v2240_v0 = vrot.slane %v2129_v45, 2  ;;  %v2370_v3 = vmul.f32 %v4029_v2, %v4411_v52  ;;  %v1083_v2 = vld [vmem:[#allocation2 + $0xc8] sm:$0x1] }
 0x1c4   : > { %v2000_v4 = vsel %vm1960_vm5, %v1997_v10, %v1999_v26  ;;  %v2087_v14 = vadd.f32 %v1998_v46, %v1809_v1  ;;  %v2239_v53 = vsel %vm1960_vm5, %v2237_v58, %v2238_v44  ;;  %v2478_v21 = vrot.slane %v2368_v33, 2 }
 0x1c5   : > { %v2088_v24 = vadd.f32 %v2000_v4, %v1810_v39  ;;  %v2479_v49 = vrot.slane %v2369_v43, 2  ;;  %v2241_v25 = vsel %vm1960_vm5, %v2238_v44, %v2240_v0  ;;  %v2481_v9 = vrot.slane %v2370_v3, 2 }
 0x1c6   : > { %v2328_v28 = vadd.f32 %v2239_v53, %v2087_v14  ;;  %v4466_v62 = vunpack.c.l.bf16 %v3199_v20  ;;  %v4469_v31 = vunpack.c.h.bf16 %v3199_v20  ;;  %v933_v48 = vmul.f32 %v4056_v6, %v3429_v18 }
 0x1c7   : > { %v2329_v50 = vadd.f32 %v2241_v25, %v2088_v24  ;;  %v2480_v12 = vsel %vm1960_vm5, %v2478_v21, %v2479_v49  ;;  %v2482_v60 = vsel %vm1960_vm5, %v2479_v49, %v2481_v9  ;;  %v934_v30 = vmul.f32 %v4058_v56, %v3429_v18 }
 0x1c8   : > { %v2569_v47 = vadd.f32 %v2480_v12, %v2328_v28  ;;  %v966_v1 = vmul.f32 %v3438_v29, %v4984_v59  ;;  %v967_v10 = vmul.f32 %v3438_v29, %v4985_v54  ;;  %v1031_v39 = vmul.f32 %v4466_v62, %v3441_v34 }
 0x1c9   : > { %v2570_v36 = vadd.f32 %v2482_v60, %v2329_v50  ;;  %v1032_v26 = vmul.f32 %v4469_v31, %v3441_v34  ;;  %v4485_v46 = vunpack.c.l.bf16 %v1083_v2  ;;  %v1146_v44 = vmul.f32 %v4056_v6, %v3423_v8  ;;  %v2786_v50 = vpop.f32.mrf.mxu1 }
 0x1ca   : > { %v2605_v45 = vadd.f32 %v4065_v11, %v2569_v47  ;;  %v998_v58 = vadd.f32 %v966_v1, %v933_v48  ;;  %v999_v43 = vadd.f32 %v967_v10, %v934_v30  ;;  %v1147_v20 = vmul.f32 %v4058_v56, %v3423_v8  ;;  %v4504_v47 = vld [vmem:[#allocation2 + $0xc0] sm:$0xe] }
 0x1cb   : > { %v2606_v33 = vadd.f32 %v4065_v11, %v2570_v36  ;;  %v1148_v4 = vmul.f32 %v3423_v8, %v4193_v37  ;;  %v1271_v3 = vrot.slane %v1146_v44, 1  ;;  %v1388_v24 = vmul.f32 %v3444_v41, %v4984_v59 }
 0x1cc   : > { %v2637_v14 = vmax.f32 %v2605_v45, 0.0  ;;  %v1063_v0 = vadd.f32 %v1031_v39, %v998_v58  ;;  %v1064_v21 = vadd.f32 %v1032_v26, %v999_v43  ;;  %v1272_v49 = vrot.slane %v1147_v20, 1 }
 0x1cd   : > { %v2638_v53 = vmax.f32 %v2606_v33, 0.0  ;;  %v1274_v25 = vrot.slane %v1148_v4, 1  ;;  %v1389_v11 = vmul.f32 %v3444_v41, %v4985_v54  ;;  %v1390_v28 = vmul.f32 %v3444_v41, %v4342_v13 }
 0x1ce   : > { %v2669_v6 = vmin.f32 %v2637_v14, 6.0  ;;  %v1512_v9 = vrot.slane %v1388_v24, 1  ;;  %v1273_v48 = vsel %vm1200_vm4, %v1271_v3, %v1272_v49  ;;  %v1629_v60 = vmul.f32 %v4466_v62, %v3446_v42 }
 0x1cf   : > { %v2670_v12 = vmin.f32 %v2638_v53, 6.0  ;;  %v1275_v2 = vsel %vm1200_vm4, %v1272_v49, %v1274_v25  ;;  %v1341_v30 = vadd.f32 %v1273_v48, %v1063_v0  ;;  %v1513_v36 = vrot.slane %v1389_v11, 1 }
 0x1d0   : > { %v1342_v1 = vadd.f32 %v1275_v2, %v1064_v21  ;;  %v1515_v10 = vrot.slane %v1390_v28, 1  ;;  %v1630_v26 = vmul.f32 %v4469_v31, %v3446_v42  ;;  %v1631_v45 = vmul.f32 %v3446_v42, %v4485_v46 }
 0x1d1   : > { %v2694_v39 = vpack.c.bf16 %v2670_v12, %v2669_v6  ;;  %v1753_v58 = vrot.slane %v1629_v60, 1  ;;  %v1514_v44 = vsel %vm1200_vm4, %v1512_v9, %v1513_v36  ;;  %v1861_v43 = vunpack.c.l.bf16 %v4504_v47  ;;  %v4531_v60 = vld [vmem:[%s4953_s2 + $0x8] ss:$0 sm:$0xff] }
 0x1d2   : > { %v1516_v33 = vsel %vm1200_vm4, %v1513_v36, %v1515_v10  ;;  %v1906_v20 = vmul.f32 %v3427_v15, %v4218_v17  ;;  %v1582_v4 = vadd.f32 %v1514_v44, %v1341_v30  ;;  %v1754_v0 = vrot.slane %v1630_v26, 1  ;;  %v2788_v26 = vpop.f32.mrf.mxu1 }
 0x1d3   : > { %3109 = vmatmul.msk.bf16.gmra.mxu1 %vm2723_vm6, %v2694_v39  ;;  %v1583_v14 = vadd.f32 %v1516_v33, %v1342_v1  ;;  %v1756_v3 = vrot.slane %v1631_v45, 1  ;;  %v1907_v24 = vmul.f32 %v4058_v56, %v3427_v15  ;;  %v1908_v53 = vmul.f32 %v3427_v15, %v4193_v37 }
 0x1d4   : > { %v2031_v21 = vrot.slane %v1906_v20, 2  ;;  %v2148_v49 = vmul.f32 %v3436_v27, %v4367_v5  ;;  %v1755_v25 = vsel %vm1200_vm4, %v1753_v58, %v1754_v0  ;;  %v2149_v6 = vmul.f32 %v3436_v27, %v4985_v54  ;;  %v3120_v20 = vld [vmem:[%s3328_s8 + $0x31] sm:$0xff] }
 0x1d5   : > { %v1757_v17 = vsel %vm1200_vm4, %v1754_v0, %v1756_v3  ;;  %v2150_v11 = vmul.f32 %v3436_v27, %v4342_v13  ;;  %v1823_v28 = vadd.f32 %v1755_v25, %v1582_v4  ;;  %v2032_v56 = vrot.slane %v1907_v24, 2  ;;  %v3121_v24 = vld [vmem:[%s3328_s8 + $0x39] sm:$0xff] }
 0x1d6   : > { %v1824_v9 = vadd.f32 %v1757_v17, %v1583_v14  ;;  %v2034_v12 = vrot.slane %v1908_v53, 2  ;;  %v2272_v37 = vrot.slane %v2148_v49, 2  ;;  %v2273_v48 = vrot.slane %v2149_v6, 2  ;;  %v1077_v17 = vld [vmem:[#allocation2 + $0x80] sm:$0x1] }
 0x1d7   : > { %v2275_v2 = vrot.slane %v2150_v11, 2  ;;  %v2389_v30 = vmul.f32 %v4531_v60, %v1861_v43  ;;  %v2033_v1 = vsel %vm1960_vm5, %v2031_v21, %v2032_v56  ;;  %v2390_v10 = vmul.f32 %v4531_v60, %v4469_v31 }
 0x1d8   : > { %v2035_v36 = vsel %vm1960_vm5, %v2032_v56, %v2034_v12  ;;  %v2391_v39 = vmul.f32 %v4531_v60, %v4485_v46  ;;  %v2101_v45 = vadd.f32 %v2033_v1, %v1823_v28  ;;  %v2274_v44 = vsel %vm1960_vm5, %v2272_v37, %v2273_v48 }
 0x1d9   : > { %v2102_v58 = vadd.f32 %v2035_v36, %v1824_v9  ;;  %v2276_v33 = vsel %vm1960_vm5, %v2273_v48, %v2275_v2  ;;  %v2513_v4 = vrot.slane %v2389_v30, 2  ;;  %v2514_v14 = vrot.slane %v2390_v10, 2  ;;  %v4988_v48 = vld [vmem:[#allocation7_spill] sm:$0xff]  ;;  %v4989_v30 = vld [vmem:[#allocation8_spill] sm:$0xff] }
 0x1da   : > { %v2516_v0 = vrot.slane %v2391_v39, 2  ;;  %v2787_v3 = vadd.f32 %v4237_v57, %v2786_v50  ;;  %v2342_v53 = vadd.f32 %v2274_v44, %v2101_v45  ;;  %v2789_v49 = vadd.f32 %v4237_v57, %v2788_v26  ;;  %v4569_v10 = vld [vmem:[%s4954_s3] ss:$0 sm:$0xff] }
 0x1db   : > { %v2343_v21 = vadd.f32 %v2276_v33, %v2102_v58  ;;  %v921_v25 = vmul.f32 %v4982_v38, %v3429_v18  ;;  %v2515_v6 = vsel %vm1960_vm5, %v2513_v4, %v2514_v14  ;;  %v922_v9 = vmul.f32 %v4983_v19, %v3429_v18 }
 0x1dc   : > { %v2517_v11 = vsel %vm1960_vm5, %v2514_v14, %v2516_v0  ;;  %v2896_v28 = vadd.f32 %v3120_v20, %v2787_v3  ;;  %v2583_v56 = vadd.f32 %v2515_v6, %v2342_v53  ;;  %v2897_v12 = vadd.f32 %v3121_v24, %v2789_v49 }
 0x1dd   : > { %v2584_v50 = vadd.f32 %v2517_v11, %v2343_v21  ;;  %v954_v37 = vmul.f32 %v3438_v29, %v4986_v55  ;;  %v955_v57 = vmul.f32 %v3438_v29, %v4987_v35  ;;  %v1019_v2 = vmul.f32 %v4988_v48, %v3441_v34 }
 0x1de   : > { %2929 = vst.msk [vmem:[%s4257_s9 + $0x10] sm:$0xff] %vm2926_vm7, %v2896_v28  ;;  %v1020_v1 = vmul.f32 %v4989_v30, %v3441_v34  ;;  %v4564_v36 = vunpack.c.l.bf16 %v1077_v17  ;;  %v2619_v39 = vadd.f32 %v4569_v10, %v2583_v56  ;;  %v1128_v58 = vmul.f32 %v4982_v38, %v3423_v8 }
 0x1df   : > { %v2620_v26 = vadd.f32 %v4569_v10, %v2584_v50  ;;  %2930 = vst.msk [vmem:[%s4257_s9 + $0x18] sm:$0xff] %vm2926_vm7, %v2897_v12  ;;  %v986_v45 = vadd.f32 %v954_v37, %v921_v25  ;;  %v987_v44 = vadd.f32 %v955_v57, %v922_v9  ;;  %v1129_v33 = vmul.f32 %v4983_v19, %v3423_v8  ;;  %v1837_v12 = vld [vmem:[#allocation2 + $0x78] sm:$0xe] }
 0x1e0   : > { %v1130_v20 = vmul.f32 %v3423_v8, %v4275_v32  ;;  %v1370_v4 = vmul.f32 %v3444_v41, %v4986_v55  ;;  %v2651_v14 = vmax.f32 %v2619_v39, 0.0  ;;  %v1241_v24 = vrot.slane %v1128_v58, 1 }
 0x1e1   : > { %v2652_v0 = vmax.f32 %v2620_v26, 0.0  ;;  %v1051_v3 = vadd.f32 %v1019_v2, %v986_v45  ;;  %v1052_v53 = vadd.f32 %v1020_v1, %v987_v44  ;;  %v1242_v21 = vrot.slane %v1129_v33, 1 }
 0x1e2   : > { %v1244_v49 = vrot.slane %v1130_v20, 1  ;;  %v1371_v38 = vmul.f32 %v3444_v41, %v4987_v35  ;;  %v2683_v25 = vmin.f32 %v2651_v14, 6.0  ;;  %v1372_v6 = vmul.f32 %v3444_v41, %v4411_v52 }
 0x1e3   : > { %v2684_v17 = vmin.f32 %v2652_v0, 6.0  ;;  %v1482_v11 = vrot.slane %v1370_v4, 1  ;;  %v1243_v28 = vsel %vm1200_vm4, %v1241_v24, %v1242_v21  ;;  %v1611_v50 = vmul.f32 %v4988_v48, %v3446_v42 }
 0x1e4   : > { %v1245_v9 = vsel %vm1200_vm4, %v1242_v21, %v1244_v49  ;;  %v1483_v56 = vrot.slane %v1371_v38, 1  ;;  %v1329_v57 = vadd.f32 %v1243_v28, %v1051_v3  ;;  %v1485_v1 = vrot.slane %v1372_v6, 1 }
 0x1e5   : > { %v2701_v37 = vpack.c.bf16 %v2684_v17, %v2683_v25  ;;  %v1330_v2 = vadd.f32 %v1245_v9, %v1052_v53  ;;  %v1612_v26 = vmul.f32 %v4989_v30, %v3446_v42  ;;  %v1613_v45 = vmul.f32 %v3446_v42, %v4564_v36 }
 0x1e6   : > { %v1484_v39 = vsel %vm1200_vm4, %v1482_v11, %v1483_v56  ;;  %v1723_v58 = vrot.slane %v1611_v50, 1  ;;  %v1486_v44 = vsel %vm1200_vm4, %v1483_v56, %v1485_v1  ;;  %v4598_v20 = vunpack.c.l.bf16 %v1837_v12 }
 0x1e7   : > { %3116 = vmatmul.msk.bf16.gmra.mxu3 %vm2723_vm6, %v2701_v37  ;;  %v1570_v33 = vadd.f32 %v1484_v39, %v1329_v57  ;;  %v1888_v4 = vmul.f32 %v3427_v15, %v4301_v63  ;;  %v1571_v14 = vadd.f32 %v1486_v44, %v1330_v2  ;;  %v1724_v0 = vrot.slane %v1612_v26, 1  ;;  %v866_v37 = vld [vmem:[#allocation2 + $0xcc] sm:$0xff]  }
 0x1e8   : > { %v1726_v3 = vrot.slane %v1613_v45, 1  ;;  %v1889_v24 = vmul.f32 %v4983_v19, %v3427_v15  ;;  %v1890_v53 = vmul.f32 %v3427_v15, %v4275_v32  ;;  %v2130_v49 = vmul.f32 %v3436_v27, %v4439_v23 }
 0x1e9   : > { %v2001_v21 = vrot.slane %v1888_v4, 2  ;;  %v2131_v38 = vmul.f32 %v3436_v27, %v4987_v35  ;;  %v1725_v25 = vsel %vm1200_vm4, %v1723_v58, %v1724_v0  ;;  %v2132_v6 = vmul.f32 %v3436_v27, %v4411_v52 }
 0x1ea   : > { %v1727_v63 = vsel %vm1200_vm4, %v1724_v0, %v1726_v3  ;;  %v2002_v17 = vrot.slane %v1889_v24, 2  ;;  %v1811_v11 = vadd.f32 %v1725_v25, %v1570_v33  ;;  %v2004_v28 = vrot.slane %v1890_v53, 2 }
 0x1eb   : > { %v1812_v19 = vadd.f32 %v1727_v63, %v1571_v14  ;;  %v2242_v9 = vrot.slane %v2130_v49, 2  ;;  %v2243_v56 = vrot.slane %v2131_v38, 2  ;;  %v2245_v50 = vrot.slane %v2132_v6, 2  ;;  %v4630_v49 = vld [vmem:[#allocation2 + $0xd4] sm:$0x1] }
 0x1ec   : > { %v2003_v32 = vsel %vm1960_vm5, %v2001_v21, %v2002_v17  ;;  %v2371_v12 = vmul.f32 %v4531_v60, %v4598_v20  ;;  %v2005_v57 = vsel %vm1960_vm5, %v2002_v17, %v2004_v28  ;;  %v2372_v1 = vmul.f32 %v4531_v60, %v4989_v30 }
 0x1ed   : > { %v2089_v2 = vadd.f32 %v2003_v32, %v1811_v11  ;;  %v2373_v39 = vmul.f32 %v4531_v60, %v4564_v36  ;;  %v2090_v26 = vadd.f32 %v2005_v57, %v1812_v19  ;;  %v2244_v45 = vsel %vm1960_vm5, %v2242_v9, %v2243_v56 }
 0x1ee   : > { %v2246_v58 = vsel %vm1960_vm5, %v2243_v56, %v2245_v50  ;;  %v2483_v44 = vrot.slane %v2371_v12, 2  ;;  %v2484_v4 = vrot.slane %v2372_v1, 2  ;;  %v902_v0 = vunpack.c.l.bf16 %v866_v37 }
 0x1ef   : > { %v2330_v33 = vadd.f32 %v2244_v45, %v2089_v2  ;;  %v2486_v14 = vrot.slane %v2373_v39, 2  ;;  %v2331_v3 = vadd.f32 %v2246_v58, %v2090_v26  ;;  %v4624_v24 = vunpack.c.h.bf16 %v866_v37 }
 0x1f0   : > { %v935_v53 = vmul.f32 %v3429_v18, %v4984_v59  ;;  %v936_v21 = vmul.f32 %v3429_v18, %v4985_v54  ;;  %v2485_v38 = vsel %vm1960_vm5, %v2483_v44, %v2484_v4  ;;  %v968_v63 = vmul.f32 %v4466_v62, %v3438_v29 }
 0x1f1   : > { %v2487_v25 = vsel %vm1960_vm5, %v2484_v4, %v2486_v14  ;;  %v969_v17 = vmul.f32 %v4469_v31, %v3438_v29  ;;  %v2571_v6 = vadd.f32 %v2485_v38, %v2330_v33  ;;  %v1033_v19 = vmul.f32 %v3441_v34, %v902_v0 }
 0x1f2   : > { %v2572_v11 = vadd.f32 %v2487_v25, %v2331_v3  ;;  %v1034_v28 = vmul.f32 %v3441_v34, %v4624_v24  ;;  %v1000_v9 = vadd.f32 %v968_v63, %v935_v53  ;;  %v1102_v56 = vunpack.c.l.bf16 %v4630_v49 }
 0x1f3   : > { %v1001_v32 = vadd.f32 %v969_v17, %v936_v21  ;;  %v1149_v50 = vmul.f32 %v3423_v8, %v4984_v59  ;;  %v2607_v12 = vadd.f32 %v4569_v10, %v2571_v6  ;;  %v1150_v57 = vmul.f32 %v3423_v8, %v4985_v54 }
 0x1f4   : > { %v2608_v37 = vadd.f32 %v4569_v10, %v2572_v11  ;;  %v1151_v2 = vmul.f32 %v3423_v8, %v4342_v13  ;;  %v1065_v1 = vadd.f32 %v1033_v19, %v1000_v9  ;;  %v1391_v45 = vmul.f32 %v4466_v62, %v3444_v41  ;;  %v1844_v62 = vld [vmem:[#allocation2 + $0xcc] sm:$0xe] }
 0x1f5   : > { %v1066_v39 = vadd.f32 %v1034_v28, %v1001_v32  ;;  %v1276_v26 = vrot.slane %v1149_v50, 1  ;;  %v2639_v58 = vmax.f32 %v2607_v12, 0.0  ;;  %v1277_v33 = vrot.slane %v1150_v57, 1 }
 0x1f6   : > { %v2640_v44 = vmax.f32 %v2608_v37, 0.0  ;;  %v1279_v59 = vrot.slane %v1151_v2, 1  ;;  %v1392_v4 = vmul.f32 %v4469_v31, %v3444_v41  ;;  %v1393_v14 = vmul.f32 %v3444_v41, %v4485_v46 }
 0x1f7   : > { %v1517_v3 = vrot.slane %v1391_v45, 1  ;;  %v1632_v53 = vmul.f32 %v3446_v42, %v902_v0  ;;  %v2671_v21 = vmin.f32 %v2639_v58, 6.0  ;;  %v1278_v38 = vsel %vm1200_vm4, %v1276_v26, %v1277_v33 }
 0x1f8   : > { %v2672_v49 = vmin.f32 %v2640_v44, 6.0  ;;  %v1280_v25 = vsel %vm1200_vm4, %v1277_v33, %v1279_v59  ;;  %v1343_v63 = vadd.f32 %v1278_v38, %v1065_v1  ;;  %v1518_v6 = vrot.slane %v1392_v4, 1 }
 0x1f9   : > { %v1344_v17 = vadd.f32 %v1280_v25, %v1066_v39  ;;  %v1520_v11 = vrot.slane %v1393_v14, 1  ;;  %v1633_v28 = vmul.f32 %v3446_v42, %v4624_v24  ;;  %v1634_v9 = vmul.f32 %v3446_v42, %v1102_v56 }
 0x1fa   : > { %v2695_v19 = vpack.c.bf16 %v2672_v49, %v2671_v21  ;;  %v1758_v32 = vrot.slane %v1632_v53, 1  ;;  %v1519_v0 = vsel %vm1200_vm4, %v1517_v3, %v1518_v6  ;;  %v1862_v12 = vunpack.c.l.bf16 %v1844_v62  ;;  %v2791_v49 = vpop.f32.mrf.mxu1 }
 0x1fb   : > { %v1521_v50 = vsel %vm1200_vm4, %v1518_v6, %v1520_v11  ;;  %v1909_v37 = vmul.f32 %v3427_v15, %v4367_v5  ;;  %v1584_v57 = vadd.f32 %v1519_v0, %v1343_v63  ;;  %v1759_v1 = vrot.slane %v1633_v28, 1  ;;  %v3122_v11 = vld [vmem:[%s3328_s8 + $0x49] sm:$0xff] }
 0x1fc   : > { %3110 = vmatmul.msk.bf16.gmra.mxu1 %vm2723_vm6, %v2695_v19  ;;  %v1585_v2 = vadd.f32 %v1521_v50, %v1344_v17  ;;  %v1761_v39 = vrot.slane %v1634_v9, 1  ;;  %v1910_v26 = vmul.f32 %v3427_v15, %v4985_v54  ;;  %v1911_v45 = vmul.f32 %v3427_v15, %v4342_v13 }
 0x1fd   : > { %v2036_v58 = vrot.slane %v1909_v37, 2  ;;  %v2151_v44 = vmul.f32 %v3436_v27, %v1861_v43  ;;  %v1760_v33 = vsel %vm1200_vm4, %v1758_v32, %v1759_v1  ;;  %v2152_v59 = vmul.f32 %v4469_v31, %v3436_v27  ;;  %v4692_v32 = vld [vmem:[%s4956_s5] ss:$0 sm:$0xff] }
 0x1fe   : > { %v1762_v5 = vsel %vm1200_vm4, %v1759_v1, %v1761_v39  ;;  %v2153_v4 = vmul.f32 %v3436_v27, %v4485_v46  ;;  %v1825_v14 = vadd.f32 %v1760_v33, %v1584_v57  ;;  %v2037_v3 = vrot.slane %v1910_v26, 2 }
 0x1ff   : > { %v1826_v54 = vadd.f32 %v1762_v5, %v1585_v2  ;;  %v2039_v13 = vrot.slane %v1911_v45, 2  ;;  %v2277_v53 = vrot.slane %v2151_v44, 2  ;;  %v2278_v21 = vrot.slane %v2152_v59, 2  ;;  %v4991_v5 = vld [vmem:[#allocation12_spill] sm:$0xff] }
 0x200   : > { %v2280_v47 = vrot.slane %v2153_v4, 2  ;;  %v2392_v43 = vmul.f32 %v4531_v60, %v1862_v12  ;;  %v2038_v38 = vsel %vm1960_vm5, %v2036_v58, %v2037_v3  ;;  %v2393_v31 = vmul.f32 %v4531_v60, %v4624_v24  ;;  %v4990_v58 = vld [vmem:[#allocation10_spill] sm:$0xff] }
 0x201   : > { %v2040_v25 = vsel %vm1960_vm5, %v2037_v3, %v2039_v13  ;;  %v2394_v46 = vmul.f32 %v4531_v60, %v1102_v56  ;;  %v2103_v62 = vadd.f32 %v2038_v38, %v1825_v14  ;;  %v2279_v17 = vsel %vm1960_vm5, %v2277_v53, %v2278_v21 }
 0x202   : > { %v2104_v63 = vadd.f32 %v2040_v25, %v1826_v54  ;;  %v2281_v6 = vsel %vm1960_vm5, %v2278_v21, %v2280_v47  ;;  %v2518_v19 = vrot.slane %v2392_v43, 2  ;;  %v2519_v28 = vrot.slane %v2393_v31, 2 }
 0x203   : > { %v2521_v9 = vrot.slane %v2394_v46, 2  ;;  %v2792_v24 = vadd.f32 %v4692_v32, %v2791_v49  ;;  %v2344_v0 = vadd.f32 %v2279_v17, %v2103_v62  ;;  %v923_v50 = vmul.f32 %v3429_v18, %v4986_v55 }
 0x204   : > { %v2345_v56 = vadd.f32 %v2281_v6, %v2104_v63  ;;  %v924_v12 = vmul.f32 %v3429_v18, %v4987_v35  ;;  %v2520_v37 = vsel %vm1960_vm5, %v2518_v19, %v2519_v28  ;;  %v956_v1 = vmul.f32 %v4988_v48, %v3438_v29 }
 0x205   : > { %v2522_v57 = vsel %vm1960_vm5, %v2519_v28, %v2521_v9  ;;  %v2898_v2 = vadd.f32 %v3122_v11, %v2792_v24  ;;  %v2585_v39 = vadd.f32 %v2520_v37, %v2344_v0  ;;  %v957_v45 = vmul.f32 %v4989_v30, %v3438_v29 }
 0x206   : > { %v2586_v26 = vadd.f32 %v2522_v57, %v2345_v56  ;;  %v1021_v44 = vmul.f32 %v3441_v34, %v4990_v58  ;;  %v988_v33 = vadd.f32 %v956_v1, %v923_v50  ;;  %v1022_v59 = vmul.f32 %v3441_v34, %v4991_v5 }
 0x207   : > { %2931 = vst.msk [vmem:[%s4257_s9 + $0x20] sm:$0xff] %vm2926_vm7, %v2898_v2  ;;  %v1131_v4 = vmul.f32 %v3423_v8, %v4986_v55  ;;  %v1132_v14 = vmul.f32 %v3423_v8, %v4987_v35  ;;  %v2621_v54 = vadd.f32 %v4569_v10, %v2585_v39  ;;  %v989_v13 = vadd.f32 %v957_v45, %v924_v12 }
 0x208   : > { %v2622_v3 = vadd.f32 %v4569_v10, %v2586_v26  ;;  %v1133_v53 = vmul.f32 %v3423_v8, %v4411_v52  ;;  %v1053_v21 = vadd.f32 %v1021_v44, %v988_v33  ;;  %v1373_v49 = vmul.f32 %v4988_v48, %v3444_v41 }
 0x209   : > { %v1246_v47 = vrot.slane %v1131_v4, 1  ;;  %v1247_v43 = vrot.slane %v1132_v14, 1  ;;  %v2653_v38 = vmax.f32 %v2621_v54, 0.0  ;;  %v1054_v55 = vadd.f32 %v1022_v59, %v989_v13  ;;  %v2793_v4 = vpop.f32.mrf.mxu1 }
 0x20a   : > { %v2654_v25 = vmax.f32 %v2622_v3, 0.0  ;;  %v1249_v31 = vrot.slane %v1133_v53, 1  ;;  %v1374_v62 = vmul.f32 %v4989_v30, %v3444_v41  ;;  %v1375_v63 = vmul.f32 %v3444_v41, %v4564_v36 }
 0x20b   : > { %v1248_v46 = vsel %vm1200_vm4, %v1246_v47, %v1247_v43  ;;  %v1487_v17 = vrot.slane %v1373_v49, 1  ;;  %v2685_v6 = vmin.f32 %v2653_v38, 6.0  ;;  %v1614_v56 = vmul.f32 %v3446_v42, %v4990_v58 }
 0x20c   : > { %v2686_v11 = vmin.f32 %v2654_v25, 6.0  ;;  %v1250_v19 = vsel %vm1200_vm4, %v1247_v43, %v1249_v31  ;;  %v1331_v28 = vadd.f32 %v1248_v46, %v1053_v21  ;;  %v1488_v24 = vrot.slane %v1374_v62, 1 }
 0x20d   : > { %v1332_v9 = vadd.f32 %v1250_v19, %v1054_v55  ;;  %v1490_v0 = vrot.slane %v1375_v63, 1  ;;  %v1615_v12 = vmul.f32 %v3446_v42, %v4991_v5  ;;  %v1616_v37 = vmul.f32 %v3446_v42, %v3782_v61 }
 0x20e   : > { %v2702_v50 = vpack.c.bf16 %v2686_v11, %v2685_v6  ;;  %v1891_v57 = vmul.f32 %v3427_v15, %v4439_v23  ;;  %v1489_v2 = vsel %vm1200_vm4, %v1487_v17, %v1488_v24  ;;  %v1728_v39 = vrot.slane %v1614_v56, 1 }
 0x20f   : > { %v1491_v1 = vsel %vm1200_vm4, %v1488_v24, %v1490_v0  ;;  %v1892_v26 = vmul.f32 %v3427_v15, %v4987_v35  ;;  %v1572_v45 = vadd.f32 %v1489_v2, %v1331_v28  ;;  %v1729_v33 = vrot.slane %v1615_v12, 1 }
 0x210   : > { %3117 = vmatmul.msk.bf16.gmra.mxu3 %vm2723_vm6, %v2702_v50  ;;  %v1573_v44 = vadd.f32 %v1491_v1, %v1332_v9  ;;  %v1731_v59 = vrot.slane %v1616_v37, 1  ;;  %v1893_v14 = vmul.f32 %v3427_v15, %v4411_v52  ;;  %v2006_v54 = vrot.slane %v1891_v57, 2  ;;  %v3123_v9 = vld [vmem:[%s3328_s8 + $0x51] sm:$0xff] }
 0x211   : > { %v2007_v23 = vrot.slane %v1892_v26, 2  ;;  %v2133_v3 = vmul.f32 %v3436_v27, %v4598_v20  ;;  %v1730_v13 = vsel %vm1200_vm4, %v1728_v39, %v1729_v33  ;;  %v2134_v35 = vmul.f32 %v4989_v30, %v3436_v27  ;;  %v4768_v1 = vpop.f32.mrf.mxu1  ;;  %v4770_v39 = vpop.f32.mrf.mxu3 }
 0x212   : > { %v1732_v53 = vsel %vm1200_vm4, %v1729_v33, %v1731_v59  ;;  %v2135_v21 = vmul.f32 %v3436_v27, %v4564_v36  ;;  %v1813_v47 = vadd.f32 %v1730_v13, %v1572_v45  ;;  %v2009_v49 = vrot.slane %v1893_v14, 2 }
 0x213   : > { %v1814_v43 = vadd.f32 %v1732_v53, %v1573_v44  ;;  %v2008_v52 = vsel %vm1960_vm5, %v2006_v54, %v2007_v23  ;;  %v2247_v38 = vrot.slane %v2133_v3, 2  ;;  %v2248_v25 = vrot.slane %v2134_v35, 2 }
 0x214   : > { %v2250_v55 = vrot.slane %v2135_v21, 2  ;;  %v2374_v31 = vmul.f32 %v4531_v60, %v3913_v51  ;;  %v2010_v46 = vsel %vm1960_vm5, %v2007_v23, %v2009_v49  ;;  %v2091_v62 = vadd.f32 %v2008_v52, %v1813_v47 }
 0x215   : > { %v2375_v63 = vmul.f32 %v4531_v60, %v4991_v5  ;;  %v2376_v17 = vmul.f32 %v4531_v60, %v3782_v61  ;;  %v2092_v6 = vadd.f32 %v2010_v46, %v1814_v43  ;;  %v2249_v11 = vsel %vm1960_vm5, %v2247_v38, %v2248_v25 }
 0x216   : > { %v2251_v19 = vsel %vm1960_vm5, %v2248_v25, %v2250_v55  ;;  %v2488_v28 = vrot.slane %v2374_v31, 2  ;;  %v2332_v24 = vadd.f32 %v2249_v11, %v2091_v62  ;;  %v2794_v50 = vadd.f32 %v4692_v32, %v2793_v4 }
 0x217   : > { %v2489_v0 = vrot.slane %v2375_v63, 2  ;;  %v2491_v56 = vrot.slane %v2376_v17, 2  ;;  %v2333_v12 = vadd.f32 %v2251_v19, %v2092_v6  ;;  %v925_v37 = vmul.f32 %v4988_v48, %v3429_v18 }
 0x218   : > { %v926_v57 = vmul.f32 %v4989_v30, %v3429_v18  ;;  %v958_v2 = vmul.f32 %v3438_v29, %v4990_v58  ;;  %v2899_v44 = vadd.f32 %v3123_v9, %v2794_v50  ;;  %v959_v33 = vmul.f32 %v3438_v29, %v4991_v5 }
 0x219   : > { %v2490_v26 = vsel %vm1960_vm5, %v2488_v28, %v2489_v0  ;;  %v2492_v45 = vsel %vm1960_vm5, %v2489_v0, %v2491_v56  ;;  %v1023_v18 = vmul.f32 %v3853_v22, %v3441_v34  ;;  %v1024_v23 = vmul.f32 %v3855_v7, %v3441_v34  ;;  %v2798_v6 = vpop.f32.mrf.mxu1  ;;  %v2838_v11 = vpop.f32.mrf.mxu3 }
 0x21a   : > { %v2573_v59 = vadd.f32 %v2490_v26, %v2332_v24  ;;  %v2574_v4 = vadd.f32 %v2492_v45, %v2333_v12  ;;  %v990_v14 = vadd.f32 %v958_v2, %v925_v37  ;;  %2932 = vst.msk [vmem:[%s4257_s9 + $0x28] sm:$0xff] %vm2926_vm7, %v2899_v44  ;;  %v991_v54 = vadd.f32 %v959_v33, %v926_v57 }
 0x21b   : > { %v1134_v3 = vmul.f32 %v4988_v48, %v3423_v8  ;;  %v1135_v13 = vmul.f32 %v4989_v30, %v3423_v8  ;;  %v1136_v21 = vmul.f32 %v3423_v8, %v4564_v36  ;;  %v1376_v34 = vmul.f32 %v3444_v41, %v4990_v58 }
 0x21c   : > { %v2609_v29 = vadd.f32 %v4569_v10, %v2573_v59  ;;  %v2610_v53 = vadd.f32 %v4569_v10, %v2574_v4  ;;  %v1055_v35 = vadd.f32 %v1023_v18, %v990_v14  ;;  %v1056_v47 = vadd.f32 %v1024_v23, %v991_v54 }
 0x21d   : > { %v1251_v43 = vrot.slane %v1134_v3, 1  ;;  %v1252_v52 = vrot.slane %v1135_v13, 1  ;;  %v1254_v48 = vrot.slane %v1136_v21, 1  ;;  %v1377_v25 = vmul.f32 %v3444_v41, %v4991_v5 }
 0x21e   : > { %v2641_v49 = vmax.f32 %v2609_v29, 0.0  ;;  %v2642_v38 = vmax.f32 %v2610_v53, 0.0  ;;  %v1378_v31 = vmul.f32 %v3444_v41, %v3782_v61  ;;  %v1492_v46 = vrot.slane %v1376_v34, 1 }
 0x21f   : > { %v1253_v55 = vsel %vm1200_vm4, %v1251_v43, %v1252_v52  ;;  %v1617_v8 = vmul.f32 %v3853_v22, %v3446_v42  ;;  %v1255_v17 = vsel %vm1200_vm4, %v1252_v52, %v1254_v48  ;;  %v1493_v28 = vrot.slane %v1377_v25, 1 }
 0x220   : > { %v2673_v62 = vmin.f32 %v2641_v49, 6.0  ;;  %v2674_v63 = vmin.f32 %v2642_v38, 6.0  ;;  %v1333_v58 = vadd.f32 %v1253_v55, %v1055_v35  ;;  %v1334_v19 = vadd.f32 %v1255_v17, %v1056_v47 }
 0x221   : > { %v1495_v9 = vrot.slane %v1378_v31, 1  ;;  %v1618_v24 = vmul.f32 %v3855_v7, %v3446_v42  ;;  %v1619_v41 = vmul.f32 %v3446_v42, %v3884_v40  ;;  %v1733_v56 = vrot.slane %v1617_v8, 1  ;;  %v2801_v53 = vpop.f32.mrf.mxu1  ;;  %v2841_v35 = vpop.f32.mrf.mxu3  ;;  %v3140_v8 = vld [vmem:[%s3328_s8 + $0x121] sm:$0xff] }
 0x222   : > { %v2696_v0 = vpack.c.bf16 %v2674_v63, %v2673_v62  ;;  %v1894_v22 = vmul.f32 %v3427_v15, %v4598_v20  ;;  %v1494_v50 = vsel %vm1200_vm4, %v1492_v46, %v1493_v28  ;;  %v1895_v57 = vmul.f32 %v4989_v30, %v3427_v15  ;;  %v3141_v62 = vld [vmem:[%s3328_s8 + $0x129] sm:$0xff] }
 0x223   : > { %v1496_v12 = vsel %vm1200_vm4, %v1493_v28, %v1495_v9  ;;  %v1734_v37 = vrot.slane %v1618_v24, 1  ;;  %v1574_v2 = vadd.f32 %v1494_v50, %v1333_v58  ;;  %v1736_v45 = vrot.slane %v1619_v41, 1 }
 0x224   : > { %3111 = vmatmul.msk.bf16.gmra.mxu1 %vm2723_vm6, %v2696_v0  ;;  %v1575_v26 = vadd.f32 %v1496_v12, %v1334_v19  ;;  %v1896_v42 = vmul.f32 %v3427_v15, %v4564_v36  ;;  %v2011_v33 = vrot.slane %v1894_v22, 2  ;;  %v2012_v20 = vrot.slane %v1895_v57, 2  ;;  %v3127_v22 = vld [vmem:[%s3328_s8 + $0x81] sm:$0xff] }
 0x225   : > { %v1735_v44 = vsel %vm1200_vm4, %v1733_v56, %v1734_v37  ;;  %v2136_v59 = vmul.f32 %v3436_v27, %v3913_v51  ;;  %v1737_v4 = vsel %vm1200_vm4, %v1734_v37, %v1736_v45  ;;  %v2137_v30 = vmul.f32 %v3436_v27, %v4991_v5  ;;  %v3143_v37 = vld [vmem:[%s3328_s8 + $0x141] sm:$0xff] }
 0x226   : > { %v1815_v14 = vadd.f32 %v1735_v44, %v1574_v2  ;;  %v2014_v18 = vrot.slane %v1896_v42, 2  ;;  %v1816_v54 = vadd.f32 %v1737_v4, %v1575_v26  ;;  %v2013_v23 = vsel %vm1960_vm5, %v2011_v33, %v2012_v20  ;;  %v3128_v4 = vld [vmem:[%s3328_s8 + $0x91] sm:$0xff] }
 0x227   : > { %v2138_v15 = vmul.f32 %v3436_v27, %v3782_v61  ;;  %v2252_v36 = vrot.slane %v2136_v59, 2  ;;  %v2253_v51 = vrot.slane %v2137_v30, 2  ;;  %v2377_v29 = vmul.f32 %v4531_v60, %v3998_v16  ;;  %v3124_v27 = vld [vmem:[%s3328_s8 + $0x61] sm:$0xff]  ;;  %v3125_v61 = vld [vmem:[%s3328_s8 + $0x69] sm:$0xff] }
 0x228   : > { %v2015_v3 = vsel %vm1960_vm5, %v2012_v20, %v2014_v18  ;;  %v2093_v13 = vadd.f32 %v2013_v23, %v1815_v14  ;;  %v2378_v47 = vmul.f32 %v4531_v60, %v3855_v7  ;;  %v2379_v43 = vmul.f32 %v4531_v60, %v3884_v40  ;;  %v3126_v40 = vld [vmem:[%s3328_s8 + $0x79] sm:$0xff] }
 0x229   : > { %v2094_v21 = vadd.f32 %v2015_v3, %v1816_v54  ;;  %v2255_v5 = vrot.slane %v2138_v15, 2  ;;  %v2254_v52 = vsel %vm1960_vm5, %v2252_v36, %v2253_v51  ;;  %v2493_v34 = vrot.slane %v2377_v29, 2  ;;  %v2803_v56 = vpop.f32.mrf.mxu1  ;;  %v2843_v12 = vpop.f32.mrf.mxu3  ;;  %v3129_v54 = vld [vmem:[%s3328_s8 + $0x99] sm:$0xff]  ;;  %v3144_v36 = vld [vmem:[%s3328_s8 + $0x151] sm:$0xff] }
 0x22a   : > { %v2797_v16 = vadd.f32 %v4692_v32, %v4768_v1  ;;  %v2799_v49 = vadd.f32 %v4692_v32, %v2798_v6  ;;  %v2334_v48 = vadd.f32 %v2254_v52, %v2093_v13  ;;  %v2494_v7 = vrot.slane %v2378_v47, 2  ;;  %v3142_v6 = vld [vmem:[%s3328_s8 + $0x139] sm:$0xff]  ;;  %v3131_v52 = vld [vmem:[%s3328_s8 + $0xb1] sm:$0xff] }
 0x22b   : > { %v2256_v38 = vsel %vm1960_vm5, %v2253_v51, %v2255_v5  ;;  %v2496_v25 = vrot.slane %v2379_v43, 2  ;;  %v2802_v46 = vadd.f32 %v4692_v32, %v2801_v53  ;;  %v2837_v17 = vadd.f32 %v4692_v32, %v4770_v39  ;;  %v3130_v53 = vld [vmem:[%s3328_s8 + $0xa9] sm:$0xff]  ;;  %v3145_v5 = vld [vmem:[%s3328_s8 + $0x159] sm:$0xff] }
 0x22c   : > { %v2335_v60 = vadd.f32 %v2256_v38, %v2094_v21  ;;  %v2900_v55 = vadd.f32 %v3124_v27, %v2797_v16  ;;  %v2901_v31 = vadd.f32 %v3125_v61, %v2799_v49  ;;  %v2495_v1 = vsel %vm1960_vm5, %v2493_v34, %v2494_v7  ;;  %v3132_v38 = vld [vmem:[%s3328_s8 + $0xc1] sm:$0xff] }
 0x22d   : > { %v2497_v63 = vsel %vm1960_vm5, %v2494_v7, %v2496_v25  ;;  %v2839_v58 = vadd.f32 %v4692_v32, %v2838_v11  ;;  %v2575_v19 = vadd.f32 %v2495_v1, %v2334_v48  ;;  %v2902_v9 = vadd.f32 %v3126_v40, %v2802_v46  ;;  %v3133_v40 = vld [vmem:[%s3328_s8 + $0xc9] sm:$0xff] }
 0x22e   : > { %v2576_v28 = vadd.f32 %v2497_v63, %v2335_v60  ;;  %2933 = vst.msk [vmem:[%s4257_s9 + $0x30] sm:$0xff] %vm2926_vm7, %v2900_v55  ;;  %v2842_v24 = vadd.f32 %v4692_v32, %v2841_v35  ;;  %v2916_v0 = vadd.f32 %v3140_v8, %v2837_v17  ;;  %v2804_v57 = vadd.f32 %v4692_v32, %v2803_v56  ;;  %v3146_v46 = vld [vmem:[%s3328_s8 + $0x169] sm:$0xff]  ;;  %v3147_v63 = vld [vmem:[%s3328_s8 + $0x171] sm:$0xff]  ;;  %v3148_v56 = vld [vmem:[%s3328_s8 + $0x181] sm:$0xff] }
 0x22f   : > { %2934 = vst.msk [vmem:[%s4257_s9 + $0x38] sm:$0xff] %vm2926_vm7, %v2901_v31  ;;  %v2917_v41 = vadd.f32 %v3141_v62, %v2839_v58  ;;  %v2611_v39 = vadd.f32 %v4569_v10, %v2575_v19  ;;  %v2844_v2 = vadd.f32 %v4692_v32, %v2843_v12  ;;  %v3134_v19 = vld [vmem:[%s3328_s8 + $0xd9] sm:$0xff] }
 0x230   : > { %v2612_v11 = vadd.f32 %v4569_v10, %v2576_v28  ;;  %2935 = vst.msk [vmem:[%s4257_s9 + $0x40] sm:$0xff] %vm2926_vm7, %v2902_v9  ;;  %v2918_v50 = vadd.f32 %v3142_v6, %v2842_v24  ;;  %v2903_v10 = vadd.f32 %v3127_v22, %v2804_v57 }
 0x231   : > { %2949 = vst.msk [vmem:[%s4257_s9 + $0xb0] sm:$0xff] %vm2926_vm7, %v2916_v0  ;;  %v2643_v26 = vmax.f32 %v2611_v39, 0.0  ;;  %v2919_v42 = vadd.f32 %v3143_v37, %v2844_v2  ;;  %v2806_v59 = vpop.f32.mrf.mxu1  ;;  %v3135_v0 = vld [vmem:[%s3328_s8 + $0xe1] sm:$0xff]  ;;  %v3149_v37 = vld [vmem:[%s3328_s8 + $0x189] sm:$0xff] }
 0x232   : > { %v2644_v45 = vmax.f32 %v2612_v11, 0.0  ;;  %2950 = vst.msk [vmem:[%s4257_s9 + $0xb8] sm:$0xff] %vm2926_vm7, %v2917_v41  ;;  %v2807_v14 = vadd.f32 %v4692_v32, %v2806_v59 }
 0x233   : > { %2951 = vst.msk [vmem:[%s4257_s9 + $0xc0] sm:$0xff] %vm2926_vm7, %v2918_v50  ;;  %v2675_v44 = vmin.f32 %v2643_v26, 6.0 }
 0x234   : > { %v2676_v33 = vmin.f32 %v2644_v45, 6.0  ;;  %2936 = vst.msk [vmem:[%s4257_s9 + $0x48] sm:$0xff] %vm2926_vm7, %v2903_v10  ;;  %v2904_v18 = vadd.f32 %v3128_v4, %v2807_v14  ;;  %v3136_v45 = vld [vmem:[%s3328_s8 + $0xf1] sm:$0xff]  ;;  %v3138_v14 = vld [vmem:[%s3328_s8 + $0x109] sm:$0xff] }
 0x235   : > { %2952 = vst.msk [vmem:[%s4257_s9 + $0xc8] sm:$0xff] %vm2926_vm7, %v2919_v42 }
 0x236   : > { %v2697_v20 = vpack.c.bf16 %v2676_v33, %v2675_v44  ;;  %2937 = vst.msk [vmem:[%s4257_s9 + $0x50] sm:$0xff] %vm2926_vm7, %v2904_v18  ;;  %v3137_v33 = vld [vmem:[%s3328_s8 + $0xf9] sm:$0xff] }
 0x238   : > { %3112 = vmatmul.msk.bf16.gmra.mxu1 %vm2723_vm6, %v2697_v20 }
 0x239   : > { %v2808_v30 = vpop.f32.mrf.mxu1 }
 0x23a   : > { %v2809_v23 = vadd.f32 %v4692_v32, %v2808_v30 }
 0x23c   : > { %v2905_v3 = vadd.f32 %v3129_v54, %v2809_v23  ;;  %v3139_v23 = vld [vmem:[%s3328_s8 + $0x111] sm:$0xff] }
 0x23e   : > { %2938 = vst.msk [vmem:[%s4257_s9 + $0x58] sm:$0xff] %vm2926_vm7, %v2905_v3 }
 0x241   : > { %v2846_v15 = vpop.f32.mrf.mxu3  ;;  %v2811_v29 = vpop.f32.mrf.mxu1 }
 0x242   : > { %v2847_v13 = vadd.f32 %v4692_v32, %v2846_v15  ;;  %v2812_v35 = vadd.f32 %v4692_v32, %v2811_v29 }
 0x244   : > { %v2920_v51 = vadd.f32 %v3144_v36, %v2847_v13  ;;  %v2906_v47 = vadd.f32 %v3130_v53, %v2812_v35 }
 0x246   : > { %2953 = vst.msk [vmem:[%s4257_s9 + $0xd0] sm:$0xff] %vm2926_vm7, %v2920_v51 }
 0x247   : > { %2939 = vst.msk [vmem:[%s4257_s9 + $0x60] sm:$0xff] %vm2926_vm7, %v2906_v47 }
 0x249   : > { %v2848_v21 = vpop.f32.mrf.mxu3  ;;  %v2813_v61 = vpop.f32.mrf.mxu1 }
 0x24a   : > { %v2849_v43 = vadd.f32 %v4692_v32, %v2848_v21  ;;  %v2814_v34 = vadd.f32 %v4692_v32, %v2813_v61 }
 0x24c   : > { %v2921_v27 = vadd.f32 %v3145_v5, %v2849_v43  ;;  %v2907_v16 = vadd.f32 %v3131_v52, %v2814_v34 }
 0x24e   : > { %2954 = vst.msk [vmem:[%s4257_s9 + $0xd8] sm:$0xff] %vm2926_vm7, %v2921_v27 }
 0x24f   : > { %2940 = vst.msk [vmem:[%s4257_s9 + $0x68] sm:$0xff] %vm2926_vm7, %v2907_v16 }
 0x251   : > { %v2816_v49 = vpop.f32.mrf.mxu1 }
 0x252   : > { %v2817_v48 = vadd.f32 %v4692_v32, %v2816_v49 }
 0x254   : > { %v2908_v7 = vadd.f32 %v3132_v38, %v2817_v48 }
 0x256   : > { %2941 = vst.msk [vmem:[%s4257_s9 + $0x70] sm:$0xff] %vm2926_vm7, %v2908_v7 }
 0x259   : > { %v2818_v25 = vpop.f32.mrf.mxu1 }
 0x25a   : > { %v2819_v60 = vadd.f32 %v4692_v32, %v2818_v25 }
 0x25c   : > { %v2909_v55 = vadd.f32 %v3133_v40, %v2819_v60 }
 0x25e   : > { %2942 = vst.msk [vmem:[%s4257_s9 + $0x78] sm:$0xff] %vm2926_vm7, %v2909_v55 }
 0x26a   : > { %v2851_v31 = vpop.f32.mrf.mxu3 }
 0x26b   : > { %v2852_v8 = vadd.f32 %v4692_v32, %v2851_v31 }
 0x26d   : > { %v2922_v62 = vadd.f32 %v3146_v46, %v2852_v8 }
 0x26f   : > { %2955 = vst.msk [vmem:[%s4257_s9 + $0xe0] sm:$0xff] %vm2926_vm7, %v2922_v62 }
 0x272   : > { %v2853_v1 = vpop.f32.mrf.mxu3 }
 0x273   : > { %v2854_v17 = vadd.f32 %v4692_v32, %v2853_v1 }
 0x275   : > { %v2923_v58 = vadd.f32 %v3147_v63, %v2854_v17 }
 0x277   : > { %2956 = vst.msk [vmem:[%s4257_s9 + $0xe8] sm:$0xff] %vm2926_vm7, %v2923_v58 }
 0x279   : > { %v2821_v6 = vpop.f32.mrf.mxu1 }
 0x27a   : > { %v2822_v28 = vadd.f32 %v4692_v32, %v2821_v6 }
 0x27c   : > { %v2910_v9 = vadd.f32 %v3134_v19, %v2822_v28 }
 0x27e   : > { %2943 = vst.msk [vmem:[%s4257_s9 + $0x80] sm:$0xff] %vm2926_vm7, %v2910_v9 }
 0x281   : > { %v2823_v24 = vpop.f32.mrf.mxu1 }
 0x282   : > { %v2824_v41 = vadd.f32 %v4692_v32, %v2823_v24 }
 0x284   : > { %v2911_v39 = vadd.f32 %v3135_v0, %v2824_v41 }
 0x286   : > { %2944 = vst.msk [vmem:[%s4257_s9 + $0x88] sm:$0xff] %vm2926_vm7, %v2911_v39 }
 0x293   : > { %v2856_v11 = vpop.f32.mrf.mxu3 }
 0x294   : > { %v2857_v22 = vadd.f32 %v4692_v32, %v2856_v11 }
 0x296   : > { %v2924_v50 = vadd.f32 %v3148_v56, %v2857_v22 }
 0x298   : > { %2957 = vst.msk [vmem:[%s4257_s9 + $0xf0] sm:$0xff] %vm2926_vm7, %v2924_v50 }
 0x29b   : > { %v2858_v12 = vpop.f32.mrf.mxu3 }
 0x29c   : > { %v2859_v57 = vadd.f32 %v4692_v32, %v2858_v12 }
 0x29e   : > { %v2925_v2 = vadd.f32 %v3149_v37, %v2859_v57 }
 0x2a0   : > { %2958 = vst.msk [vmem:[%s4257_s9 + $0xf8] sm:$0xff] %vm2926_vm7, %v2925_v2 }
 0x2a1   : > { %v2826_v26 = vpop.f32.mrf.mxu1 }
 0x2a2   : > { %v2827_v10 = vadd.f32 %v4692_v32, %v2826_v26 }
 0x2a4   : > { %v2912_v42 = vadd.f32 %v3136_v45, %v2827_v10 }
 0x2a6   : > { %2945 = vst.msk [vmem:[%s4257_s9 + $0x90] sm:$0xff] %vm2926_vm7, %v2912_v42 }
 0x2a9   : > { %v2828_v44 = vpop.f32.mrf.mxu1 }
 0x2aa   : > { %v2829_v20 = vadd.f32 %v4692_v32, %v2828_v44 }
 0x2ac   : > { %v2913_v59 = vadd.f32 %v3137_v33, %v2829_v20 }
 0x2ae   : > { %2946 = vst.msk [vmem:[%s4257_s9 + $0x98] sm:$0xff] %vm2926_vm7, %v2913_v59 }
 0x2b5   : > { %v2831_v4 = vpop.f32.mrf.mxu1 }
 0x2b6   : > { %v2832_v18 = vadd.f32 %v4692_v32, %v2831_v4 }
 0x2b8   : > { %v2914_v30 = vadd.f32 %v3138_v14, %v2832_v18 }
 0x2ba   : > { %2947 = vst.msk [vmem:[%s4257_s9 + $0xa0] sm:$0xff] %vm2926_vm7, %v2914_v30 }
 0x2bd   : > { %v2833_v54 = vpop.f32.mrf.mxu1 }
 0x2be   : > { %v2834_v15 = vadd.f32 %v4692_v32, %v2833_v54 }
 0x2c0   : > { %v2915_v36 = vadd.f32 %v3139_v23, %v2834_v15 }
 0x2c2   : > { %2948 = vst.msk [vmem:[%s4257_s9 + $0xa8] sm:$0xff] %vm2926_vm7, %v2915_v36 }
 0x2c3 PF: > { %s16_s23 = sadd.s32 1, %s3260_s23   ;;  %s4992_s21 = smov %s3256_s22 }
 0x2c4   : > { %p13_p5 = scmp.ge.s32.totalorder %s16_s23, 4   ;;  %s4993_s22 = smov %s4995_s24 }
 0x2c6   :  { %15 = sbr.rel (!%p13_p5) target bundleno = 2 (0x2), region = 75 }

</bundles_post_ra>
